<compile_context>
chip_gen: v6e
topology: v6e:2x2x1
jax: 0.10.0
libtpu: 0.0.40
codegen_flags: <defaults>
</compile_context>

<pallas_src>
import math
import functools

import jax
import jax.numpy as jnp
from jax import lax
from jax.experimental import pallas as pl
from jax.experimental.pallas import tpu as pltpu

LOG_HALF = math.log(0.5)


# ----------------------------------------------------------------------------
# Kernel
# ----------------------------------------------------------------------------
def _n3_kernel(scale_ref, xet_ref, xt_ref, yet_ref, idx_ref, out_ref, *, k, o, tm):
    xe_t = xet_ref[0]                         # (e, n)  resident across m tiles
    x_t = xt_ref[0]                           # (f, n)  resident across m tiles
    ye_t = yet_ref[0]                         # (e, tm) queries, tm on lanes
    idx = idx_ref[0, 0]                       # (1, o*tm) int32, column r = oi*tm + j
    n = xe_t.shape[1]
    fl = o * tm

    # --- transposed one-hot gather: [e|f] x (n) x (o*tm), tm*o lane-dense -----
    idx = jnp.clip(idx, 0, n - 1)             # defined behaviour for OOB/padded indices
    iota_n = lax.broadcasted_iota(jnp.int32, (n, fl), 0)
    onehot_t = (iota_n == idx).astype(jnp.float32)                    # (n, o*tm)

    xe_g = jnp.dot(xe_t, onehot_t, preferred_element_type=jnp.float32,
                   precision=lax.Precision.HIGHEST)                   # (e, o*tm)
    x_g = jnp.dot(x_t, onehot_t, preferred_element_type=jnp.float32,
                  precision=lax.Precision.HIGHEST)                    # (f, o*tm)

    # --- squared euclidean distances, lane-dense VPU work ---------------------
    # d[oi, j] = || ye[:, j] - xe_g[:, oi*tm + j] ||^2
    d_rows = []
    for oi in range(o):
        dfo = xe_g[:, oi * tm:(oi + 1) * tm] - ye_t                   # (e, tm)
        d_rows.append(jnp.sum(dfo * dfo, axis=0, keepdims=True))      # (1, tm)
    d = jnp.concatenate(d_rows, axis=0)                               # (o, tm)

    # --- continuous top-k (o on sublanes, tm on lanes) -------------------------
    # scale = -1/temperature (scalar, SMEM)
    logits = d * scale_ref[0]                                         # (o, tm)
    z_parts = []
    for r in range(k):
        mx = jnp.max(logits, axis=0, keepdims=True)                   # (1, tm)
        p_un = jnp.exp(logits - mx)                                   # (o, tm)
        denom = jnp.sum(p_un, axis=0, keepdims=True)                  # (1, tm)
        p = p_un * (1.0 / denom)                                      # softmax weights
        if r + 1 < k:
            # log(1 - p) = log(denom - p_un) - log(denom); extreme tail
            # (p -> 1 within an ulp) hits -inf, i.e. the sample is excluded,
            # which is the intended behaviour of log1mexp here.
            logits = logits + (jnp.log(denom - p_un) - jnp.log(denom))

        # o-unrolled, lane-dense aggregation: z_r[c, j] = sum_o p[o, j] * x_g[c, o*tm + j]
        zk = x_g[:, 0:tm] * p[0:1, :]                                 # (f, tm)
        for oi in range(1, o):
            zk = zk + x_g[:, oi * tm:(oi + 1) * tm] * p[oi:oi + 1, :]
        z_parts.append(zk)

    out_ref[0] = jnp.stack(z_parts, axis=0).astype(out_ref.dtype)     # (k, f, tm)


# ----------------------------------------------------------------------------
# Generation-gated tiling / VMEM budget
# ----------------------------------------------------------------------------
def _vmem_capacity_bytes():
    try:
        cap = getattr(pltpu.get_tpu_info(), "vmem_capacity_bytes", None)
        if cap:
            return int(cap)
    except Exception:
        pass
    return 64 * 1024 * 1024          # conservative fallback (v7x: 64 MiB / TC)


def _estimate_vmem_bytes(tm, n, o, e, f, k):
    fl = o * tm
    resident = 2 * (e + f) * n * 4                       # xe^T + x^T blocks (double buffered)
    streamed = 2 * (e * tm + fl + k * f * tm) * 4        # ye / I / out blocks (double buffered)
    onehot = n * fl * 4                                  # dominant temp
    gathered = (e + f) * fl * 4
    loop = (6 * fl + 2 * k * f * tm) * 4                 # top-k / aggregation live temps (rough)
    return resident + streamed + onehot + gathered + loop


def _m_tile_candidates(m):
    cands = {m}
    if m % 128 == 0:
        cands |= {t for t in range(128, m, 128) if m % t == 0}
    return sorted(cands, reverse=True)


def _pick_m_tile(m, b, n, o, e, f, k, budget):
    cands = _m_tile_candidates(m)
    fitting = [t for t in cands if _estimate_vmem_bytes(t, n, o, e, f, k) <= budget]
    pool = fitting or cands
    tile = pool[0]
    # megacore: keep >= 2 parallel programs so both TensorCores (v7x) get work
    if b * (m // tile) < 2:
        for t in pool:
            if b * (m // t) >= 2:
                tile = t
                break
    return tile


# ----------------------------------------------------------------------------
# Wrapper
# ----------------------------------------------------------------------------
def n3_aggregation(x, xe, ye, I, log_temp, *, k, temp_bias=1.0, tm=None,
                   vmem_limit_bytes=None):
    """Pallas implementation of N3AggregationBase.forward (default temp_opt)."""
    b, n, f = x.shape
    m, e = ye.shape[1:]
    o = I.shape[2]
    assert xe.shape == (b, n, e)
    assert I.shape == (b, m, o)
    if k > o:
        raise ValueError("k must be <= o (otherwise logits degenerate to -inf)")

    cap = _vmem_capacity_bytes()
    budget = int(cap * 0.55)
    if tm is None:
        tm = _pick_m_tile(m, b, n, o, e, f, k, budget)
    if m % tm != 0 or not (tm == m or tm % 128 == 0):
        raise ValueError(f"tm={tm} must divide m={m} and be a multiple of 128 (or == m)")
    nmt = m // tm

    # Layout plumbing in the wrapper (XLA): transposed operands so the kernel's
    # matmuls / VPU stages and the output are lane-dense in the m / o*tm axes.
    xe_t = jnp.swapaxes(xe.astype(jnp.float32), 1, 2)                 # (b, e, n)
    x_t = jnp.swapaxes(x.astype(jnp.float32), 1, 2)                   # (b, f, n)
    ye_t = jnp.swapaxes(ye.astype(jnp.float32), 1, 2)                 # (b, e, m)
    # Pre-tiled, flattened indices: element [bi, t, 0, oi*tm + j] = I[bi, t*tm + j, oi]
    I_tiled = (jnp.swapaxes(I, 1, 2)                                  # (b, o, m)
               .reshape(b, o, nmt, tm)
               .transpose(0, 2, 1, 3)
               .reshape(b, nmt, 1, o * tm)).astype(jnp.int32)

    # scale = -1/temperature = -exp(-(log_temp + log(temp_bias))), scalar in SMEM.
    scale = (-jnp.exp(-(log_temp.reshape(()) + math.log(temp_bias)))
             ).reshape((1,)).astype(jnp.float32)

    if vmem_limit_bytes is None:
        est = _estimate_vmem_bytes(tm, n, o, e, f, k)
        vmem_limit_bytes = int(min(cap * 0.85, max(32 * 1024 * 1024, 2 * est)))

    kernel = functools.partial(_n3_kernel, k=k, o=o, tm=tm)

    z_kfm = pl.pallas_call(
        kernel,
        out_shape=jax.ShapeDtypeStruct((b, k, f, m), x.dtype),
        grid=(b, nmt),
        in_specs=[
            pl.BlockSpec(memory_space=pltpu.MemorySpace.SMEM),            # scale (1,)
            pl.BlockSpec((1, e, n), lambda bi, mi: (bi, 0, 0)),           # xe^T, resident over m
            pl.BlockSpec((1, f, n), lambda bi, mi: (bi, 0, 0)),           # x^T,  resident over m
            pl.BlockSpec((1, e, tm), lambda bi, mi: (bi, 0, mi)),         # ye^T tile
            pl.BlockSpec((1, 1, 1, o * tm), lambda bi, mi: (bi, mi, 0, 0)),  # flattened I tile
        ],
        out_specs=pl.BlockSpec((1, k, f, tm), lambda bi, mi: (bi, 0, 0, mi)),
        compiler_params=pltpu.CompilerParams(
            dimension_semantics=("parallel", "parallel"),
            vmem_limit_bytes=int(vmem_limit_bytes)),
    )(scale, xe_t, x_t, ye_t, I_tiled)

    # Kernel writes lane-dense (b, k, f, m); module contract is (b, m, f, k).
    return jnp.transpose(z_kfm, (0, 3, 2, 1))


# ----------------------------------------------------------------------------
# Plain-JAX reference (mirrors the PyTorch forward), used only for verification
# ----------------------------------------------------------------------------
def _log1mexp(x):
    # Forward value of log(1 - exp(x)) for x <= 0 (the PyTorch expm1_guard only
    # affects the backward pass).
    return jnp.where(x < LOG_HALF, jnp.log1p(-jnp.exp(x)), jnp.log(-jnp.expm1(x)))


def n3_reference(x, xe, ye, I, log_temp, *, k, temp_bias=1.0):
    hp = lax.Precision.HIGHEST
    d_full = (jnp.sum(ye * ye, -1)[:, :, None]
              - 2.0 * jnp.einsum("bme,bne->bmn", ye, xe, precision=hp)
              + jnp.sum(xe * xe, -1)[:, None, :])                     # (b, m, n)
    d = jnp.take_along_axis(d_full, I, axis=2)                        # (b, m, o)
    temperature = jnp.exp(log_temp.reshape(()) + math.log(temp_bias))
    logits = (-d) / temperature
    samples = []
    for _ in range(k):
        lw = jax.nn.log_softmax(logits, axis=-1)
        samples.append(jnp.exp(lw))
        logits = logits + _log1mexp(lw)
    w = jnp.stack(samples, axis=3)                                    # (b, m, o, k)
    xg = jax.vmap(lambda xb, ib: xb[ib])(x, I)                        # (b, m, o, f)
    return jnp.einsum("bmok,bmof->bmfk", w, xg, precision=hp)


if __name__ == "__main__":
    # Small shapes consistent with the module's forward contract.
    # m=256 with tm=128 exercises the tiled (b, m//tm) grid and the lane-dense
    # (tm = 128-lane) production layout.
    b, n, m, o, e, f, k = 2, 64, 256, 6, 16, 8, 3

    key = jax.random.PRNGKey(0)
    k1, k2, k3, k4 = jax.random.split(key, 4)
    x = jax.random.normal(k1, (b, n, f), dtype=jnp.float32)
    xe = jax.random.normal(k2, (b, n, e), dtype=jnp.float32)
    ye = jax.random.normal(k3, (b, m, e), dtype=jnp.float32)
    I = jax.random.randint(k4, (b, m, o), 0, n, dtype=jnp.int32)

    # NeuralNearestNeighbors parameter: log_temp = nn.Parameter(zeros(1)); temp_bias = 1.
    # TODO(synk): optional distance_bn (BatchNorm1d) and external_temp paths are
    # disabled by the default temp_opt={} and not implemented here.
    log_temp = jnp.zeros((1,), dtype=jnp.float32)

    z = n3_aggregation(x, xe, ye, I, log_temp, k=k, tm=128)
    jax.block_until_ready(z)

    z_ref = n3_reference(x, xe, ye, I, log_temp, k=k)
    assert z.shape == (b, m, f, k)
    assert jnp.allclose(z, z_ref, atol=1e-4, rtol=1e-4), "mismatch vs reference"
    print("KERNEL_OK")
</pallas_src>

<mosaic_0001>
module attributes {stable_mosaic.version = 11 : i64} {
  func.func @_n3_kernel(%arg0: i32, %arg1: i32, %arg2: memref<1xf32, #tpu.memory_space<smem>>, %arg3: memref<1x16x64xf32, #tpu.memory_space<vmem>>, %arg4: memref<1x8x64xf32, #tpu.memory_space<vmem>>, %arg5: memref<1x16x128xf32, #tpu.memory_space<vmem>>, %arg6: memref<1x1x1x768xi32, #tpu.memory_space<vmem>>, %arg7: memref<1x3x8x128xf32, #tpu.memory_space<vmem>>) attributes {dimension_semantics = [#tpu.dimension_semantics<parallel>, #tpu.dimension_semantics<parallel>], iteration_bounds = array<i64: 2, 2>, scalar_prefetch = 0 : i64, scratch_operands = 0 : i64, tpu.core_type = #tpu.core_type<tc>, window_params = [{transform_indices = @transform_0, window_bounds = array<i64: 1>}, {transform_indices = @transform_1, window_bounds = array<i64: 1, 16, 64>}, {transform_indices = @transform_2, window_bounds = array<i64: 1, 8, 64>}, {transform_indices = @transform_3, window_bounds = array<i64: 1, 16, 128>}, {transform_indices = @transform_4, window_bounds = array<i64: 1, 1, 1, 768>}, {transform_indices = @transform_5, window_bounds = array<i64: 1, 3, 8, 128>}]} {
    %c0 = arith.constant 0 : index
    %c0_0 = arith.constant 0 : index
    %c0_1 = arith.constant 0 : index
    %0 = vector.load %arg3[%c0, %c0_0, %c0_1] : memref<1x16x64xf32, #tpu.memory_space<vmem>>, vector<1x16x64xf32>
    %1 = vector.shape_cast %0 : vector<1x16x64xf32> to vector<16x64xf32>
    %c0_2 = arith.constant 0 : index
    %c0_3 = arith.constant 0 : index
    %c0_4 = arith.constant 0 : index
    %2 = vector.load %arg4[%c0_2, %c0_3, %c0_4] : memref<1x8x64xf32, #tpu.memory_space<vmem>>, vector<1x8x64xf32>
    %3 = vector.shape_cast %2 : vector<1x8x64xf32> to vector<8x64xf32>
    %c0_5 = arith.constant 0 : index
    %c0_6 = arith.constant 0 : index
    %c0_7 = arith.constant 0 : index
    %4 = vector.load %arg5[%c0_5, %c0_6, %c0_7] : memref<1x16x128xf32, #tpu.memory_space<vmem>>, vector<1x16x128xf32>
    %5 = vector.shape_cast %4 : vector<1x16x128xf32> to vector<16x128xf32>
    %c0_8 = arith.constant 0 : index
    %c0_9 = arith.constant 0 : index
    %c0_10 = arith.constant 0 : index
    %c0_11 = arith.constant 0 : index
    %6 = vector.load %arg6[%c0_8, %c0_9, %c0_10, %c0_11] : memref<1x1x1x768xi32, #tpu.memory_space<vmem>>, vector<1x1x1x768xi32>
    %7 = vector.shape_cast %6 : vector<1x1x1x768xi32> to vector<1x768xi32>
    %c0_i32 = arith.constant 0 : i32
    %c63_i32 = arith.constant 63 : i32
    %8 = vector.broadcast %c0_i32 : i32 to vector<1x768xi32>
    %9 = arith.maxsi %8, %7 : vector<1x768xi32>
    %10 = vector.broadcast %c63_i32 : i32 to vector<1x768xi32>
    %11 = arith.minsi %10, %9 : vector<1x768xi32>
    %12 = tpu.iota {dimensions = array<i32: 0>} : vector<64x768xi32>
    %13 = vector.broadcast %11 : vector<1x768xi32> to vector<64x768xi32>
    %14 = arith.cmpi eq, %12, %13 : vector<64x768xi32>
    %15 = arith.extui %14 : vector<64x768xi1> to vector<64x768xi32>
    %16 = arith.sitofp %15 : vector<64x768xi32> to vector<64x768xf32>
    %cst = arith.constant dense<0.000000e+00> : vector<16x768xf32>
    %17 = tpu.matmul %1, %16, %cst {dimension_numbers = #tpu.dot_dimension_numbers<[1], [0], [0], [1], [0, 0, 1, 1], [], []>, precision = #tpu.contract_precision<fp32>} : vector<16x64xf32>, vector<64x768xf32>, vector<16x768xf32> -> vector<16x768xf32>
    %cst_12 = arith.constant dense<0.000000e+00> : vector<8x768xf32>
    %18 = tpu.matmul %3, %16, %cst_12 {dimension_numbers = #tpu.dot_dimension_numbers<[1], [0], [0], [1], [0, 0, 1, 1], [], []>, precision = #tpu.contract_precision<fp32>} : vector<8x64xf32>, vector<64x768xf32>, vector<8x768xf32> -> vector<8x768xf32>
    %19 = vector.extract_strided_slice %17 {offsets = [0, 0], sizes = [16, 128], strides = [1, 1]} : vector<16x768xf32> to vector<16x128xf32>
    %20 = arith.subf %19, %5 : vector<16x128xf32>
    %21 = arith.mulf %20, %20 : vector<16x128xf32>
    %cst_13 = arith.constant dense<0.000000e+00> : vector<128xf32>
    %22 = vector.multi_reduction <add>, %21, %cst_13 [0] : vector<16x128xf32> to vector<128xf32>
    %23 = vector.shape_cast %22 : vector<128xf32> to vector<1x128xf32>
    %24 = vector.extract_strided_slice %17 {offsets = [0, 128], sizes = [16, 128], strides = [1, 1]} : vector<16x768xf32> to vector<16x128xf32>
    %25 = arith.subf %24, %5 : vector<16x128xf32>
    %26 = arith.mulf %25, %25 : vector<16x128xf32>
    %cst_14 = arith.constant dense<0.000000e+00> : vector<128xf32>
    %27 = vector.multi_reduction <add>, %26, %cst_14 [0] : vector<16x128xf32> to vector<128xf32>
    %28 = vector.shape_cast %27 : vector<128xf32> to vector<1x128xf32>
    %29 = vector.extract_strided_slice %17 {offsets = [0, 256], sizes = [16, 128], strides = [1, 1]} : vector<16x768xf32> to vector<16x128xf32>
    %30 = arith.subf %29, %5 : vector<16x128xf32>
    %31 = arith.mulf %30, %30 : vector<16x128xf32>
    %cst_15 = arith.constant dense<0.000000e+00> : vector<128xf32>
    %32 = vector.multi_reduction <add>, %31, %cst_15 [0] : vector<16x128xf32> to vector<128xf32>
    %33 = vector.shape_cast %32 : vector<128xf32> to vector<1x128xf32>
    %34 = vector.extract_strided_slice %17 {offsets = [0, 384], sizes = [16, 128], strides = [1, 1]} : vector<16x768xf32> to vector<16x128xf32>
    %35 = arith.subf %34, %5 : vector<16x128xf32>
    %36 = arith.mulf %35, %35 : vector<16x128xf32>
    %cst_16 = arith.constant dense<0.000000e+00> : vector<128xf32>
    %37 = vector.multi_reduction <add>, %36, %cst_16 [0] : vector<16x128xf32> to vector<128xf32>
    %38 = vector.shape_cast %37 : vector<128xf32> to vector<1x128xf32>
    %39 = vector.extract_strided_slice %17 {offsets = [0, 512], sizes = [16, 128], strides = [1, 1]} : vector<16x768xf32> to vector<16x128xf32>
    %40 = arith.subf %39, %5 : vector<16x128xf32>
    %41 = arith.mulf %40, %40 : vector<16x128xf32>
    %cst_17 = arith.constant dense<0.000000e+00> : vector<128xf32>
    %42 = vector.multi_reduction <add>, %41, %cst_17 [0] : vector<16x128xf32> to vector<128xf32>
    %43 = vector.shape_cast %42 : vector<128xf32> to vector<1x128xf32>
    %44 = vector.extract_strided_slice %17 {offsets = [0, 640], sizes = [16, 128], strides = [1, 1]} : vector<16x768xf32> to vector<16x128xf32>
    %45 = arith.subf %44, %5 : vector<16x128xf32>
    %46 = arith.mulf %45, %45 : vector<16x128xf32>
    %cst_18 = arith.constant dense<0.000000e+00> : vector<128xf32>
    %47 = vector.multi_reduction <add>, %46, %cst_18 [0] : vector<16x128xf32> to vector<128xf32>
    %48 = vector.shape_cast %47 : vector<128xf32> to vector<1x128xf32>
    %49 = tpu.concatenate %23, %28, %33, %38, %43, %48 in 0 : vector<1x128xf32>, vector<1x128xf32>, vector<1x128xf32>, vector<1x128xf32>, vector<1x128xf32>, vector<1x128xf32> -> vector<6x128xf32>
    %c0_19 = arith.constant 0 : index
    %50 = memref.load %arg2[%c0_19] : memref<1xf32, #tpu.memory_space<smem>>
    %51 = vector.broadcast %50 : f32 to vector<6x128xf32>
    %52 = arith.mulf %49, %51 : vector<6x128xf32>
    %cst_20 = arith.constant dense<0xFF800000> : vector<128xf32>
    %53 = vector.multi_reduction <maximumf>, %52, %cst_20 [0] : vector<6x128xf32> to vector<128xf32>
    %54 = vector.shape_cast %53 : vector<128xf32> to vector<1x128xf32>
    %55 = vector.broadcast %54 : vector<1x128xf32> to vector<6x128xf32>
    %56 = arith.subf %52, %55 : vector<6x128xf32>
    %57 = math.exp %56 : vector<6x128xf32>
    %cst_21 = arith.constant dense<0.000000e+00> : vector<128xf32>
    %58 = vector.multi_reduction <add>, %57, %cst_21 [0] : vector<6x128xf32> to vector<128xf32>
    %59 = vector.shape_cast %58 : vector<128xf32> to vector<1x128xf32>
    %cst_22 = arith.constant 1.000000e+00 : f32
    %60 = vector.broadcast %cst_22 : f32 to vector<1x128xf32>
    %61 = arith.divf %60, %59 : vector<1x128xf32>
    %62 = vector.broadcast %61 : vector<1x128xf32> to vector<6x128xf32>
    %63 = arith.mulf %57, %62 : vector<6x128xf32>
    %64 = vector.broadcast %59 : vector<1x128xf32> to vector<6x128xf32>
    %65 = arith.subf %64, %57 : vector<6x128xf32>
    %66 = math.log %65 : vector<6x128xf32>
    %67 = math.log %59 : vector<1x128xf32>
    %68 = vector.broadcast %67 : vector<1x128xf32> to vector<6x128xf32>
    %69 = arith.subf %66, %68 : vector<6x128xf32>
    %70 = arith.addf %52, %69 : vector<6x128xf32>
    %71 = vector.extract_strided_slice %18 {offsets = [0, 0], sizes = [8, 128], strides = [1, 1]} : vector<8x768xf32> to vector<8x128xf32>
    %72 = vector.extract_strided_slice %63 {offsets = [0, 0], sizes = [1, 128], strides = [1, 1]} : vector<6x128xf32> to vector<1x128xf32>
    %73 = vector.broadcast %72 : vector<1x128xf32> to vector<8x128xf32>
    %74 = arith.mulf %71, %73 : vector<8x128xf32>
    %75 = vector.extract_strided_slice %18 {offsets = [0, 128], sizes = [8, 128], strides = [1, 1]} : vector<8x768xf32> to vector<8x128xf32>
    %76 = vector.extract_strided_slice %63 {offsets = [1, 0], sizes = [1, 128], strides = [1, 1]} : vector<6x128xf32> to vector<1x128xf32>
    %77 = vector.broadcast %76 : vector<1x128xf32> to vector<8x128xf32>
    %78 = arith.mulf %75, %77 : vector<8x128xf32>
    %79 = arith.addf %74, %78 : vector<8x128xf32>
    %80 = vector.extract_strided_slice %18 {offsets = [0, 256], sizes = [8, 128], strides = [1, 1]} : vector<8x768xf32> to vector<8x128xf32>
    %81 = vector.extract_strided_slice %63 {offsets = [2, 0], sizes = [1, 128], strides = [1, 1]} : vector<6x128xf32> to vector<1x128xf32>
    %82 = vector.broadcast %81 : vector<1x128xf32> to vector<8x128xf32>
    %83 = arith.mulf %80, %82 : vector<8x128xf32>
    %84 = arith.addf %79, %83 : vector<8x128xf32>
    %85 = vector.extract_strided_slice %18 {offsets = [0, 384], sizes = [8, 128], strides = [1, 1]} : vector<8x768xf32> to vector<8x128xf32>
    %86 = vector.extract_strided_slice %63 {offsets = [3, 0], sizes = [1, 128], strides = [1, 1]} : vector<6x128xf32> to vector<1x128xf32>
    %87 = vector.broadcast %86 : vector<1x128xf32> to vector<8x128xf32>
    %88 = arith.mulf %85, %87 : vector<8x128xf32>
    %89 = arith.addf %84, %88 : vector<8x128xf32>
    %90 = vector.extract_strided_slice %18 {offsets = [0, 512], sizes = [8, 128], strides = [1, 1]} : vector<8x768xf32> to vector<8x128xf32>
    %91 = vector.extract_strided_slice %63 {offsets = [4, 0], sizes = [1, 128], strides = [1, 1]} : vector<6x128xf32> to vector<1x128xf32>
    %92 = vector.broadcast %91 : vector<1x128xf32> to vector<8x128xf32>
    %93 = arith.mulf %90, %92 : vector<8x128xf32>
    %94 = arith.addf %89, %93 : vector<8x128xf32>
    %95 = vector.extract_strided_slice %18 {offsets = [0, 640], sizes = [8, 128], strides = [1, 1]} : vector<8x768xf32> to vector<8x128xf32>
    %96 = vector.extract_strided_slice %63 {offsets = [5, 0], sizes = [1, 128], strides = [1, 1]} : vector<6x128xf32> to vector<1x128xf32>
    %97 = vector.broadcast %96 : vector<1x128xf32> to vector<8x128xf32>
    %98 = arith.mulf %95, %97 : vector<8x128xf32>
    %99 = arith.addf %94, %98 : vector<8x128xf32>
    %cst_23 = arith.constant dense<0xFF800000> : vector<128xf32>
    %100 = vector.multi_reduction <maximumf>, %70, %cst_23 [0] : vector<6x128xf32> to vector<128xf32>
    %101 = vector.shape_cast %100 : vector<128xf32> to vector<1x128xf32>
    %102 = vector.broadcast %101 : vector<1x128xf32> to vector<6x128xf32>
    %103 = arith.subf %70, %102 : vector<6x128xf32>
    %104 = math.exp %103 : vector<6x128xf32>
    %cst_24 = arith.constant dense<0.000000e+00> : vector<128xf32>
    %105 = vector.multi_reduction <add>, %104, %cst_24 [0] : vector<6x128xf32> to vector<128xf32>
    %106 = vector.shape_cast %105 : vector<128xf32> to vector<1x128xf32>
    %cst_25 = arith.constant 1.000000e+00 : f32
    %107 = vector.broadcast %cst_25 : f32 to vector<1x128xf32>
    %108 = arith.divf %107, %106 : vector<1x128xf32>
    %109 = vector.broadcast %108 : vector<1x128xf32> to vector<6x128xf32>
    %110 = arith.mulf %104, %109 : vector<6x128xf32>
    %111 = vector.broadcast %106 : vector<1x128xf32> to vector<6x128xf32>
    %112 = arith.subf %111, %104 : vector<6x128xf32>
    %113 = math.log %112 : vector<6x128xf32>
    %114 = math.log %106 : vector<1x128xf32>
    %115 = vector.broadcast %114 : vector<1x128xf32> to vector<6x128xf32>
    %116 = arith.subf %113, %115 : vector<6x128xf32>
    %117 = arith.addf %70, %116 : vector<6x128xf32>
    %118 = vector.extract_strided_slice %18 {offsets = [0, 0], sizes = [8, 128], strides = [1, 1]} : vector<8x768xf32> to vector<8x128xf32>
    %119 = vector.extract_strided_slice %110 {offsets = [0, 0], sizes = [1, 128], strides = [1, 1]} : vector<6x128xf32> to vector<1x128xf32>
    %120 = vector.broadcast %119 : vector<1x128xf32> to vector<8x128xf32>
    %121 = arith.mulf %118, %120 : vector<8x128xf32>
    %122 = vector.extract_strided_slice %18 {offsets = [0, 128], sizes = [8, 128], strides = [1, 1]} : vector<8x768xf32> to vector<8x128xf32>
    %123 = vector.extract_strided_slice %110 {offsets = [1, 0], sizes = [1, 128], strides = [1, 1]} : vector<6x128xf32> to vector<1x128xf32>
    %124 = vector.broadcast %123 : vector<1x128xf32> to vector<8x128xf32>
    %125 = arith.mulf %122, %124 : vector<8x128xf32>
    %126 = arith.addf %121, %125 : vector<8x128xf32>
    %127 = vector.extract_strided_slice %18 {offsets = [0, 256], sizes = [8, 128], strides = [1, 1]} : vector<8x768xf32> to vector<8x128xf32>
    %128 = vector.extract_strided_slice %110 {offsets = [2, 0], sizes = [1, 128], strides = [1, 1]} : vector<6x128xf32> to vector<1x128xf32>
    %129 = vector.broadcast %128 : vector<1x128xf32> to vector<8x128xf32>
    %130 = arith.mulf %127, %129 : vector<8x128xf32>
    %131 = arith.addf %126, %130 : vector<8x128xf32>
    %132 = vector.extract_strided_slice %18 {offsets = [0, 384], sizes = [8, 128], strides = [1, 1]} : vector<8x768xf32> to vector<8x128xf32>
    %133 = vector.extract_strided_slice %110 {offsets = [3, 0], sizes = [1, 128], strides = [1, 1]} : vector<6x128xf32> to vector<1x128xf32>
    %134 = vector.broadcast %133 : vector<1x128xf32> to vector<8x128xf32>
    %135 = arith.mulf %132, %134 : vector<8x128xf32>
    %136 = arith.addf %131, %135 : vector<8x128xf32>
    %137 = vector.extract_strided_slice %18 {offsets = [0, 512], sizes = [8, 128], strides = [1, 1]} : vector<8x768xf32> to vector<8x128xf32>
    %138 = vector.extract_strided_slice %110 {offsets = [4, 0], sizes = [1, 128], strides = [1, 1]} : vector<6x128xf32> to vector<1x128xf32>
    %139 = vector.broadcast %138 : vector<1x128xf32> to vector<8x128xf32>
    %140 = arith.mulf %137, %139 : vector<8x128xf32>
    %141 = arith.addf %136, %140 : vector<8x128xf32>
    %142 = vector.extract_strided_slice %18 {offsets = [0, 640], sizes = [8, 128], strides = [1, 1]} : vector<8x768xf32> to vector<8x128xf32>
    %143 = vector.extract_strided_slice %110 {offsets = [5, 0], sizes = [1, 128], strides = [1, 1]} : vector<6x128xf32> to vector<1x128xf32>
    %144 = vector.broadcast %143 : vector<1x128xf32> to vector<8x128xf32>
    %145 = arith.mulf %142, %144 : vector<8x128xf32>
    %146 = arith.addf %141, %145 : vector<8x128xf32>
    %cst_26 = arith.constant dense<0xFF800000> : vector<128xf32>
    %147 = vector.multi_reduction <maximumf>, %117, %cst_26 [0] : vector<6x128xf32> to vector<128xf32>
    %148 = vector.shape_cast %147 : vector<128xf32> to vector<1x128xf32>
    %149 = vector.broadcast %148 : vector<1x128xf32> to vector<6x128xf32>
    %150 = arith.subf %117, %149 : vector<6x128xf32>
    %151 = math.exp %150 : vector<6x128xf32>
    %cst_27 = arith.constant dense<0.000000e+00> : vector<128xf32>
    %152 = vector.multi_reduction <add>, %151, %cst_27 [0] : vector<6x128xf32> to vector<128xf32>
    %153 = vector.shape_cast %152 : vector<128xf32> to vector<1x128xf32>
    %cst_28 = arith.constant 1.000000e+00 : f32
    %154 = vector.broadcast %cst_28 : f32 to vector<1x128xf32>
    %155 = arith.divf %154, %153 : vector<1x128xf32>
    %156 = vector.broadcast %155 : vector<1x128xf32> to vector<6x128xf32>
    %157 = arith.mulf %151, %156 : vector<6x128xf32>
    %158 = vector.extract_strided_slice %18 {offsets = [0, 0], sizes = [8, 128], strides = [1, 1]} : vector<8x768xf32> to vector<8x128xf32>
    %159 = vector.extract_strided_slice %157 {offsets = [0, 0], sizes = [1, 128], strides = [1, 1]} : vector<6x128xf32> to vector<1x128xf32>
    %160 = vector.broadcast %159 : vector<1x128xf32> to vector<8x128xf32>
    %161 = arith.mulf %158, %160 : vector<8x128xf32>
    %162 = vector.extract_strided_slice %18 {offsets = [0, 128], sizes = [8, 128], strides = [1, 1]} : vector<8x768xf32> to vector<8x128xf32>
    %163 = vector.extract_strided_slice %157 {offsets = [1, 0], sizes = [1, 128], strides = [1, 1]} : vector<6x128xf32> to vector<1x128xf32>
    %164 = vector.broadcast %163 : vector<1x128xf32> to vector<8x128xf32>
    %165 = arith.mulf %162, %164 : vector<8x128xf32>
    %166 = arith.addf %161, %165 : vector<8x128xf32>
    %167 = vector.extract_strided_slice %18 {offsets = [0, 256], sizes = [8, 128], strides = [1, 1]} : vector<8x768xf32> to vector<8x128xf32>
    %168 = vector.extract_strided_slice %157 {offsets = [2, 0], sizes = [1, 128], strides = [1, 1]} : vector<6x128xf32> to vector<1x128xf32>
    %169 = vector.broadcast %168 : vector<1x128xf32> to vector<8x128xf32>
    %170 = arith.mulf %167, %169 : vector<8x128xf32>
    %171 = arith.addf %166, %170 : vector<8x128xf32>
    %172 = vector.extract_strided_slice %18 {offsets = [0, 384], sizes = [8, 128], strides = [1, 1]} : vector<8x768xf32> to vector<8x128xf32>
    %173 = vector.extract_strided_slice %157 {offsets = [3, 0], sizes = [1, 128], strides = [1, 1]} : vector<6x128xf32> to vector<1x128xf32>
    %174 = vector.broadcast %173 : vector<1x128xf32> to vector<8x128xf32>
    %175 = arith.mulf %172, %174 : vector<8x128xf32>
    %176 = arith.addf %171, %175 : vector<8x128xf32>
    %177 = vector.extract_strided_slice %18 {offsets = [0, 512], sizes = [8, 128], strides = [1, 1]} : vector<8x768xf32> to vector<8x128xf32>
    %178 = vector.extract_strided_slice %157 {offsets = [4, 0], sizes = [1, 128], strides = [1, 1]} : vector<6x128xf32> to vector<1x128xf32>
    %179 = vector.broadcast %178 : vector<1x128xf32> to vector<8x128xf32>
    %180 = arith.mulf %177, %179 : vector<8x128xf32>
    %181 = arith.addf %176, %180 : vector<8x128xf32>
    %182 = vector.extract_strided_slice %18 {offsets = [0, 640], sizes = [8, 128], strides = [1, 1]} : vector<8x768xf32> to vector<8x128xf32>
    %183 = vector.extract_strided_slice %157 {offsets = [5, 0], sizes = [1, 128], strides = [1, 1]} : vector<6x128xf32> to vector<1x128xf32>
    %184 = vector.broadcast %183 : vector<1x128xf32> to vector<8x128xf32>
    %185 = arith.mulf %182, %184 : vector<8x128xf32>
    %186 = arith.addf %181, %185 : vector<8x128xf32>
    %187 = vector.shape_cast %99 : vector<8x128xf32> to vector<1x8x128xf32>
    %188 = vector.shape_cast %146 : vector<8x128xf32> to vector<1x8x128xf32>
    %189 = vector.shape_cast %186 : vector<8x128xf32> to vector<1x8x128xf32>
    %190 = tpu.concatenate %187, %188, %189 in 0 : vector<1x8x128xf32>, vector<1x8x128xf32>, vector<1x8x128xf32> -> vector<3x8x128xf32>
    %c0_29 = arith.constant 0 : index
    %c0_30 = arith.constant 0 : index
    %c0_31 = arith.constant 0 : index
    %c0_32 = arith.constant 0 : index
    %191 = vector.load %arg7[%c0_29, %c0_30, %c0_31, %c0_32] : memref<1x3x8x128xf32, #tpu.memory_space<vmem>>, vector<1x3x8x128xf32>
    %192 = vector.shape_cast %191 : vector<1x3x8x128xf32> to vector<3x8x128xf32>
    %193 = vector.shape_cast %190 : vector<3x8x128xf32> to vector<1x3x8x128xf32>
    tpu.vector_store %arg7[%c0_29, %c0_30, %c0_31, %c0_32], %193 {strides = array<i32>} : memref<1x3x8x128xf32, #tpu.memory_space<vmem>>, vector<1x3x8x128xf32>,
    return
  }
  func.func @transform_0(%arg0: i32, %arg1: i32) -> i32 {
    %c0_i32 = arith.constant 0 : i32
    %c0_i32_0 = arith.constant 0 : i32
    return %c0_i32 : i32
  }
  func.func @transform_1(%arg0: i32, %arg1: i32) -> (i32, i32, i32) {
    %c0_i32 = arith.constant 0 : i32
    %c0_i32_0 = arith.constant 0 : i32
    %c0_i32_1 = arith.constant 0 : i32
    return %arg0, %c0_i32, %c0_i32_0 : i32, i32, i32
  }
  func.func @transform_2(%arg0: i32, %arg1: i32) -> (i32, i32, i32) {
    %c0_i32 = arith.constant 0 : i32
    %c0_i32_0 = arith.constant 0 : i32
    %c0_i32_1 = arith.constant 0 : i32
    return %arg0, %c0_i32, %c0_i32_0 : i32, i32, i32
  }
  func.func @transform_3(%arg0: i32, %arg1: i32) -> (i32, i32, i32) {
    %c0_i32 = arith.constant 0 : i32
    %c0_i32_0 = arith.constant 0 : i32
    return %arg0, %c0_i32, %arg1 : i32, i32, i32
  }
  func.func @transform_4(%arg0: i32, %arg1: i32) -> (i32, i32, i32, i32) {
    %c0_i32 = arith.constant 0 : i32
    %c0_i32_0 = arith.constant 0 : i32
    %c0_i32_1 = arith.constant 0 : i32
    return %arg0, %arg1, %c0_i32, %c0_i32_0 : i32, i32, i32, i32
  }
  func.func @transform_5(%arg0: i32, %arg1: i32) -> (i32, i32, i32, i32) {
    %c0_i32 = arith.constant 0 : i32
    %c0_i32_0 = arith.constant 0 : i32
    %c0_i32_1 = arith.constant 0 : i32
    return %arg0, %c0_i32, %c0_i32_0, %arg1 : i32, i32, i32, i32
  }
}

</mosaic_0001>

<bundles_post_ra>
// kernel: tpu_custom_call.1
= control target key start
LH: loop header
LB: loop body
LE: loop exit
PB: predicated region body
PF: predicated region fallthrough
CT: control target
= control target key end

     0   :  { %s8574_s0 = inlined_call_operand.<no memory space> [shape: f32[1], index: 0, kind: input, shape index: {}]   ;;  %s8575_s1 = inlined_call_operand.hbm [shape: f32[2,16,64], index: 1, kind: input, shape index: {}]   ;;  %s8576_s2 = inlined_call_operand.hbm [shape: f32[2,8,64], index: 2, kind: input, shape index: {}]   ;;  %s8577_s3 = inlined_call_operand.hbm [shape: f32[2,16,256], index: 3, kind: input, shape index: {}]   ;;  %s8578_s4 = inlined_call_operand.hbm [shape: s32[2,2,1,768], index: 4, kind: input, shape index: {}]   ;;  %s8579_s5 = inlined_call_operand.hbm [shape: f32[2,3,8,256], index: 5, kind: output, shape index: {}]  }
   0x1   :  { %8950 = sst [smem:[#allocation192_spill]] %s8575_s1 }
   0x2   :  { %8951 = sst [smem:[#allocation193_spill]] %s8576_s2 }
   0x3   :  { %8952 = sst [smem:[#allocation194_spill]] %s8577_s3 }
   0x4   :  { %8953 = sst [smem:[#allocation195_spill]] %s8579_s5 }
   0x5   :  { %10 = sst [smem:[#allocation2]] %s8574_s0 }
   0x6   :  { %11 = vsyncpa [#allocation4], 0 }
   0x7   :  { %13 = vsyncpa [#allocation4 + $0x1], 0 }
   0x8   :  { %14 = vsyncpa [#allocation7], 0 }
   0x9   :  { %16 = vsyncpa [#allocation7 + $0x1], 0 }
   0xa   :  { %17 = vsyncpa [#allocation10], 0 }
   0xb   :  { %19 = vsyncpa [#allocation10 + $0x1], 0 }
   0xc   :  { %20 = vsyncpa [#allocation5], 0 }
   0xd   :  { %22 = vsyncpa [#allocation5 + $0x1], 0  ;;  %s5837_s20 = smov 0   ;;  %s5839_s21 = smov 0  }
   0xe   :  { %s5841_s22 = smov 0   ;;  %s5843_s23 = smov 0  }
   0xf   :  { %s5845_s24 = smov 0   ;;  %s5847_s25 = smov 0  }
  0x10   :  { %s5849_s0 = smov 0   ;;  %s5851_s26 = smov 0  }
  0x11   :  { %s5853_s27 = smov 0   ;;  %s5855_s28 = smov 0  }
  0x12   :  { %s5857_s29 = smov 0  }
  0x13 LB: > { %8954 = sst [smem:[#allocation17_spill]] %s5749_s20  ;;  %s5891_s30 = sadd.s32 4294967295, %s5789_s29   ;;  %s5789_s29 = sphi %s5857_s29, %s28_s29   ;;  %s5785_s28 = sphi %s5855_s28, %s9563_s28   ;;  %s5781_s27 = sphi %s5853_s27, %s9562_s27   ;;  %s5777_s26 = sphi %s5851_s26, %s9561_s26   ;;  %s5773_s0 = sphi %s5849_s0, %s9560_s0   ;;  %s5769_s25 = sphi %s5847_s25, %s9553_s25   ;;  %s5765_s24 = sphi %s5845_s24, %s9559_s24   ;;  %s5761_s23 = sphi %s5843_s23, %s9558_s23   ;;  %s5757_s22 = sphi %s5841_s22, %s9551_s22   ;;  %s5753_s21 = sphi %s5839_s21, %s9557_s21   ;;  %s5749_s20 = sphi %s5837_s20, %s9556_s20  }
  0x14   : > { %8955 = sst [smem:[#allocation18_spill]] %s5757_s22  ;;  %s5038_s6 = sadd.s32 4294967294, %s5789_s29  }
  0x15   : > { %8956 = sst [smem:[#allocation19_spill]] %s5769_s25  ;;  %s37_s7 = sadd.s32 1, %s5781_s27 }
  0x16   : > { %8957 = sst [smem:[#allocation20_spill]] %s5789_s29  ;;  %s40_s8 = sadd.s32 1, %s5785_s28 }
  0x17   : > { %p38_p0 = scmp.ge.s32.totalorder %s37_s7, 2  ;;  %s68_s9 = sadd.s32 1, %s5769_s25 }
  0x18   : > { %p75_p1 = scmp.ne.s32.totalorder %s5769_s25, %s5765_s24  ;;  %p76_p2 = scmp.eq.s32.totalorder %s5789_s29, 0 }
  0x19   : > { %s9565_s7 = smov (%p38_p0, %s37_s7), 0  ;;  %s9567_s8 = smov (!%p38_p0, %s40_s8), %s5785_s28 }
  0x1a   : > { %8958 = sst [smem:[#allocation21_spill]] %s9565_s7  ;;  %p5905_p3 = por %p76_p2, %p75_p1 }
  0x1b   : > { %p81_p4 = scmp.ne.s32.totalorder %s5765_s24, %s5761_s23  ;;  %p42_p5 = scmp.ge.s32.totalorder %s9567_s8, 2 }
  0x1c   : > { %p82_p6 = scmp.eq.s32.totalorder %s5891_s30, 0  ;;  %s118_s11 = ssub.s32 %s5781_s27, %s9565_s7 }
  0x1d   : > { %s122_s12 = sadd.s32 1, %s5757_s22  ;;  %s9569_s8 = smov (%p42_p5, %s9567_s8), 0 }
  0x1e   : > { %8960 = sst [smem:[#allocation22_spill]] %s9569_s8  ;;  %p5918_p7 = por %p82_p6, %p81_p4 }
  0x1f   : > { %p129_p8 = scmp.ne.s32.totalorder %s5757_s22, %s5753_s21  ;;  %s65_s14 = ssub.s32 %s5785_s28, %s9569_s8 }
  0x20   : > { %p135_p9 = scmp.ne.s32.totalorder %s5753_s21, %s5749_s20  ;;  %p66_p10 = scmp.eq.s32.totalorder %s65_s14, 0 }
  0x21   : > { %s119_s15 = sor.u32 %s118_s11, %s65_s14  ;;  %p5930_p12 = por %p129_p8, %p76_p2 }
  0x22   : > { %p120_p11 = scmp.eq.s32.totalorder %s119_s15, 0  ;;  %p5942_p13 = por %p135_p9, %p82_p6 }
  0x23   : > { %s5935_s17 = scalar_select %p66_p10, %s5769_s25, %s68_s9  }
  0x24   : > { %s5938_s18 = scalar_select %p120_p11, %s5757_s22, %s122_s12  }
  0x25   : > { %8963 = sst [smem:[#allocation23_spill]] %s5935_s17  ;;  %p189_p0 = scmp.eq.s32.totalorder %s5891_s30, 3 }
  0x26   : > { %8964 = sst [smem:[#allocation24_spill]] %s5938_s18  ;;  %p195_p1 = scmp.eq.s32.totalorder %s5038_s6, 3 }
  0x27   : > { %p5947_p4 = por %p189_p0, %p129_p8  ;;  %p5427_p2 = scmp.lt.s32.totalorder %s5789_s29, 4 }
  0x28   : > { %p5952_p5 = por %p195_p1, %p135_p9  ;;  %s5957_s9 = sand.u32 1, %s5769_s25  }
  0x29   : > { %s8966_s23 = scalar_select %p5947_p4, 1, 0 }
  0x2a   : > { %s8968_s11 = scalar_select %p5952_p5, 1, 0 }
  0x2b   : > { %8967 = sst [smem:[#allocation25_spill]] %s8966_s23  ;;  %p5962_p6 = pnand %p5427_p2, %p5905_p3 }
  0x2c   : > { %8969 = sst [smem:[#allocation26_spill]] %s8968_s11  ;;  %s239_s6 = sand.u32 1, %s5789_s29  }
  0x2d   : > { %s5044_s15 = sshll.u32 %s5957_s9, 3  ;;  %s5045_s8 = sshll.u32 %s5785_s28, 7 }
  0x2e   : > { %s8971_s2 = sld [smem:[#allocation193_spill]]  ;;  %s243_s11 = scalar_lea.vmem [#allocation6], %s5044_s15 }
  0x2f   : > { %s250_s25 = sshll.u32 %s243_s11, 4  ;;  %p5974_p8 = pnand %p5427_p2, %p5930_p12  ;;  %s251_s25 = int_to_ptr.vmem [resolvable:$true] %s250_s25 }
  0x30   : > { %s5978_s10 = scalar_lea.sflag [#allocation7], %s239_s6  ;;  %p8585_p3 = pneg %p5962_p6 }
  0x31   : > { %s5558_s20 = scalar_lea.vmem %s251_s25, 128  ;;  %s5791_s7 = smov [#allocation6]  }
  0x32   : > { %p5559_p9 = scmp.ne.s32.totalorder %s251_s25, %s5558_s20 }
  0x34   : > { %s248_s18 = scalar_lea.hbm %s8971_s2, %s5045_s8  ;;  %p5561_p10 = pnand %p5559_p9, %p8585_p3 }
  0x35   : > { %s5563_s8 = sshll.u32 %s5791_s7, 4  ;;  %s5564_s8 = int_to_ptr.vmem [resolvable:$false] %s5563_s8 }
  0x36   : > { %p5562_p11 = pneg %p5561_p10  ;;  %s5565_s17 = scalar_lea.vmem %s5564_s8, 256 }
  0x37   : > { %p5566_p0 = scmp.lt.s32.totalorder %s251_s25, %s5564_s8  ;;  %p5567_p1 = scmp.lt.s32.totalorder %s5565_s17, %s5558_s20 }
  0x39   : > { %p5568_p12 = por %p5567_p1, %p5566_p0 }
  0x3b   : > { %p5569_p2 = pnand %p5568_p12, %p5562_p11 }
  0x3d   : > { %5572 = shalt.err (!%p5569_p2)
}
  0x3e   : > { %5416 = dma.hbm_to_vmem [thread:$0]  (!%p5962_p6), %s248_s18, 128, %s251_s25, %s5978_s10  }
  0x3f   : > { %p5050_p9 = scmp.ge.s32.totalorder %s5789_s29, 1  ;;  %p298_p10 = scmp.lt.s32.totalorder %s5789_s29, 5 }
  0x40   : > { %s5393_s20 = sshll.u32 %s5785_s28, 8  ;;  %s8974_s11 = sshll.u32 %s5957_s9, 4 }
  0x41   : > { %p5990_p3 = pnand %p5050_p9, %p298_p10  ;;  %s222_s6 = scalar_lea.vmem [#allocation3], %s8974_s11 }
  0x42   : > { %s229_s15 = sshll.u32 %s222_s6, 4  ;;  %s8975_s1 = sld [smem:[#allocation192_spill]]  ;;  %s230_s15 = int_to_ptr.vmem [resolvable:$true] %s229_s15 }
  0x43   : > { %s219_s2 = scalar_lea.sflag [#allocation4], %s5957_s9  ;;  %s5586_s5 = scalar_lea.vmem %s230_s15, 256 }
  0x44   : > { %p5587_p11 = scmp.ne.s32.totalorder %s230_s15, %s5586_s5  ;;  %p8976_p0 = pneg %p5962_p6 }
  0x45   : > { %s5792_s25 = smov [#allocation3]  }
  0x46   : > { %p5589_p1 = pnand %p5587_p11, %p8976_p0  ;;  %s5591_s18 = sshll.u32 %s5792_s25, 4  ;;  %s5592_s18 = int_to_ptr.vmem [resolvable:$false] %s5591_s18 }
  0x47   : > { %s5593_s29 = scalar_lea.vmem %s5592_s18, 512  ;;  %p5594_p2 = scmp.lt.s32.totalorder %s230_s15, %s5592_s18 }
  0x48   : > { %s228_s17 = scalar_lea.hbm %s8975_s1, %s5393_s20  ;;  %p5590_p12 = pneg %p5589_p1 }
  0x49   : > { %p5595_p9 = scmp.lt.s32.totalorder %s5593_s29, %s5586_s5 }
  0x4b   : > { %p5596_p10 = por %p5595_p9, %p5594_p2 }
  0x4d   : > { %p5597_p5 = pnand %p5596_p10, %p5590_p12 }
  0x4f   : > { %5600 = shalt.err (!%p5597_p5)
}
  0x50   : > { %s5793_s11 = smov 128   ;;  %s5794_s9 = smov 8  }
  0x51   : > { %5413 = dma.hbm_to_vmem [thread:$0]  (!%p5962_p6), %s228_s17, 256, %s230_s15, %s219_s2, %s5793_s11, %s5793_s11, %s5794_s9  }
  0x52   : > { %s6010_s20 = sand.u32 1, %s5757_s22   ;;  %s5047_s5 = sshll.u32 %s5785_s28, 2 }
  0x53   : > { %s5046_s29 = sshll.u32 %s6010_s20, 4  ;;  %s266_s6 = sadd.s32 %s5781_s27, %s5047_s5 }
  0x54   : > { %s5048_s7 = sshll.u32 %s266_s6, 7  ;;  %s8977_s3 = sld [smem:[#allocation194_spill]] }
  0x55   : > { %s261_s1 = scalar_lea.vmem [#allocation8], %s5046_s29  ;;  %p5603_p5 = pneg %p5974_p8 }
  0x56   : > { %s269_s23 = sshll.u32 %s261_s1, 4  ;;  %s5795_s2 = smov [#allocation8]   ;;  %s270_s23 = int_to_ptr.vmem [resolvable:$true] %s269_s23 }
  0x57   : > { %s5614_s14 = scalar_lea.vmem %s270_s23, 256  ;;  %s5619_s15 = sshll.u32 %s5795_s2, 4  ;;  %s5620_s15 = int_to_ptr.vmem [resolvable:$false] %s5619_s15 }
  0x58   : > { %p5615_p11 = scmp.ne.s32.totalorder %s270_s23, %s5614_s14  ;;  %s5621_s17 = scalar_lea.vmem %s5620_s15, 512 }
  0x59   : > { %p5622_p1 = scmp.lt.s32.totalorder %s270_s23, %s5620_s15  ;;  %p5623_p12 = scmp.lt.s32.totalorder %s5621_s17, %s5614_s14 }
  0x5a   : > { %s268_s18 = scalar_lea.hbm %s8977_s3, %s5048_s7  ;;  %p5617_p6 = pnand %p5615_p11, %p5603_p5 }
  0x5b   : > { %p5624_p2 = por %p5623_p12, %p5622_p1 }
  0x5c   : > { %p5618_p0 = pneg %p5617_p6 }
  0x5e   : > { %p5625_p9 = pnand %p5624_p2, %p5618_p0 }
  0x60   : > { %5628 = shalt.err (!%p5625_p9)
}
  0x61   : > { %s5796_s5 = smov 256   ;;  %s5394_s1 = smul.u32 6, %s6010_s20 }
  0x62   : > { %5419 = dma.hbm_to_vmem [thread:$0]  (!%p5974_p8), %s268_s18, 256, %s270_s23, %s5978_s10, %s5796_s5, %s5793_s11, %s5794_s9  }
  0x63   : > { %s5395_s29 = smul.u32 6, %s5781_s27  ;;  %s283_s7 = scalar_lea.vmem [#allocation9], %s5394_s1 }
  0x64   : > { %s5396_s6 = smul.u32 12, %s5785_s28  ;;  %s293_s8 = sshll.u32 %s283_s7, 4  ;;  %s294_s8 = int_to_ptr.vmem [resolvable:$true] %s293_s8 }
  0x65   : > { %s280_s3 = scalar_lea.sflag [#allocation10], %s6010_s20  ;;  %s5642_s22 = scalar_lea.vmem %s294_s8, 96 }
  0x66   : > { %s289_s25 = sadd.s32 %s5396_s6, %s5395_s29  ;;  %p5643_p10 = scmp.ne.s32.totalorder %s294_s8, %s5642_s22 }
  0x67   : > { %s5049_s14 = sshll.u32 %s289_s25, 4  ;;  %s5797_s23 = smov [#allocation9]  }
  0x68   : > { %s291_s17 = scalar_lea.hbm %s8578_s4, %s5049_s14  ;;  %p5645_p11 = pnand %p5643_p10, %p5603_p5 }
  0x69   : > { %s5647_s10 = sshll.u32 %s5797_s23, 4  ;;  %s5648_s10 = int_to_ptr.vmem [resolvable:$false] %s5647_s10 }
  0x6a   : > { %p5646_p6 = pneg %p5645_p11  ;;  %s5649_s11 = scalar_lea.vmem %s5648_s10, 192 }
  0x6b   : > { %p5650_p0 = scmp.lt.s32.totalorder %s294_s8, %s5648_s10  ;;  %p5651_p1 = scmp.lt.s32.totalorder %s5649_s11, %s5642_s22 }
  0x6d   : > { %p5652_p12 = por %p5651_p1, %p5650_p0 }
  0x6f   : > { %p5653_p2 = pnand %p5652_p12, %p5646_p6 }
  0x71   : > { %5656 = shalt.err (!%p5653_p2)
}
  0x72   : > { %5422 = dma.hbm_to_vmem [thread:$0]  (!%p5974_p8), %s291_s17, 96, %s294_s8, %s280_s3  }
  0x73   : > { %302 = sbr.rel (%p5990_p3) target bundleno = 786 (0x312), region = 40 }
  0x78   : > { %s304_s9 = sand.u32 1, %s5765_s24  }
  0x79   : > { %s5051_s20 = sshll.u32 %s304_s9, 4  ;;  %s305_s18 = scalar_lea.sflag [#allocation4], %s304_s9 }
  0x7a   : > { %s6043_s5 = scalar_lea.vmem [#allocation3], %s5051_s20 }
  0x7b   : > { %5728 = dma.done.wait (%p5918_p7), %s305_s18, 256  }
  0x7c   : > { %5730 = vsyncadd (%p5918_p7), %s305_s18, 4294967040  ;;  %s313_s22 = sand.u32 1, %s5891_s30   ;;  %s5052_s12 = sshll.u32 %s304_s9, 3 }
  0x7d   : > { %s314_s3 = scalar_lea.sflag [#allocation7], %s313_s22  ;;  %s6050_s1 = scalar_lea.vmem [#allocation6], %s5052_s12 }
  0x7e   : > { %5732 = dma.done.wait (%p5918_p7), %s314_s3, 128  }
  0x7f   : > { %5734 = vsyncadd (%p5918_p7), %s314_s3, 4294967168  ;;  %s6057_s16 = sand.u32 1, %s5753_s21  }
  0x80   : > { %s5053_s29 = sshll.u32 %s6057_s16, 4 }
  0x81   : > { %s6060_s6 = scalar_lea.vmem [#allocation8], %s5053_s29 }
  0x82   : > { %5736 = dma.done.wait (%p5942_p13), %s314_s3, 256  }
  0x83   : > { %5738 = vsyncadd (%p5942_p13), %s314_s3, 4294967040  ;;  %s5397_s30 = smul.u32 6, %s6057_s16  ;;  %s332_s7 = scalar_lea.sflag [#allocation10], %s6057_s16 }
  0x85   : > { %s335_s13 = scalar_lea.vmem [#allocation9], %s5397_s30 }
  0x86   : > { %5740 = dma.done.wait (%p5942_p13), %s332_s7, 96  }
  0x87   : > { %5742 = vsyncadd (%p5942_p13), %s332_s7, 4294967200  ;;  %v387_v0 = vlaneseq  ;;  %v8595_v1 = vmov 0.0   ;;  %vm8592_vm0 = vcmask 523264   ;;  %v382_v3 = vld [vmem:[%s335_s13] sm:$0x3f]  ;;  %v8985_v26 = vmov 0 }
  0x88   : > { %651 = vmatprep.mubr.f32.mxu0 %v8595_v1  ;;  %818 = vmatprep.mubr.f32.mxu1 %v8595_v1  ;;  %v377_v4 = vld [vmem:[%s6043_s5] sm:$0xff]  ;;  %vm383_vm1 = vcmp.gt.s32.totalorder %v382_v3, 0  ;;  %v378_v8 = vld [vmem:[%s6043_s5 + $0x8] sm:$0xff]  ;;  %v8988_v27 = vmov 0  ;;  %v8991_v28 = vmov 0  ;;  %v8994_v29 = vmov 0 }
  0x89   : > { %v6074_v2 = vshrl.u32 %v387_v0, 7  ;;  %v566_v7 = vsel %vm8592_vm0, %v377_v4, 0  ;;  %v384_v9 = vsel %vm383_vm1, %v382_v3, 0  ;;  %v569_v11 = vsel %vm8592_vm0, %v378_v8, 0  ;;  %s4679_s19 = sld [smem:[#allocation2]]  ;;  %s5398_s8 = smul.u32 24, %s6057_s16 }
  0x8a   : > { %v6085_v10 = vand.u32 4294901760, %v566_v7  ;;  %vm385_vm2 = vcmp.lt.s32.totalorder %v384_v9, 63  ;;  %v6094_v14 = vand.u32 4294901760, %v569_v11  ;;  %v8603_v30 = vmov 1.0   ;;  %s5399_s14 = smul.u32 6, %s5777_s26  ;;  %s9545_s11 = sld [smem:[#allocation195_spill]] }
  0x8b   : > { %8978 = vst [vmem:[#allocation27_spill] sm:$0xff] %v6074_v2  ;;  %v6078_v5 = vsub.s32 1, %v6074_v2  ;;  %v6081_v6 = vsub.s32 0, %v6074_v2  ;;  %v6089_v12 = vadd.s32 56, %v6074_v2  ;;  %v6092_v13 = vadd.s32 48, %v6074_v2  ;;  %s8488_s25 = scalar_lea.vmem [#allocation11], %s5398_s8 }
  0x8c   : > { %v6096_v15 = vsel %vm385_vm2, %v384_v9, 63  ;;  %v6099_v16 = vadd.s32 40, %v6074_v2  ;;  %v6102_v17 = vadd.s32 32, %v6074_v2  ;;  %v6105_v18 = vsub.f32 %v566_v7, %v6085_v10  ;;  %s4877_s15 = sadd.s32 %s5773_s0, %s5399_s14  ;;  %s4880_s17 = sshll.u32 %s8488_s25, 4  ;;  %s8506_s17 = int_to_ptr.vmem [resolvable:$true] %s4880_s17 }
  0x8d   : > { %8979 = vst [vmem:[#allocation28_spill] sm:$0xff] %v6078_v5  ;;  %8980 = vst [vmem:[#allocation29_spill] sm:$0xff] %v6081_v6  ;;  %v403_v19 = vrot.slane %v6096_v15, %v6078_v5  ;;  %v399_v20 = vrot.slane %v6096_v15, %v6081_v6  ;;  %v6112_v21 = vadd.s32 24, %v6074_v2  ;;  %v6115_v22 = vadd.s32 16, %v6074_v2  ;;  %s5390_s23 = sshll.u32 %s4877_s15, 7  ;;  %s4866_s20 = scalar_lea.sflag [#allocation5], %s6057_s16 }
  0x8e   : > { %v6118_v23 = vadd.s32 8, %v6074_v2  ;;  %v6121_v24 = vand.u32 4294901760, %v6105_v18  ;;  %v6124_v25 = vsub.f32 %v569_v11, %v6094_v14  ;;  %v8997_v31 = vmov 0  ;;  %s5657_s18 = scalar_lea.vmem %s8506_s17, 384  ;;  %s5800_s0 = smov [#allocation11]  }
  0x8f   : > { %8981 = vst [vmem:[#allocation30_spill] sm:$0xff] %v6112_v21  ;;  %8982 = vst [vmem:[#allocation31_spill] sm:$0xff] %v6115_v22  ;;  %vm6127_vm3 = vcmp.eq.s32.totalorder %v6089_v12, %v403_v19  ;;  %vm6132_vm4 = vcmp.eq.s32.totalorder %v6089_v12, %v399_v20  ;;  %vm6137_vm5 = vcmp.eq.s32.totalorder %v6092_v13, %v403_v19  ;;  %v9000_v32 = vmov 0  ;;  %p5658_p7 = scmp.ne.s32.totalorder %s8506_s17, %s5657_s18  ;;  %s5661_s5 = sshll.u32 %s5800_s0, 4  ;;  %s5662_s5 = int_to_ptr.vmem [resolvable:$false] %s5661_s5 }
  0x90   : > { %8983 = vst [vmem:[#allocation32_spill] sm:$0xff] %v6118_v23  ;;  %8984 = vst [vmem:[#allocation33_spill] sm:$0xff] %v6121_v24  ;;  %v8986_v26 = vsel %vm6127_vm3, 4294967295, %v8985_v26  ;;  %v8989_v27 = vsel %vm6132_vm4, 4294967295, %v8988_v27  ;;  %v8992_v28 = vsel %vm6137_vm5, 4294967295, %v8991_v28  ;;  %vm6142_vm6 = vcmp.eq.s32.totalorder %v6092_v13, %v399_v20  ;;  %5102 = vmatprep.subr.msk.mxu0 %vm6127_vm3, %v8603_v30  ;;  %s8511_s9 = scalar_lea.hbm %s9545_s11, %s5390_s23  ;;  %s5663_s22 = scalar_lea.vmem %s5662_s5, 768 }
  0x91   : > { %8987 = vst [vmem:[#allocation34_spill] sm:$0xff] %v8986_v26  ;;  %8990 = vst [vmem:[#allocation35_spill] sm:$0xff] %v8989_v27  ;;  %v8995_v29 = vsel %vm6142_vm6, 4294967295, %v8994_v29  ;;  %vm6150_vm7 = vcmp.eq.s32.totalorder %v6099_v16, %v403_v19  ;;  %vm6155_vm8 = vcmp.eq.s32.totalorder %v6099_v16, %v399_v20  ;;  %vm6160_vm9 = vcmp.eq.s32.totalorder %v6102_v17, %v403_v19  ;;  %p5659_p13 = pnand %p5658_p7, %p5947_p4  ;;  %p5664_p3 = scmp.lt.s32.totalorder %s8506_s17, %s5662_s5 }
  0x92   : > { %8993 = vst [vmem:[#allocation36_spill] sm:$0xff] %v8992_v28  ;;  %8996 = vst [vmem:[#allocation37_spill] sm:$0xff] %v8995_v29  ;;  %v8998_v31 = vsel %vm6150_vm7, 4294967295, %v8997_v31  ;;  %v9001_v32 = vsel %vm6155_vm8, 4294967295, %v9000_v32  ;;  %v9003_v33 = vmov 0  ;;  %vm6165_vm10 = vcmp.eq.s32.totalorder %v6102_v17, %v399_v20  ;;  %5103 = vmatpush1.msk.msra.mxu0 %vm6132_vm4, %v8603_v30  ;;  %p5665_p5 = scmp.lt.s32.totalorder %s5663_s22, %s5657_s18 }
  0x93   : > { %8999 = vst [vmem:[#allocation38_spill] sm:$0xff] %v8998_v31  ;;  %9002 = vst [vmem:[#allocation39_spill] sm:$0xff] %v9001_v32  ;;  %v9004_v33 = vsel %vm6160_vm9, 4294967295, %v9003_v33  ;;  %v9006_v34 = vmov 0  ;;  %vm6173_vm11 = vcmp.eq.s32.totalorder %v6112_v21, %v403_v19  ;;  %v9009_v35 = vmov 0  ;;  %5104 = vmatprep.subr.msk.mxu0 %vm6137_vm5, %v8603_v30  ;;  %p5660_p8 = pneg %p5659_p13 }
  0x94   : > { %9005 = vst [vmem:[#allocation40_spill] sm:$0xff] %v9004_v33  ;;  %v9007_v34 = vsel %vm6165_vm10, 4294967295, %v9006_v34  ;;  %v9010_v35 = vsel %vm6173_vm11, 4294967295, %v9009_v35  ;;  %vm6178_vm12 = vcmp.eq.s32.totalorder %v6112_v21, %v399_v20  ;;  %v9012_v36 = vmov 0  ;;  %5105 = vmatpush1.msk.msra.mxu0 %vm6142_vm6, %v8603_v30  ;;  %p5666_p9 = por %p5665_p5, %p5664_p3 }
  0x95   : > { %9008 = vst [vmem:[#allocation41_spill] sm:$0xff] %v9007_v34  ;;  %9011 = vst [vmem:[#allocation42_spill] sm:$0xff] %v9010_v35  ;;  %v9013_v36 = vsel %vm6178_vm12, 4294967295, %v9012_v36  ;;  %v5097_v37 = vsel %vm6127_vm3, 1.0, %v8595_v1  ;;  %vm6186_vm13 = vcmp.eq.s32.totalorder %v6115_v22, %v403_v19  ;;  %v9015_v38 = vmov 0  ;;  %5106 = vmatprep.subr.msk.mxu0 %vm6150_vm7, %v8603_v30 }
  0x96   : > { %9014 = vst [vmem:[#allocation43_spill] sm:$0xff] %v9013_v36  ;;  %v9016_v38 = vsel %vm6186_vm13, 4294967295, %v9015_v38  ;;  %v6193_v39 = vsub.f32 %v5097_v37, %v5097_v37  ;;  %v5096_v40 = vsel %vm6132_vm4, 1.0, %v8595_v1  ;;  %vm6199_vm14 = vcmp.eq.s32.totalorder %v6115_v22, %v399_v20  ;;  %5107 = vmatpush1.msk.msra.mxu0 %vm6155_vm8, %v8603_v30  ;;  %p5667_p10 = pnand %p5666_p9, %p5660_p8 }
  0x97   : > { %9017 = vst [vmem:[#allocation44_spill] sm:$0xff] %v9016_v38  ;;  %v9019_v41 = vmov 0  ;;  %v5091_v42 = vsel %vm6137_vm5, 1.0, %v8595_v1  ;;  %v6209_v43 = vsub.f32 %v5096_v40, %v5096_v40  ;;  %vm6214_vm15 = vcmp.eq.s32.totalorder %v6118_v23, %v403_v19  ;;  %5108 = vmatprep.subr.msk.mxu0 %vm6160_vm9, %v8603_v30 }
  0x98   : > { %9018 = vst [vmem:[#allocation45_spill] sm:$0xff] %v6193_v39  ;;  %v9020_v41 = vsel %vm6199_vm14, 4294967295, %v9019_v41  ;;  %v6211_v44 = vsub.f32 %v5091_v42, %v5091_v42  ;;  %v9024_v45 = vmov 0  ;;  %v5090_v46 = vsel %vm6142_vm6, 1.0, %v8595_v1  ;;  %5109 = vmatpush1.msk.msra.mxu0 %vm6165_vm10, %v8603_v30 }
  0x99   : > { %9021 = vst [vmem:[#allocation46_spill] sm:$0xff] %v9020_v41  ;;  %9022 = vst [vmem:[#allocation47_spill] sm:$0xff] %v6209_v43  ;;  %v9025_v45 = vsel %vm6214_vm15, 4294967295, %v9024_v45  ;;  %v6225_v47 = vand.u32 4294901760, %v6193_v39  ;;  %v6227_v48 = vsub.f32 %v5090_v46, %v5090_v46  ;;  %vm6230_vm1 = vcmp.eq.s32.totalorder %v6118_v23, %v399_v20  ;;  %5110 = vmatprep.subr.msk.mxu0 %vm6173_vm11, %v8603_v30 }
  0x9a   : > { %9023 = vst [vmem:[#allocation48_spill] sm:$0xff] %v6211_v44  ;;  %9026 = vst [vmem:[#allocation49_spill] sm:$0xff] %v9025_v45  ;;  %v9029_v49 = vmov 0  ;;  %v5085_v50 = vsel %vm6150_vm7, 1.0, %v8595_v1  ;;  %v6241_v51 = vand.u32 4294901760, %v6209_v43  ;;  %v6244_v52 = vand.u32 4294901760, %v6211_v44  ;;  %5111 = vmatpush1.msk.msra.mxu0 %vm6178_vm12, %v8603_v30 }
  0x9b   : > { %9027 = vst [vmem:[#allocation50_spill] sm:$0xff] %v6225_v47  ;;  %9028 = vst [vmem:[#allocation51_spill] sm:$0xff] %v6227_v48  ;;  %v9030_v49 = vsel %vm6230_vm1, 4294967295, %v9029_v49  ;;  %v6246_v53 = vsub.f32 %v5085_v50, %v5085_v50  ;;  %vm6249_vm2 = vcmp.eq.s32.totalorder %v6074_v2, %v403_v19  ;;  %v9035_v54 = vmov 0  ;;  %5112 = vmatprep.subr.msk.mxu0 %vm6186_vm13, %v8603_v30 }
  0x9c   : > { %9031 = vst [vmem:[#allocation52_spill] sm:$0xff] %v9030_v49  ;;  %9032 = vst [vmem:[#allocation53_spill] sm:$0xff] %v6241_v51  ;;  %v9036_v54 = vsel %vm6249_vm2, 4294967295, %v9035_v54  ;;  %v693_v55 = vsub.f32 %v6193_v39, %v6225_v47  ;;  %v6259_v56 = vand.u32 4294901760, %v6227_v48  ;;  %v5084_v57 = vsel %vm6155_vm8, 1.0, %v8595_v1  ;;  %5113 = vmatpush1.msk.msra.mxu0 %vm6199_vm14, %v8603_v30 }
  0x9d   : > { %9033 = vst [vmem:[#allocation54_spill] sm:$0xff] %v6244_v52  ;;  %9034 = vst [vmem:[#allocation55_spill] sm:$0xff] %v6246_v53  ;;  %vm6265_vm0 = vcmp.eq.s32.totalorder %v6074_v2, %v399_v20  ;;  %v9039_v58 = vmov 0  ;;  %v699_v59 = vsub.f32 %v6209_v43, %v6241_v51  ;;  %v705_v60 = vsub.f32 %v6211_v44, %v6244_v52  ;;  %5114 = vmatprep.subr.msk.mxu0 %vm6214_vm15, %v8603_v30 }
  0x9e   : > { %9037 = vst [vmem:[#allocation56_spill] sm:$0xff] %v9036_v54  ;;  %9038 = vst [vmem:[#allocation57_spill] sm:$0xff] %v6259_v56  ;;  %v9040_v58 = vsel %vm6265_vm0, 4294967295, %v9039_v58  ;;  %v6277_v61 = vand.u32 4294901760, %v6246_v53  ;;  %v6279_v62 = vsub.f32 %v5084_v57, %v5084_v57  ;;  %v6284_v63 = vand.u32 4294901760, %v693_v55  ;;  %5115 = vmatpush1.msk.msra.mxu0 %vm6230_vm1, %v8603_v30 }
  0x9f   : > { %9041 = vst [vmem:[#allocation58_spill] sm:$0xff] %v9040_v58  ;;  %v711_v0 = vsub.f32 %v6227_v48, %v6259_v56  ;;  %v5079_v3 = vsel %vm6160_vm9, 1.0, %v8595_v1  ;;  %v5078_v4 = vsel %vm6165_vm10, 1.0, %v8595_v1  ;;  %v6297_v7 = vand.u32 4294901760, %v699_v59  ;;  %5116 = vmatprep.subr.msk.mxu0 %vm6249_vm2, %v8603_v30 }
  0xa0   : > { %9042 = vst [vmem:[#allocation59_spill] sm:$0xff] %v6277_v61  ;;  %9043 = vst [vmem:[#allocation60_spill] sm:$0xff] %v6279_v62  ;;  %v6299_v8 = vand.u32 4294901760, %v705_v60  ;;  %v717_v9 = vsub.f32 %v6246_v53, %v6277_v61  ;;  %v6304_v11 = vand.u32 4294901760, %v6279_v62  ;;  %695 = vmatprep.subr.mxu1 %v6284_v63  ;;  %v6312_v20 = vsub.f32 %v5079_v3, %v5079_v3 }
  0xa1   : > { %9044 = vst [vmem:[#allocation61_spill] sm:$0xff] %v6284_v63  ;;  %9045 = vst [vmem:[#allocation62_spill] sm:$0xff] %v6297_v7  ;;  %v6310_v19 = vand.u32 4294901760, %v711_v0  ;;  %v6314_v37 = vsub.f32 %v5078_v4, %v5078_v4  ;;  %v655_v40 = vsub.f32 %v6105_v18, %v6121_v24  ;;  %701 = vmatpush1.msra.mxu1 %v6297_v7  ;;  %v5073_v50 = vsel %vm6173_vm11, 1.0, %v8595_v1 }
  0xa2   : > { %9046 = vst [vmem:[#allocation63_spill] sm:$0xff] %v6299_v8  ;;  %9047 = vst [vmem:[#allocation64_spill] sm:$0xff] %v6304_v11  ;;  %v6322_v42 = vand.u32 4294901760, %v717_v9  ;;  %v723_v46 = vsub.f32 %v6279_v62, %v6304_v11  ;;  %v5072_v55 = vsel %vm6178_vm12, 1.0, %v8595_v1  ;;  %707 = vmatprep.subr.mxu1 %v6299_v8  ;;  %v6337_v57 = vand.u32 4294901760, %v6312_v20  ;;  %5117 = vmatpush1.msk.msra.mxu0 %vm6265_vm0, %v8603_v30 }
  0xa3   : > { %9048 = vst [vmem:[#allocation65_spill] sm:$0xff] %v6310_v19  ;;  %9049 = vst [vmem:[#allocation66_spill] sm:$0xff] %v6312_v20  ;;  %v6340_v59 = vand.u32 4294901760, %v6314_v37  ;;  %v6342_v60 = vand.u32 4294901760, %v655_v40  ;;  %v6344_v0 = vsub.f32 %v5073_v50, %v5073_v50  ;;  %713 = vmatpush1.msra.mxu1 %v6310_v19  ;;  %v6352_v4 = vsub.f32 %v5072_v55, %v5072_v55 }
  0xa4   : > { %9050 = vst [vmem:[#allocation67_spill] sm:$0xff] %v6314_v37  ;;  %9051 = vst [vmem:[#allocation68_spill] sm:$0xff] %v6322_v42  ;;  %v6350_v3 = vand.u32 4294901760, %v723_v46  ;;  %v5067_v9 = vsel %vm6186_vm13, 1.0, %v8595_v1  ;;  %v5066_v40 = vsel %vm6199_vm14, 1.0, %v8595_v1  ;;  %719 = vmatprep.subr.mxu1 %v6322_v42  ;;  %v729_v46 = vsub.f32 %v6312_v20, %v6337_v57  ;;  %851 = vmatprep.subr.mxu0 %v6193_v39 }
  0xa5   : > { %9052 = vst [vmem:[#allocation69_spill] sm:$0xff] %v6337_v57  ;;  %9053 = vst [vmem:[#allocation70_spill] sm:$0xff] %v6340_v59  ;;  %v735_v50 = vsub.f32 %v6314_v37, %v6340_v59  ;;  %v6369_v55 = vand.u32 4294901760, %v6344_v0  ;;  %v6371_v5 = vsub.f32 %v5067_v9, %v5067_v9  ;;  %v6378_v1 = vand.u32 4294901760, %v6352_v4  ;;  %657 = vmatmul.mubr.f32.vlgmr.msra.gmra.mxu0 %v6342_v60 }
  0xa6   : > { %9054 = vst [vmem:[#allocation71_spill] sm:$0xff] %v6342_v60  ;;  %9055 = vst [vmem:[#allocation72_spill] sm:$0xff] %v6344_v0  ;;  %725 = vmatpush1.msra.mxu1 %v6350_v3  ;;  %v6380_v6 = vsub.f32 %v5066_v40, %v5066_v40  ;;  %v9062_v42 = vmov 0.0   ;;  %v6388_v8 = vand.u32 4294901760, %v729_v46  ;;  %854 = vmatpush1.msra.mxu0 %v6209_v43  ;;  %v9171_v33 = vmov 0 }
  0xa7   : > { %9056 = vst [vmem:[#allocation73_spill] sm:$0xff] %v6350_v3  ;;  %9057 = vst [vmem:[#allocation74_spill] sm:$0xff] %v6352_v4  ;;  %v5061_v19 = vsel %vm6214_vm15, 1.0, %v9062_v42  ;;  %v5060_v9 = vsel %vm6230_vm1, 1.0, %v9062_v42  ;;  %v6390_v3 = vand.u32 4294901760, %v735_v50  ;;  %v741_v40 = vsub.f32 %v6344_v0, %v6369_v55  ;;  %662 = vmatprep.mubr.f32.mxu0 %v9062_v42  ;;  %857 = vmatprep.subr.mxu0 %v6211_v44 }
  0xa8   : > { %9058 = vst [vmem:[#allocation75_spill] sm:$0xff] %v6369_v55  ;;  %9059 = vst [vmem:[#allocation76_spill] sm:$0xff] %v6371_v5  ;;  %v6397_v30 = vand.u32 4294901760, %v6371_v5  ;;  %v747_v7 = vsub.f32 %v6352_v4, %v6378_v1  ;;  %v6403_v46 = vand.u32 4294901760, %v6380_v6  ;;  %v6405_v50 = vsub.f32 %v5061_v19, %v5061_v19  ;;  %731 = vmatprep.subr.mxu1 %v6388_v8 }
  0xa9   : > { %9060 = vst [vmem:[#allocation77_spill] sm:$0xff] %v6378_v1  ;;  %9061 = vst [vmem:[#allocation78_spill] sm:$0xff] %v6380_v6  ;;  %v6407_v63 = vsub.f32 %v5060_v9, %v5060_v9  ;;  %v6411_v39 = vand.u32 4294901760, %v741_v40  ;;  %v5055_v60 = vsel %vm6249_vm2, 1.0, %v9062_v42  ;;  %v5054_v19 = vsel %vm6265_vm0, 1.0, %v9062_v42  ;;  %737 = vmatpush1.msra.mxu1 %v6390_v3  ;;  %860 = vmatpush1.msra.mxu0 %v6227_v48 }
  0xaa   : > { %9063 = vst [vmem:[#allocation79_spill] sm:$0xff] %v6388_v8  ;;  %9064 = vst [vmem:[#allocation80_spill] sm:$0xff] %v6390_v3  ;;  %v753_v43 = vsub.f32 %v6371_v5, %v6397_v30  ;;  %v6423_v9 = vand.u32 4294901760, %v747_v7  ;;  %v759_v40 = vsub.f32 %v6380_v6, %v6403_v46  ;;  %v6429_v44 = vand.u32 4294901760, %v6405_v50  ;;  %863 = vmatprep.subr.mxu0 %v6246_v53 }
  0xab   : > { %9065 = vst [vmem:[#allocation81_spill] sm:$0xff] %v6397_v30  ;;  %9066 = vst [vmem:[#allocation82_spill] sm:$0xff] %v6403_v46  ;;  %v6432_v8 = vand.u32 4294901760, %v6407_v63  ;;  %743 = vmatprep.subr.mxu1 %v6411_v39  ;;  %v6438_v3 = vsub.f32 %v5055_v60, %v5055_v60  ;;  %v6440_v7 = vsub.f32 %v5054_v19, %v5054_v19  ;;  %v6443_v48 = vand.u32 4294901760, %v6124_v25 }
  0xac   : > { %9067 = vst [vmem:[#allocation83_spill] sm:$0xff] %v6405_v50  ;;  %9068 = vst [vmem:[#allocation84_spill] sm:$0xff] %v6407_v63  ;;  %v6435_v23 = vand.u32 4294901760, %v753_v43  ;;  %749 = vmatpush1.msra.mxu1 %v6423_v9  ;;  %v6446_v22 = vand.u32 4294901760, %v759_v40  ;;  %v765_v21 = vsub.f32 %v6405_v50, %v6429_v44  ;;  %866 = vmatpush1.msra.mxu0 %v6279_v62 }
  0xad   : > { %9069 = vst [vmem:[#allocation85_spill] sm:$0xff] %v6411_v39  ;;  %9070 = vst [vmem:[#allocation86_spill] sm:$0xff] %v6423_v9  ;;  %v771_v43 = vsub.f32 %v6407_v63, %v6432_v8  ;;  %869 = vmatprep.subr.mxu0 %v6312_v20  ;;  %v6456_v60 = vand.u32 4294901760, %v6438_v3  ;;  %v6459_v19 = vand.u32 4294901760, %v6440_v7  ;;  %v666_v40 = vsub.f32 %v6124_v25, %v6443_v48 }
  0xae   : > { %9071 = vst [vmem:[#allocation87_spill] sm:$0xff] %v6429_v44  ;;  %9072 = vst [vmem:[#allocation88_spill] sm:$0xff] %v6432_v8  ;;  %755 = vmatprep.subr.mxu1 %v6435_v23  ;;  %v6464_v53 = vand.u32 4294901760, %v765_v21  ;;  %872 = vmatpush1.msra.mxu0 %v6314_v37 }
  0xaf   : > { %9073 = vst [vmem:[#allocation89_spill] sm:$0xff] %v6435_v23  ;;  %9074 = vst [vmem:[#allocation90_spill] sm:$0xff] %v6438_v3  ;;  %761 = vmatpush1.msra.mxu1 %v6446_v22  ;;  %v6466_v62 = vand.u32 4294901760, %v771_v43  ;;  %v777_v20 = vsub.f32 %v6438_v3, %v6456_v60  ;;  %v783_v23 = vsub.f32 %v6440_v7, %v6459_v19  ;;  %875 = vmatprep.subr.mxu0 %v6344_v0  ;;  %v9142_v0 = vmov 0 }
  0xb0   : > { %9075 = vst [vmem:[#allocation91_spill] sm:$0xff] %v6440_v7  ;;  %9076 = vst [vmem:[#allocation92_spill] sm:$0xff] %v6443_v48  ;;  %v6474_v9 = vand.u32 4294901760, %v666_v40  ;;  %767 = vmatprep.subr.mxu1 %v6464_v53  ;;  %878 = vmatpush1.msra.mxu0 %v6352_v4  ;;  %v9084_v40 = vmov 1.0   ;;  %v9139_v4 = vmov 0 }
  0xb1   : > { %9077 = vst [vmem:[#allocation93_spill] sm:$0xff] %v6446_v22  ;;  %9078 = vst [vmem:[#allocation94_spill] sm:$0xff] %v6456_v60  ;;  %773 = vmatpush1.msra.mxu1 %v6466_v62  ;;  %v6479_v21 = vand.u32 4294901760, %v777_v20  ;;  %v6481_v43 = vand.u32 4294901760, %v783_v23  ;;  %881 = vmatprep.subr.mxu0 %v6371_v5  ;;  %v6514_v23 = vsub.s32 3, %v6074_v2  ;;  %v6525_v20 = vsub.s32 5, %v6074_v2 }
  0xb2   : > { %9079 = vst [vmem:[#allocation95_spill] sm:$0xff] %v6459_v19  ;;  %9080 = vst [vmem:[#allocation96_spill] sm:$0xff] %v6464_v53  ;;  %884 = vmatpush1.msra.mxu0 %v6380_v6  ;;  %v9132_v6 = vmov 0  ;;  %v9135_v5 = vld [vmem:[#allocation31_spill] sm:$0xff]  ;;  %v9153_v22 = vmov 0 }
  0xb3   : > { %9081 = vst [vmem:[#allocation97_spill] sm:$0xff] %v6466_v62  ;;  %9082 = vst [vmem:[#allocation98_spill] sm:$0xff] %v6479_v21  ;;  %779 = vmatprep.subr.mxu1 %v6479_v21  ;;  %668 = vmatmul.mubr.f32.gmra.mxu0 %v6474_v9  ;;  %v9146_v21 = vmov 0 }
  0xb4   : > { %9083 = vst [vmem:[#allocation99_spill] sm:$0xff] %v6481_v43  ;;  %785 = vmatpush1.msra.mxu1 %v6481_v43  ;;  %887 = vmatprep.subr.mxu0 %v6405_v50  ;;  %9085 = vst [vmem:[#allocation100_spill] sm:$0xff] %v6514_v23  ;;  %v9129_v50 = vmov 0  ;;  %v9145_v43 = vld [vmem:[#allocation32_spill] sm:$0xff] }
  0xb5   : > { %820 = vmatmul.mubr.f32.vlgmr.msra.gmra.mxu1 %v6085_v10  ;;  %5118 = vmatprep.subr.msk.mxu1 %vm6127_vm3, %v9084_v40  ;;  %9086 = vst [vmem:[#allocation101_spill] sm:$0xff] %v6525_v20 }
  0xb6   : > { %5119 = vmatpush1.msk.msra.mxu1 %vm6132_vm4, %v9084_v40  ;;  %890 = vmatpush1.msra.mxu0 %v6407_v63  ;;  %v9125_v63 = vmov 0 }
  0xb7   : > { %5120 = vmatprep.subr.msk.mxu1 %vm6137_vm5, %v9084_v40  ;;  %893 = vmatprep.subr.mxu0 %v6438_v3  ;;  %v6541_v3 = vrot.slane %v6096_v15, %v6514_v23 }
  0xb8   : > { %5121 = vmatpush1.msk.msra.mxu1 %vm6142_vm6, %v9084_v40  ;;  %896 = vmatpush1.msra.mxu0 %v6440_v7  ;;  %v6532_v7 = vsub.s32 2, %v6074_v2 }
  0xb9   : > { %5122 = vmatprep.subr.msk.mxu1 %vm6150_vm7, %v9084_v40  ;;  %929 = vmatprep.mubr.f32.mxu0 %v9062_v42 }
  0xba   : > { %5123 = vmatpush1.msk.msra.mxu1 %vm6155_vm8, %v9084_v40  ;;  %932 = vmatmul.mubr.f32.vlgmr.msra.gmra.mxu0 %v6105_v18  ;;  %9087 = vst [vmem:[#allocation102_spill] sm:$0xff] %v6532_v7  ;;  %v6561_v23 = vrot.slane %v6096_v15, %v6532_v7 }
  0xbb   : > { %5124 = vmatprep.subr.msk.mxu1 %vm6160_vm9, %v9084_v40  ;;  %1064 = vmatprep.subr.mxu0 %v6225_v47  ;;  %v6535_v47 = vsub.s32 4, %v6074_v2 }
  0xbc   : > { %5125 = vmatpush1.msk.msra.mxu1 %vm6165_vm10, %v9084_v40  ;;  %825 = vmatprep.mubr.f32.mxu1 %v9062_v42 }
  0xbd   : > { %5126 = vmatprep.subr.msk.mxu1 %vm6173_vm11, %v9084_v40  ;;  %1068 = vmatpush1.msra.mxu0 %v6241_v51  ;;  %9088 = vst [vmem:[#allocation103_spill] sm:$0xff] %v6535_v47  ;;  %v6553_v51 = vrot.slane %v6096_v15, %v6525_v20  ;;  %v9091_v20 = vmov 0 }
  0xbe   : > { %827 = vmatmul.mubr.f32.gmra.mxu1 %v6094_v14  ;;  %1072 = vmatprep.subr.mxu0 %v6244_v52  ;;  %v6565_v52 = vrot.slane %v6096_v15, %v6535_v47  ;;  %v9094_v15 = vmov 0  ;;  %v9097_v47 = vmov 0 }
  0xbf   : > { %5127 = vmatpush1.msk.msra.mxu1 %vm6178_vm12, %v9084_v40  ;;  %937 = vmatprep.mubr.f32.mxu0 %v9062_v42  ;;  %9089 = vst [vmem:[#allocation104_spill] sm:$0xff] %v6553_v51  ;;  %vm6640_vm12 = vcmp.eq.s32.totalorder %v6099_v16, %v6553_v51 }
  0xc0   : > { %5128 = vmatprep.subr.msk.mxu1 %vm6186_vm13, %v9084_v40  ;;  %1076 = vmatpush1.msra.mxu0 %v6259_v56  ;;  %9090 = vst [vmem:[#allocation105_spill] sm:$0xff] %v6565_v52  ;;  %vm6573_vm13 = vcmp.eq.s32.totalorder %v6089_v12, %v6541_v3  ;;  %v9118_v56 = vmov 0 }
  0xc1   : > { %940 = vmatmul.mubr.f32.gmra.mxu0 %v6124_v25  ;;  %5129 = vmatpush1.msk.msra.mxu1 %vm6199_vm14, %v9084_v40  ;;  %v9092_v20 = vsel %vm6573_vm13, 4294967295, %v9091_v20  ;;  %v5099_v7 = vsel %vm6573_vm13, 1.0, %v9062_v42  ;;  %vm6626_vm14 = vcmp.eq.s32.totalorder %v6092_v13, %v6565_v52 }
  0xc2   : > { %1080 = vmatprep.subr.mxu0 %v6277_v61  ;;  %5130 = vmatprep.subr.msk.mxu1 %vm6214_vm15, %v9084_v40  ;;  %9093 = vst [vmem:[#allocation106_spill] sm:$0xff] %v9092_v20  ;;  %vm6587_vm15 = vcmp.eq.s32.totalorder %v6089_v12, %v6553_v51  ;;  %v9115_v61 = vmov 0 }
  0xc3   : > { %1084 = vmatpush1.msra.mxu0 %v6304_v11  ;;  %5131 = vmatpush1.msk.msra.mxu1 %vm6230_vm1, %v9084_v40  ;;  %v9095_v15 = vsel %vm6587_vm15, 4294967295, %v9094_v15  ;;  %vm6597_vm1 = vcmp.eq.s32.totalorder %v6089_v12, %v6561_v23  ;;  %vm6614_vm15 = vcmp.eq.s32.totalorder %v6092_v13, %v6541_v3  ;;  %v9106_v11 = vmov 0 }
  0xc4   : > { %1088 = vmatprep.subr.mxu0 %v6337_v57  ;;  %5132 = vmatprep.subr.msk.mxu1 %vm6249_vm2, %v9084_v40  ;;  %9096 = vst [vmem:[#allocation107_spill] sm:$0xff] %v9095_v15  ;;  %v9098_v47 = vsel %vm6597_vm1, 4294967295, %v9097_v47  ;;  %vm6606_vm2 = vcmp.eq.s32.totalorder %v6089_v12, %v6565_v52  ;;  %v9100_v57 = vmov 0  ;;  %v9109_v12 = vmov 0 }
  0xc5   : > { %1092 = vmatpush1.msra.mxu0 %v6340_v59  ;;  %5133 = vmatpush1.msk.msra.mxu1 %vm6265_vm0, %v9084_v40  ;;  %9099 = vst [vmem:[#allocation108_spill] sm:$0xff] %v9098_v47  ;;  %v9101_v57 = vsel %vm6606_vm2, 4294967295, %v9100_v57  ;;  %v9103_v59 = vmov 0  ;;  %vm6620_vm0 = vcmp.eq.s32.totalorder %v6092_v13, %v6553_v51  ;;  %v9110_v12 = vsel %vm6626_vm14, 4294967295, %v9109_v12 }
  0xc6   : > { %9102 = vst [vmem:[#allocation109_spill] sm:$0xff] %v9101_v57  ;;  %1026 = vmatprep.mubr.f32.mxu1 %v9062_v42  ;;  %1096 = vmatprep.subr.mxu0 %v6369_v55  ;;  %v9104_v59 = vsel %vm6614_vm15, 4294967295, %v9103_v59  ;;  %v9107_v11 = vsel %vm6620_vm0, 4294967295, %v9106_v11  ;;  %9111 = vst [vmem:[#allocation112_spill] sm:$0xff] %v9110_v12  ;;  %vm6634_vm2 = vcmp.eq.s32.totalorder %v6092_v13, %v6561_v23  ;;  %v9112_v55 = vmov 0 }
  0xc7   : > { %9105 = vst [vmem:[#allocation110_spill] sm:$0xff] %v9104_v59  ;;  %9108 = vst [vmem:[#allocation111_spill] sm:$0xff] %v9107_v11  ;;  %1030 = vmatmul.mubr.f32.vlgmr.msra.gmra.mxu1 %v6121_v24  ;;  %1100 = vmatpush1.msra.mxu0 %v6378_v1  ;;  %v9113_v55 = vsel %vm6634_vm2, 4294967295, %v9112_v55  ;;  %v9116_v61 = vsel %vm6640_vm12, 4294967295, %v9115_v61  ;;  %vm6646_vm0 = vcmp.eq.s32.totalorder %v6099_v16, %v6565_v52  ;;  %v9122_v1 = vmov 0 }
  0xc8   : > { %9114 = vst [vmem:[#allocation113_spill] sm:$0xff] %v9113_v55  ;;  %9117 = vst [vmem:[#allocation114_spill] sm:$0xff] %v9116_v61  ;;  %v9119_v56 = vsel %vm6646_vm0, 4294967295, %v9118_v56  ;;  %5134 = vmatprep.subr.msk.mxu1 %vm6127_vm3, %v9084_v40  ;;  %1104 = vmatprep.subr.mxu0 %v6397_v30  ;;  %v6654_v13 = vsub.f32 %v5099_v7, %v5099_v7  ;;  %vm6658_vm14 = vcmp.eq.s32.totalorder %v6102_v17, %v6553_v51  ;;  %v9128_v30 = vld [vmem:[#allocation30_spill] sm:$0xff] }
  0xc9   : > { %9120 = vst [vmem:[#allocation115_spill] sm:$0xff] %v9119_v56  ;;  %v9123_v1 = vsel %vm6658_vm14, 4294967295, %v9122_v1  ;;  %vm6664_vm12 = vcmp.eq.s32.totalorder %v6102_v17, %v6565_v52  ;;  %5135 = vmatpush1.msk.msra.mxu1 %vm6132_vm4, %v9084_v40  ;;  %1108 = vmatpush1.msra.mxu0 %v6403_v46  ;;  %v5098_v7 = vsel %vm6597_vm1, 1.0, %v9062_v42  ;;  %vm6677_vm3 = vcmp.eq.s32.totalorder %v9128_v30, %v6553_v51 }
  0xca   : > { %9121 = vst [vmem:[#allocation116_spill] sm:$0xff] %v6654_v13  ;;  %9124 = vst [vmem:[#allocation117_spill] sm:$0xff] %v9123_v1  ;;  %v9126_v63 = vsel %vm6664_vm12, 4294967295, %v9125_v63  ;;  %v9130_v50 = vsel %vm6677_vm3, 4294967295, %v9129_v50  ;;  %vm6683_vm14 = vcmp.eq.s32.totalorder %v9128_v30, %v6565_v52  ;;  %vm6689_vm4 = vcmp.eq.s32.totalorder %v9135_v5, %v6553_v51  ;;  %5136 = vmatprep.subr.msk.mxu1 %vm6137_vm5, %v9084_v40 }
  0xcb   : > { %9127 = vst [vmem:[#allocation118_spill] sm:$0xff] %v9126_v63  ;;  %9131 = vst [vmem:[#allocation30_spill] sm:$0xff] %v9130_v50  ;;  %v9133_v6 = vsel %vm6683_vm14, 4294967295, %v9132_v6  ;;  %v9136_v46 = vmov 0  ;;  %1035 = vmatprep.mubr.f32.mxu1 %v9062_v42  ;;  %vm6699_vm3 = vcmp.eq.s32.totalorder %v9135_v5, %v6565_v52  ;;  %1112 = vmatprep.subr.mxu0 %v6429_v44  ;;  %v5093_v37 = vsel %vm6614_vm15, 1.0, %v9062_v42 }
  0xcc   : > { %9134 = vst [vmem:[#allocation119_spill] sm:$0xff] %v9133_v6  ;;  %v9137_v46 = vsel %vm6689_vm4, 4294967295, %v9136_v46  ;;  %v9140_v4 = vsel %vm6699_vm3, 4294967295, %v9139_v4  ;;  %5137 = vmatpush1.msk.msra.mxu1 %vm6142_vm6, %v9084_v40  ;;  %vm6709_vm4 = vcmp.eq.s32.totalorder %v6099_v16, %v6541_v3  ;;  %vm6718_vm5 = vcmp.eq.s32.totalorder %v9145_v43, %v6553_v51  ;;  %1116 = vmatpush1.msra.mxu0 %v6432_v8 }
  0xcd   : > { %9138 = vst [vmem:[#allocation31_spill] sm:$0xff] %v9137_v46  ;;  %9141 = vst [vmem:[#allocation120_spill] sm:$0xff] %v9140_v4  ;;  %v9143_v0 = vsel %vm6709_vm4, 4294967295, %v9142_v0  ;;  %v9147_v21 = vsel %vm6718_vm5, 4294967295, %v9146_v21  ;;  %1039 = vmatmul.mubr.f32.gmra.mxu1 %v6443_v48  ;;  %vm6726_vm6 = vcmp.eq.s32.totalorder %v6099_v16, %v6561_v23  ;;  %v9149_v44 = vmov 0  ;;  %5138 = vmatprep.subr.msk.mxu1 %vm6150_vm7, %v9084_v40 }
  0xce   : > { %9144 = vst [vmem:[#allocation121_spill] sm:$0xff] %v9143_v0  ;;  %9148 = vst [vmem:[#allocation32_spill] sm:$0xff] %v9147_v21  ;;  %v9150_v44 = vsel %vm6726_vm6, 4294967295, %v9149_v44  ;;  %v6730_v62 = vsub.f32 %v5098_v7, %v5098_v7  ;;  %v5092_v53 = vsel %vm6634_vm2, 1.0, %v9062_v42  ;;  %vm6737_vm3 = vcmp.eq.s32.totalorder %v9145_v43, %v6565_v52  ;;  %1120 = vmatprep.subr.mxu0 %v6456_v60 }
  0xcf   : > { %9151 = vst [vmem:[#allocation122_spill] sm:$0xff] %v9150_v44  ;;  %v9154_v22 = vsel %vm6737_vm3, 4294967295, %v9153_v22  ;;  %vm6747_vm5 = vcmp.eq.s32.totalorder %v6102_v17, %v6541_v3  ;;  %v9156_v16 = vmov 0  ;;  %v6752_v7 = vand.u32 4294901760, %v6654_v13  ;;  %5139 = vmatpush1.msk.msra.mxu1 %vm6155_vm8, %v9084_v40  ;;  %1124 = vmatpush1.msra.mxu0 %v6459_v19 }
  0xd0   : > { %9152 = vst [vmem:[#allocation123_spill] sm:$0xff] %v6730_v62  ;;  %9155 = vst [vmem:[#allocation124_spill] sm:$0xff] %v9154_v22  ;;  %v9157_v16 = vsel %vm6747_vm5, 4294967295, %v9156_v16  ;;  %vm6760_vm7 = vcmp.eq.s32.totalorder %v6102_v17, %v6561_v23  ;;  %v9160_v8 = vmov 0  ;;  %v6764_v60 = vsub.f32 %v5093_v37, %v5093_v37  ;;  %1157 = vmatprep.mubr.f32.mxu0 %v9062_v42  ;;  %5140 = vmatprep.subr.msk.mxu1 %vm6160_vm9, %v9084_v40 }
  0xd1   : > { %9158 = vst [vmem:[#allocation125_spill] sm:$0xff] %v9157_v16  ;;  %9159 = vst [vmem:[#allocation126_spill] sm:$0xff] %v6752_v7  ;;  %v9161_v8 = vsel %vm6760_vm7, 4294967295, %v9160_v8  ;;  %v5087_v39 = vsel %vm6709_vm4, 1.0, %v9062_v42  ;;  %vm6775_vm8 = vcmp.eq.s32.totalorder %v9128_v30, %v6541_v3  ;;  %v9164_v19 = vmov 0  ;;  %1159 = vmatmul.mubr.f32.vlgmr.msra.gmra.mxu0 %v6085_v10  ;;  %5141 = vmatpush1.msk.msra.mxu1 %vm6165_vm10, %v9084_v40 }
  0xd2   : > { %9162 = vst [vmem:[#allocation127_spill] sm:$0xff] %v9161_v8  ;;  %9163 = vst [vmem:[#allocation128_spill] sm:$0xff] %v6764_v60  ;;  %v9165_v19 = vsel %vm6775_vm8, 4294967295, %v9164_v19  ;;  %vm6781_vm3 = vcmp.eq.s32.totalorder %v9128_v30, %v6561_v23  ;;  %v9167_v17 = vmov 0  ;;  %v6785_v37 = vsub.f32 %v5092_v53, %v5092_v53  ;;  %5150 = vmatprep.subr.msk.mxu0 %vm6573_vm13, %v9084_v40  ;;  %5142 = vmatprep.subr.msk.mxu1 %vm6173_vm11, %v9084_v40 }
  0xd3   : > { %9166 = vst [vmem:[#allocation129_spill] sm:$0xff] %v9165_v19  ;;  %v9168_v17 = vsel %vm6781_vm3, 4294967295, %v9167_v17  ;;  %v5086_v32 = vsel %vm6726_vm6, 1.0, %v9062_v42  ;;  %vm6796_vm9 = vcmp.eq.s32.totalorder %v9135_v5, %v6541_v3  ;;  %v6801_v30 = vand.u32 4294901760, %v6730_v62  ;;  %5151 = vmatpush1.msk.msra.mxu0 %vm6597_vm1, %v9084_v40  ;;  %1164 = vmatprep.mubr.f32.mxu0 %v9062_v42 }
  0xd4   : > { %9169 = vst [vmem:[#allocation130_spill] sm:$0xff] %v9168_v17  ;;  %9170 = vst [vmem:[#allocation131_spill] sm:$0xff] %v6785_v37  ;;  %v9172_v33 = vsel %vm6796_vm9, 4294967295, %v9171_v33  ;;  %vm6805_vm14 = vcmp.eq.s32.totalorder %v9135_v5, %v6561_v23  ;;  %v9175_v53 = vmov 0  ;;  %v5081_v34 = vsel %vm6747_vm5, 1.0, %v9062_v42  ;;  %5152 = vmatprep.subr.msk.mxu0 %vm6614_vm15, %v9084_v40  ;;  %1252 = vmatprep.mubr.f32.mxu1 %v9062_v42 }
  0xd5   : > { %9173 = vst [vmem:[#allocation132_spill] sm:$0xff] %v9172_v33  ;;  %9174 = vst [vmem:[#allocation133_spill] sm:$0xff] %v6801_v30  ;;  %v9176_v53 = vsel %vm6805_vm14, 4294967295, %v9175_v53  ;;  %v1389_v31 = vsub.f32 %v6654_v13, %v6752_v7  ;;  %vm6822_vm10 = vcmp.eq.s32.totalorder %v9145_v43, %v6541_v3  ;;  %v9178_v5 = vmov 0  ;;  %5153 = vmatpush1.msk.msra.mxu0 %vm6634_vm2, %v9084_v40 }
  0xd6   : > { %9177 = vst [vmem:[#allocation134_spill] sm:$0xff] %v9176_v53  ;;  %v9179_v5 = vsel %vm6822_vm10, 4294967295, %v9178_v5  ;;  %v6826_v29 = vsub.f32 %v5087_v39, %v5087_v39  ;;  %v5080_v28 = vsel %vm6760_vm7, 1.0, %v9062_v42  ;;  %vm9182_vm11 = vnez %v9013_v36  ;;  %1166 = vmatmul.mubr.f32.gmra.mxu0 %v6094_v14  ;;  %5154 = vmatprep.subr.msk.mxu0 %vm6709_vm4, %v9084_v40  ;;  %v9287_v53 = vld [vmem:[#allocation32_spill] sm:$0xff] }
  0xd7   : > { %9180 = vst [vmem:[#allocation135_spill] sm:$0xff] %v9179_v5  ;;  %5143 = vmatpush1.msk.msra.mxu1 %vm9182_vm11, %v9084_v40  ;;  %v6838_v35 = vand.u32 4294901760, %v6764_v60  ;;  %vm6842_vm12 = vcmp.eq.s32.totalorder %v9145_v43, %v6561_v23  ;;  %v9184_v39 = vmov 0  ;;  %v6846_v27 = vsub.f32 %v5086_v32, %v5086_v32  ;;  %5155 = vmatpush1.msk.msra.mxu0 %vm6726_vm6, %v9084_v40 }
  0xd8   : > { %9181 = vst [vmem:[#allocation136_spill] sm:$0xff] %v6826_v29  ;;  %v9185_v39 = vsel %vm6842_vm12, 4294967295, %v9184_v39  ;;  %v5075_v26 = vsel %vm6775_vm8, 1.0, %v9062_v42  ;;  %v6856_v36 = vand.u32 4294901760, %v6785_v37  ;;  %vm6860_vm11 = vcmp.eq.s32.totalorder %v6074_v2, %v6541_v3  ;;  %5156 = vmatprep.subr.msk.mxu0 %vm6747_vm5, %v9084_v40  ;;  %1347 = vmatprep.mubr.f32.mxu0 %v9062_v42 }
  0xd9   : > { %9183 = vst [vmem:[#allocation137_spill] sm:$0xff] %v6838_v35  ;;  %9186 = vst [vmem:[#allocation138_spill] sm:$0xff] %v9185_v39  ;;  %v9189_v43 = vmov 0  ;;  %v6864_v32 = vsub.f32 %v5081_v34, %v5081_v34  ;;  %v5074_v22 = vsel %vm6781_vm3, 1.0, %v9062_v42  ;;  %vm9193_vm0 = vnez %v9016_v38  ;;  %5157 = vmatpush1.msk.msra.mxu0 %vm6760_vm7, %v9084_v40 }
  0xda   : > { %9187 = vst [vmem:[#allocation139_spill] sm:$0xff] %v6846_v27  ;;  %9188 = vst [vmem:[#allocation140_spill] sm:$0xff] %v6856_v36  ;;  %v9190_v43 = vsel %vm6860_vm11, 4294967295, %v9189_v43  ;;  %5144 = vmatprep.subr.msk.mxu1 %vm9193_vm0, %v9084_v40  ;;  %v1395_v3 = vsub.f32 %v6730_v62, %v6801_v30  ;;  %vm6879_vm15 = vcmp.eq.s32.totalorder %v6074_v2, %v6561_v23  ;;  %v9194_v34 = vmov 0  ;;  %5158 = vmatprep.subr.msk.mxu0 %vm6775_vm8, %v9084_v40 }
  0xdb   : > { %9191 = vst [vmem:[#allocation141_spill] sm:$0xff] %v9190_v43  ;;  %9192 = vst [vmem:[#allocation142_spill] sm:$0xff] %v6864_v32  ;;  %v9195_v34 = vsel %vm6879_vm15, 4294967295, %v9194_v34  ;;  %v6883_v21 = vsub.f32 %v5080_v28, %v5080_v28  ;;  %v5069_v38 = vsel %vm6796_vm9, 1.0, %v9062_v42  ;;  %vm9198_vm0 = vnez %v9020_v41  ;;  %5159 = vmatpush1.msk.msra.mxu0 %vm6781_vm3, %v9084_v40 }
  0xdc   : > { %9196 = vst [vmem:[#allocation143_spill] sm:$0xff] %v9195_v34  ;;  %5145 = vmatpush1.msk.msra.mxu1 %vm9198_vm0, %v9084_v40  ;;  %v6892_v4 = vand.u32 4294901760, %v1389_v31  ;;  %v6895_v46 = vand.u32 4294901760, %v6826_v29  ;;  %v6897_v23 = vsub.f32 %v5075_v26, %v5075_v26  ;;  %v5068_v28 = vsel %vm6805_vm14, 1.0, %v9062_v42  ;;  %5160 = vmatprep.subr.msk.mxu0 %vm6796_vm9, %v9084_v40 }
  0xdd   : > { %9197 = vst [vmem:[#allocation144_spill] sm:$0xff] %v6883_v21  ;;  %vm9202_vm2 = vnez %v9025_v45  ;;  %v1401_v31 = vsub.f32 %v6764_v60, %v6838_v35  ;;  %v6911_v41 = vand.u32 4294901760, %v6846_v27  ;;  %v6913_v26 = vsub.f32 %v5074_v22, %v5074_v22  ;;  %5161 = vmatpush1.msk.msra.mxu0 %vm6805_vm14, %v9084_v40 }
  0xde   : > { %9199 = vst [vmem:[#allocation145_spill] sm:$0xff] %v6892_v4  ;;  %9200 = vst [vmem:[#allocation146_spill] sm:$0xff] %v6895_v46  ;;  %5146 = vmatprep.subr.msk.mxu1 %vm9202_vm2, %v9084_v40  ;;  %v5063_v52 = vsel %vm6822_vm10, 1.0, %v9062_v42  ;;  %vm9205_vm0 = vnez %v9030_v49  ;;  %v1407_v45 = vsub.f32 %v6785_v37, %v6856_v36  ;;  %v6927_v6 = vand.u32 4294901760, %v6864_v32  ;;  %5162 = vmatprep.subr.msk.mxu0 %vm6822_vm10, %v9084_v40 }
  0xdf   : > { %9201 = vst [vmem:[#allocation147_spill] sm:$0xff] %v6897_v23  ;;  %9203 = vst [vmem:[#allocation148_spill] sm:$0xff] %v6911_v41  ;;  %5147 = vmatpush1.msk.msra.mxu1 %vm9205_vm0, %v9084_v40  ;;  %v6929_v22 = vsub.f32 %v5069_v38, %v5069_v38  ;;  %v5062_v2 = vsel %vm6842_vm12, 1.0, %v9062_v42  ;;  %vm9208_vm2 = vnez %v9036_v54  ;;  %v6940_v49 = vand.u32 4294901760, %v1395_v3  ;;  %5163 = vmatpush1.msk.msra.mxu0 %vm6842_vm12, %v9084_v40 }
  0xe0   : > { %9204 = vst [vmem:[#allocation149_spill] sm:$0xff] %v6913_v26  ;;  %9206 = vst [vmem:[#allocation150_spill] sm:$0xff] %v6927_v6  ;;  %5148 = vmatprep.subr.msk.mxu1 %vm9208_vm2, %v9084_v40  ;;  %v6943_v51 = vand.u32 4294901760, %v6883_v21  ;;  %v6945_v50 = vsub.f32 %v5068_v28, %v5068_v28  ;;  %v5057_v38 = vsel %vm6860_vm11, 1.0, %v9062_v42  ;;  %vm9212_vm0 = vnez %v9040_v58  ;;  %5164 = vmatprep.subr.msk.mxu0 %vm6860_vm11, %v9084_v40 }
  0xe1   : > { %9207 = vst [vmem:[#allocation151_spill] sm:$0xff] %v6929_v22  ;;  %9209 = vst [vmem:[#allocation152_spill] sm:$0xff] %v6940_v49  ;;  %5149 = vmatpush1.msk.msra.mxu1 %vm9212_vm0, %v9084_v40  ;;  %v1413_v3 = vsub.f32 %v6826_v29, %v6895_v46  ;;  %v6959_v54 = vand.u32 4294901760, %v6897_v23  ;;  %v6961_v28 = vsub.f32 %v5063_v52, %v5063_v52  ;;  %v5056_v63 = vsel %vm6879_vm15, 1.0, %v9062_v42 }
  0xe2   : > { %9210 = vst [vmem:[#allocation153_spill] sm:$0xff] %v6943_v51  ;;  %9211 = vst [vmem:[#allocation154_spill] sm:$0xff] %v6945_v50  ;;  %v6970_v58 = vand.u32 4294901760, %v1401_v31  ;;  %v1419_v1 = vsub.f32 %v6846_v27, %v6911_v41  ;;  %v6975_v56 = vand.u32 4294901760, %v6913_v26  ;;  %v6977_v52 = vsub.f32 %v5062_v2, %v5062_v2  ;;  %1254 = vmatmul.mubr.f32.vlgmr.msra.gmra.mxu1 %v6085_v10 }
  0xe3   : > { %9213 = vst [vmem:[#allocation155_spill] sm:$0xff] %v6959_v54  ;;  %9214 = vst [vmem:[#allocation156_spill] sm:$0xff] %v6961_v28  ;;  %v6983_v61 = vand.u32 4294901760, %v1407_v45  ;;  %v1425_v31 = vsub.f32 %v6864_v32, %v6927_v6  ;;  %v6988_v12 = vand.u32 4294901760, %v6929_v22  ;;  %v6990_v48 = vsub.f32 %v5057_v38, %v5057_v38  ;;  %1391 = vmatprep.subr.mxu1 %v6892_v4 }
  0xe4   : > { %9215 = vst [vmem:[#allocation157_spill] sm:$0xff] %v6970_v58  ;;  %9216 = vst [vmem:[#allocation158_spill] sm:$0xff] %v6975_v56  ;;  %v1431_v2 = vsub.f32 %v6883_v21, %v6943_v51  ;;  %v6999_v45 = vand.u32 4294901760, %v6945_v50  ;;  %v7001_v11 = vsub.f32 %v5056_v63, %v5056_v63  ;;  %1397 = vmatpush1.msra.mxu1 %v6940_v49  ;;  %v7007_v38 = vand.u32 4294901760, %v1413_v3 }
  0xe5   : > { %9217 = vst [vmem:[#allocation159_spill] sm:$0xff] %v6977_v52  ;;  %9218 = vst [vmem:[#allocation160_spill] sm:$0xff] %v6983_v61  ;;  %v1437_v4 = vsub.f32 %v6897_v23, %v6959_v54  ;;  %v7012_v57 = vand.u32 4294901760, %v6961_v28  ;;  %1403 = vmatprep.subr.mxu1 %v6970_v58  ;;  %1259 = vmatprep.mubr.f32.mxu1 %v9062_v42  ;;  %v7016_v63 = vand.u32 4294901760, %v1419_v1  ;;  %v7021_v24 = vand.u32 4294901760, %v6977_v52 }
  0xe6   : > { %9219 = vst [vmem:[#allocation161_spill] sm:$0xff] %v6988_v12  ;;  %9220 = vst [vmem:[#allocation162_spill] sm:$0xff] %v6990_v48  ;;  %v1443_v49 = vsub.f32 %v6913_v26, %v6975_v56  ;;  %1409 = vmatpush1.msra.mxu1 %v6983_v61  ;;  %v7027_v3 = vand.u32 4294901760, %v1425_v31  ;;  %v1449_v58 = vsub.f32 %v6929_v22, %v6988_v12  ;;  %v7032_v1 = vand.u32 4294901760, %v6990_v48 }
  0xe7   : > { %9221 = vst [vmem:[#allocation163_spill] sm:$0xff] %v6999_v45  ;;  %9222 = vst [vmem:[#allocation164_spill] sm:$0xff] %v7001_v11  ;;  %1261 = vmatmul.mubr.f32.gmra.mxu1 %v6094_v14  ;;  %v7038_v56 = vand.u32 4294901760, %v1431_v2  ;;  %v1455_v15 = vsub.f32 %v6945_v50, %v6999_v45  ;;  %v7043_v31 = vand.u32 4294901760, %v7001_v11  ;;  %1415 = vmatprep.subr.mxu1 %v7007_v38  ;;  %v7049_v61 = vand.u32 4294901760, %v1437_v4  ;;  %v9235_v45 = vld [vmem:[#allocation71_spill] sm:$0xff] }
  0xe8   : > { %9223 = vst [vmem:[#allocation165_spill] sm:$0xff] %v7007_v38  ;;  %9224 = vst [vmem:[#allocation166_spill] sm:$0xff] %v7012_v57  ;;  %v1461_v12 = vsub.f32 %v6961_v28, %v7012_v57  ;;  %1421 = vmatpush1.msra.mxu1 %v7016_v63  ;;  %5165 = vmatpush1.msk.msra.mxu0 %vm6879_vm15, %v9084_v40  ;;  %v7057_v2 = vand.u32 4294901760, %v1443_v49  ;;  %v1467_v38 = vsub.f32 %v6977_v52, %v7021_v24 }
  0xe9   : > { %9225 = vst [vmem:[#allocation167_spill] sm:$0xff] %v7016_v63  ;;  %9226 = vst [vmem:[#allocation168_spill] sm:$0xff] %v7021_v24  ;;  %1427 = vmatprep.subr.mxu1 %v7027_v3  ;;  %v7063_v4 = vand.u32 4294901760, %v1449_v58  ;;  %v1473_v57 = vsub.f32 %v6990_v48, %v7032_v1  ;;  %1547 = vmatprep.subr.mxu0 %v6654_v13  ;;  %v7069_v63 = vand.u32 4294901760, %v1455_v15  ;;  %vm9240_vm0 = vnez %v9104_v59 }
  0xea   : > { %9227 = vst [vmem:[#allocation169_spill] sm:$0xff] %v7027_v3  ;;  %9228 = vst [vmem:[#allocation170_spill] sm:$0xff] %v7032_v1  ;;  %1433 = vmatpush1.msra.mxu1 %v7038_v56  ;;  %v1479_v49 = vsub.f32 %v7001_v11, %v7043_v31  ;;  %1353 = vmatmul.mubr.f32.vlgmr.msra.gmra.mxu0 %v9235_v45  ;;  %v7075_v3 = vand.u32 4294901760, %v1461_v12  ;;  %v7079_v58 = vand.u32 4294901760, %v1467_v38  ;;  %vm9241_vm2 = vnez %v9113_v55  ;;  %v9244_v38 = vld [vmem:[#allocation33_spill] sm:$0xff] }
  0xeb   : > { %9229 = vst [vmem:[#allocation171_spill] sm:$0xff] %v7038_v56  ;;  %9230 = vst [vmem:[#allocation172_spill] sm:$0xff] %v7043_v31  ;;  %1439 = vmatprep.subr.mxu1 %v7049_v61  ;;  %1550 = vmatpush1.msra.mxu0 %v6730_v62  ;;  %v7083_v15 = vand.u32 4294901760, %v1473_v57  ;;  %v9242_v57 = vld [vmem:[#allocation107_spill] sm:$0xff]  ;;  %v9291_v56 = vld [vmem:[#allocation124_spill] sm:$0xff] }
  0xec   : > { %9231 = vst [vmem:[#allocation173_spill] sm:$0xff] %v7049_v61  ;;  %9232 = vst [vmem:[#allocation174_spill] sm:$0xff] %v7057_v2  ;;  %1445 = vmatpush1.msra.mxu1 %v7057_v2  ;;  %1553 = vmatprep.subr.mxu0 %v6764_v60  ;;  %v7087_v13 = vand.u32 4294901760, %v1479_v49  ;;  %v9245_v49 = vld [vmem:[#allocation158_spill] sm:$0xff]  ;;  %v9274_v60 = vld [vmem:[#allocation119_spill] sm:$0xff] }
  0xed   : > { %9233 = vst [vmem:[#allocation175_spill] sm:$0xff] %v7063_v4  ;;  %9234 = vst [vmem:[#allocation176_spill] sm:$0xff] %v7069_v63  ;;  %1451 = vmatprep.subr.mxu1 %v7063_v4  ;;  %1556 = vmatpush1.msra.mxu0 %v6785_v37  ;;  %v9272_v37 = vmov 0 }
  0xee   : > { %9236 = vst [vmem:[#allocation71_spill] sm:$0xff] %v7075_v3  ;;  %9237 = vst [vmem:[#allocation177_spill] sm:$0xff] %v7079_v58  ;;  %1457 = vmatpush1.msra.mxu1 %v7069_v63  ;;  %1559 = vmatprep.subr.mxu0 %v6826_v29  ;;  %v9271_v29 = vld [vmem:[#allocation27_spill] sm:$0xff] }
  0xef   : > { %9238 = vst [vmem:[#allocation178_spill] sm:$0xff] %v7083_v15  ;;  %9239 = vst [vmem:[#allocation179_spill] sm:$0xff] %v7087_v13  ;;  %1463 = vmatprep.subr.mxu1 %v7075_v3  ;;  %1562 = vmatpush1.msra.mxu0 %v6846_v27  ;;  %v9270_v27 = vld [vmem:[#allocation104_spill] sm:$0xff] }
  0xf0   : > { %1469 = vmatpush1.msra.mxu1 %v7079_v58  ;;  %1565 = vmatprep.subr.mxu0 %v6864_v32  ;;  %v9279_v58 = vld [vmem:[#allocation31_spill] sm:$0xff] }
  0xf1   : > { %1475 = vmatprep.subr.mxu1 %v7083_v15  ;;  %1568 = vmatpush1.msra.mxu0 %v6883_v21 }
  0xf2   : > { %1481 = vmatpush1.msra.mxu1 %v7087_v13  ;;  %1514 = vmatprep.mubr.f32.mxu1 %v9062_v42  ;;  %v9276_v13 = vld [vmem:[#allocation105_spill] sm:$0xff] }
  0xf3   : > { %1571 = vmatprep.subr.mxu0 %v6897_v23  ;;  %1516 = vmatmul.mubr.f32.vlgmr.msra.gmra.mxu1 %v6085_v10 }
  0xf4   : > { %1574 = vmatpush1.msra.mxu0 %v6913_v26  ;;  %5166 = vmatprep.subr.msk.mxu1 %vm6573_vm13, %v9084_v40 }
  0xf5   : > { %1577 = vmatprep.subr.mxu0 %v6929_v22  ;;  %5167 = vmatpush1.msk.msra.mxu1 %vm6597_vm1, %v9084_v40 }
  0xf6   : > { %1358 = vmatprep.mubr.f32.mxu0 %v9062_v42  ;;  %1580 = vmatpush1.msra.mxu0 %v6945_v50  ;;  %v9264_v50 = vld [vmem:[#allocation118_spill] sm:$0xff] }
  0xf7   : > { %5168 = vmatprep.subr.msk.mxu1 %vm9240_vm0, %v9084_v40  ;;  %1364 = vmatmul.mubr.f32.gmra.mxu0 %v6474_v9 }
  0xf8   : > { %1583 = vmatprep.subr.mxu0 %v6961_v28  ;;  %5169 = vmatpush1.msk.msra.mxu1 %vm9241_vm2, %v9084_v40 }
  0xf9   : > { %1586 = vmatpush1.msra.mxu0 %v6977_v52  ;;  %5170 = vmatprep.subr.msk.mxu1 %vm6709_vm4, %v9084_v40 }
  0xfa   : > { %1589 = vmatprep.subr.mxu0 %v6990_v48  ;;  %5171 = vmatpush1.msk.msra.mxu1 %vm6726_vm6, %v9084_v40 }
  0xfb   : > { %1592 = vmatpush1.msra.mxu0 %v7001_v11  ;;  %1625 = vmatprep.mubr.f32.mxu0 %v9062_v42  ;;  %v9259_v11 = vld [vmem:[#allocation115_spill] sm:$0xff] }
  0xfc   : > { %5172 = vmatprep.subr.msk.mxu1 %vm6747_vm5, %v9084_v40  ;;  %1628 = vmatmul.mubr.f32.vlgmr.msra.gmra.mxu0 %v6105_v18 }
  0xfd   : > { %5173 = vmatpush1.msk.msra.mxu1 %vm6760_vm7, %v9084_v40  ;;  %1760 = vmatprep.subr.mxu0 %v6752_v7 }
  0xfe   : > { %1521 = vmatprep.mubr.f32.mxu1 %v9062_v42  ;;  %5174 = vmatprep.subr.msk.mxu1 %vm6775_vm8, %v9084_v40 }
  0xff   : > { %1764 = vmatpush1.msra.mxu0 %v6801_v30  ;;  %1523 = vmatmul.mubr.f32.gmra.mxu1 %v6094_v14 }
 0x100   : > { %1768 = vmatprep.subr.mxu0 %v6838_v35  ;;  %5175 = vmatpush1.msk.msra.mxu1 %vm6781_vm3, %v9084_v40  ;;  %v9254_v35 = vld [vmem:[#allocation112_spill] sm:$0xff] }
 0x101   : > { %1633 = vmatprep.mubr.f32.mxu0 %v9062_v42  ;;  %5176 = vmatprep.subr.msk.mxu1 %vm6796_vm9, %v9084_v40 }
 0x102   : > { %1772 = vmatpush1.msra.mxu0 %v6856_v36  ;;  %5177 = vmatpush1.msk.msra.mxu1 %vm6805_vm14, %v9084_v40 }
 0x103   : > { %1636 = vmatmul.mubr.f32.gmra.mxu0 %v6124_v25  ;;  %1776 = vmatprep.subr.mxu0 %v6895_v46 }
 0x104   : > { %5178 = vmatprep.subr.msk.mxu1 %vm6822_vm10, %v9084_v40  ;;  %1780 = vmatpush1.msra.mxu0 %v6911_v41  ;;  %vm9243_vm10 = vnez %v9242_v57  ;;  %v9248_v41 = vld [vmem:[#allocation109_spill] sm:$0xff] }
 0x105   : > { %5179 = vmatpush1.msk.msra.mxu1 %vm6842_vm12, %v9084_v40  ;;  %1784 = vmatprep.subr.mxu0 %v6927_v6  ;;  %v5101_v12 = vsel %vm9243_vm10, 1.0, %v9062_v42  ;;  %v9247_v6 = vld [vmem:[#allocation163_spill] sm:$0xff] }
 0x106   : > { %5180 = vmatprep.subr.msk.mxu1 %vm6860_vm11, %v9084_v40  ;;  %1788 = vmatpush1.msra.mxu0 %v6943_v51  ;;  %v9246_v51 = vld [vmem:[#allocation161_spill] sm:$0xff] }
 0x107   : > { %5181 = vmatpush1.msk.msra.mxu1 %vm6879_vm15, %v9084_v40  ;;  %1722 = vmatprep.mubr.f32.mxu1 %v9062_v42  ;;  %vm9249_vm15 = vnez %v9248_v41 }
 0x108   : > { %1792 = vmatprep.subr.mxu0 %v6959_v54  ;;  %1726 = vmatmul.mubr.f32.vlgmr.msra.gmra.mxu1 %v9244_v38  ;;  %v7186_v54 = vsub.f32 %v5101_v12, %v5101_v12  ;;  %v5100_v46 = vsel %vm9249_vm15, 1.0, %v9062_v42 }
 0x109   : > { %1796 = vmatpush1.msra.mxu0 %v9245_v49  ;;  %5182 = vmatprep.subr.msk.mxu1 %vm6573_vm13, %v9084_v40  ;;  %v9250_v49 = vld [vmem:[#allocation166_spill] sm:$0xff]  ;;  %v7204_v36 = vsub.f32 %v5100_v46, %v5100_v46  ;;  %vm7299_vm13 = vcmp.eq.s32.totalorder %v9271_v29, %v9276_v13  ;;  %v9283_v13 = vld [vmem:[#allocation120_spill] sm:$0xff] }
 0x10a   : > { %1800 = vmatprep.subr.mxu0 %v9246_v51  ;;  %5183 = vmatpush1.msk.msra.mxu1 %vm6597_vm1, %v9084_v40  ;;  %v9253_v51 = vld [vmem:[#allocation92_spill] sm:$0xff]  ;;  %v5058_v16 = vsel %vm7299_vm13, 1.0, %v9062_v42 }
 0x10b   : > { %1804 = vmatpush1.msra.mxu0 %v9247_v6  ;;  %5184 = vmatprep.subr.msk.mxu1 %vm9240_vm0, %v9084_v40  ;;  %v9251_v6 = vld [vmem:[#allocation111_spill] sm:$0xff]  ;;  %vm9255_vm0 = vnez %v9254_v35  ;;  %v7421_v20 = vsub.f32 %v5058_v16, %v5058_v16 }
 0x10c   : > { %1731 = vmatprep.mubr.f32.mxu1 %v9062_v42  ;;  %1808 = vmatprep.subr.mxu0 %v9250_v49  ;;  %vm9252_vm1 = vnez %v9251_v6  ;;  %v5094_v30 = vsel %vm9255_vm0, 1.0, %v9062_v42  ;;  %v7214_v49 = vand.u32 4294901760, %v7186_v54 }
 0x10d   : > { %5185 = vmatpush1.msk.msra.mxu1 %vm9241_vm2, %v9084_v40  ;;  %v5095_v12 = vsel %vm9252_vm1, 1.0, %v9062_v42  ;;  %1812 = vmatpush1.msra.mxu0 %v7021_v24  ;;  %v9257_v24 = vld [vmem:[#allocation114_spill] sm:$0xff]  ;;  %9306 = vst [vmem:[#allocation184_spill] sm:$0xff] %v7421_v20 }
 0x10e   : > { %1735 = vmatmul.mubr.f32.gmra.mxu1 %v9253_v51  ;;  %5186 = vmatprep.subr.msk.mxu1 %vm6709_vm4, %v9084_v40  ;;  %9256 = vst [vmem:[#allocation107_spill] sm:$0xff] %v7214_v49  ;;  %v7220_v46 = vsub.f32 %v5095_v12, %v5095_v12  ;;  %vm9258_vm2 = vnez %v9257_v24  ;;  %vm9260_vm4 = vnez %v9259_v11  ;;  %v7239_v12 = vand.u32 4294901760, %v7204_v36 }
 0x10f   : > { %1816 = vmatprep.subr.mxu0 %v7032_v1  ;;  %5187 = vmatpush1.msk.msra.mxu1 %vm6726_vm6, %v9084_v40  ;;  %v5089_v7 = vsel %vm9258_vm2, 1.0, %v9062_v42  ;;  %v7229_v1 = vsub.f32 %v5094_v30, %v5094_v30  ;;  %v5088_v48 = vsel %vm9260_vm4, 1.0, %v9062_v42  ;;  %v2085_v30 = vsub.f32 %v7186_v54, %v7214_v49 }
 0x110   : > { %1820 = vmatpush1.msra.mxu0 %v7043_v31  ;;  %1853 = vmatprep.mubr.f32.mxu0 %v9062_v42  ;;  %9261 = vst [vmem:[#allocation109_spill] sm:$0xff] %v7239_v12  ;;  %v9262_v31 = vld [vmem:[#allocation117_spill] sm:$0xff]  ;;  %v7252_v28 = vsub.f32 %v5089_v7, %v5089_v7  ;;  %v7264_v26 = vand.u32 4294901760, %v7220_v46  ;;  %v7266_v23 = vsub.f32 %v5088_v48, %v5088_v48  ;;  %v9267_v7 = vld [vmem:[#allocation30_spill] sm:$0xff] }
 0x111   : > { %5188 = vmatprep.subr.msk.mxu1 %vm6747_vm5, %v9084_v40  ;;  %1855 = vmatmul.mubr.f32.vlgmr.msra.gmra.mxu0 %v6085_v10  ;;  %vm9263_vm6 = vnez %v9262_v31  ;;  %v7276_v32 = vand.u32 4294901760, %v7229_v1  ;;  %vm9275_vm5 = vnez %v9274_v60  ;;  %v7312_v63 = vand.u32 4294901760, %v2085_v30 }
 0x112   : > { %5189 = vmatpush1.msk.msra.mxu1 %vm6760_vm7, %v9084_v40  ;;  %v5083_v52 = vsel %vm9263_vm6, 1.0, %v9062_v42  ;;  %5198 = vmatprep.subr.msk.mxu0 %vm9243_vm10, %v9084_v40  ;;  %vm9265_vm7 = vnez %v9264_v50  ;;  %9266 = vst [vmem:[#allocation111_spill] sm:$0xff] %v7264_v26  ;;  %v5076_v62 = vsel %vm9275_vm5, 1.0, %v9062_v42  ;;  %v7315_v4 = vand.u32 4294901760, %v7252_v28 }
 0x113   : > { %5190 = vmatprep.subr.msk.mxu1 %vm6775_vm8, %v9084_v40  ;;  %v5082_v22 = vsel %vm9265_vm7, 1.0, %v9062_v42  ;;  %5199 = vmatpush1.msk.msra.mxu0 %vm9249_vm15, %v9084_v40  ;;  %vm9268_vm8 = vnez %v9267_v7  ;;  %9269 = vst [vmem:[#allocation112_spill] sm:$0xff] %v7276_v32  ;;  %v7284_v48 = vsub.f32 %v5083_v52, %v5083_v52  ;;  %v9277_v52 = vmov 0  ;;  %9281 = vst [vmem:[#allocation114_spill] sm:$0xff] %v7312_v63 }
 0x114   : > { %5191 = vmatpush1.msk.msra.mxu1 %vm6781_vm3, %v9084_v40  ;;  %v5077_v21 = vsel %vm9268_vm8, 1.0, %v9062_v42  ;;  %5200 = vmatprep.subr.msk.mxu0 %vm9252_vm1, %v9084_v40  ;;  %vm7280_vm3 = vcmp.eq.s32.totalorder %v9271_v29, %v9270_v27  ;;  %v2091_v27 = vsub.f32 %v7204_v36, %v7239_v12  ;;  %v9278_v52 = vsel %vm7299_vm13, 4294967295, %v9277_v52  ;;  %9282 = vst [vmem:[#allocation115_spill] sm:$0xff] %v7315_v4 }
 0x115   : > { %1860 = vmatprep.mubr.f32.mxu0 %v9062_v42  ;;  %v9273_v37 = vsel %vm7280_vm3, 4294967295, %v9272_v37  ;;  %5192 = vmatprep.subr.msk.mxu1 %vm6796_vm9, %v9084_v40  ;;  %v7303_v15 = vsub.f32 %v5082_v22, %v5082_v22  ;;  %vm9280_vm1 = vnez %v9279_v58  ;;  %v7317_v29 = vsub.f32 %v5077_v21, %v5077_v21 }
 0x116   : > { %5201 = vmatpush1.msk.msra.mxu0 %vm9255_vm0, %v9084_v40  ;;  %v5071_v3 = vsel %vm9280_vm1, 1.0, %v9062_v42  ;;  %5193 = vmatpush1.msk.msra.mxu1 %vm6805_vm14, %v9084_v40  ;;  %vm9284_vm9 = vnez %v9283_v13  ;;  %vm9285_vm0 = vnez %v9179_v5  ;;  %v2097_v30 = vsub.f32 %v7220_v46, %v7264_v26 }
 0x117   : > { %1862 = vmatmul.mubr.f32.gmra.mxu0 %v6094_v14  ;;  %v5070_v22 = vsel %vm9284_vm9, 1.0, %v9062_v42  ;;  %5202 = vmatprep.subr.msk.mxu0 %vm9258_vm2, %v9084_v40  ;;  %v7331_v2 = vand.u32 4294901760, %v7266_v23  ;;  %v7333_v21 = vsub.f32 %v5076_v62, %v5076_v62  ;;  %vm9288_vm14 = vnez %v9287_v53 }
 0x118   : > { %5194 = vmatprep.subr.msk.mxu1 %vm9285_vm0, %v9084_v40  ;;  %v5065_v61 = vsel %vm9288_vm14, 1.0, %v9062_v42  ;;  %5203 = vmatpush1.msk.msra.mxu0 %vm9260_vm4, %v9084_v40  ;;  %v2103_v5 = vsub.f32 %v7229_v1, %v7276_v32  ;;  %v7347_v33 = vand.u32 4294901760, %v7284_v48  ;;  %v7349_v62 = vsub.f32 %v5071_v3, %v5071_v3 }
 0x119   : > { %9286 = vst [vmem:[#allocation117_spill] sm:$0xff] %v7331_v2  ;;  %5195 = vmatpush1.msk.msra.mxu1 %vm6842_vm12, %v9084_v40  ;;  %vm9292_vm0 = vnez %v9291_v56  ;;  %5204 = vmatprep.subr.msk.mxu0 %vm9263_vm6, %v9084_v40  ;;  %v7360_v39 = vand.u32 4294901760, %v2091_v27  ;;  %v7363_v19 = vand.u32 4294901760, %v7303_v15  ;;  %v7365_v8 = vsub.f32 %v5070_v22, %v5070_v22 }
 0x11a   : > { %9289 = vst [vmem:[#allocation118_spill] sm:$0xff] %v7347_v33  ;;  %9290 = vst [vmem:[#allocation30_spill] sm:$0xff] %v7349_v62  ;;  %v5064_v17 = vsel %vm9292_vm0, 1.0, %v9062_v42  ;;  %5196 = vmatprep.subr.msk.mxu1 %vm6860_vm11, %v9084_v40  ;;  %v5059_v3 = vsel %vm7280_vm3, 1.0, %v9062_v42  ;;  %5205 = vmatpush1.msk.msra.mxu0 %vm9265_vm7, %v9084_v40  ;;  %vm9296_vm12 = vnez %v9195_v34  ;;  %v2109_v27 = vsub.f32 %v7252_v28, %v7315_v4 }
 0x11b   : > { %9293 = vst [vmem:[#allocation104_spill] sm:$0xff] %v7360_v39  ;;  %9294 = vst [vmem:[#allocation27_spill] sm:$0xff] %v7363_v19  ;;  %5197 = vmatpush1.msk.msra.mxu1 %vm9296_vm12, %v9084_v40  ;;  %v7379_v43 = vand.u32 4294901760, %v7317_v29  ;;  %v7381_v22 = vsub.f32 %v5065_v61, %v5065_v61  ;;  %1948 = vmatprep.mubr.f32.mxu1 %v9062_v42  ;;  %v7390_v34 = vand.u32 4294901760, %v2097_v30  ;;  %v7395_v0 = vand.u32 4294901760, %v7333_v21 }
 0x11c   : > { %9295 = vst [vmem:[#allocation119_spill] sm:$0xff] %v7365_v8  ;;  %5206 = vmatprep.subr.msk.mxu0 %vm9268_vm8, %v9084_v40  ;;  %v2115_v44 = vsub.f32 %v7266_v23, %v7331_v2  ;;  %v7397_v61 = vsub.f32 %v5064_v17, %v5064_v17  ;;  %1950 = vmatmul.mubr.f32.vlgmr.msra.gmra.mxu1 %v6085_v10  ;;  %v7403_v55 = vand.u32 4294901760, %v2103_v5  ;;  %v7408_v59 = vand.u32 4294901760, %v7349_v62 }
 0x11d   : > { %9297 = vst [vmem:[#allocation105_spill] sm:$0xff] %v7379_v43  ;;  %9298 = vst [vmem:[#allocation31_spill] sm:$0xff] %v7381_v22  ;;  %5207 = vmatpush1.msk.msra.mxu0 %vm9275_vm5, %v9084_v40  ;;  %v2121_v30 = vsub.f32 %v7284_v48, %v7347_v33  ;;  %v7410_v47 = vsub.f32 %v5059_v3, %v5059_v3  ;;  %2087 = vmatprep.subr.mxu1 %v7312_v63  ;;  %v7419_v5 = vand.u32 4294901760, %v7365_v8 }
 0x11e   : > { %9299 = vst [vmem:[#allocation120_spill] sm:$0xff] %v7390_v34  ;;  %9300 = vst [vmem:[#allocation32_spill] sm:$0xff] %v7395_v0  ;;  %5208 = vmatprep.subr.msk.mxu0 %vm9280_vm1, %v9084_v40  ;;  %v2127_v17 = vsub.f32 %v7303_v15, %v7363_v19  ;;  %2093 = vmatpush1.msra.mxu1 %v7360_v39  ;;  %v7427_v3 = vand.u32 4294901760, %v2109_v27  ;;  %v2133_v63 = vsub.f32 %v7317_v29, %v7379_v43 }
 0x11f   : > { %9301 = vst [vmem:[#allocation124_spill] sm:$0xff] %v7397_v61  ;;  %9302 = vst [vmem:[#allocation180_spill] sm:$0xff] %v7403_v55  ;;  %5209 = vmatpush1.msk.msra.mxu0 %vm9284_vm9, %v9084_v40  ;;  %v7432_v51 = vand.u32 4294901760, %v7381_v22  ;;  %2099 = vmatprep.subr.mxu1 %v7390_v34  ;;  %v7436_v16 = vand.u32 4294901760, %v2115_v44  ;;  %v2139_v39 = vsub.f32 %v7333_v21, %v7395_v0  ;;  %v7441_v38 = vand.u32 4294901760, %v7397_v61 }
 0x120   : > { %9303 = vst [vmem:[#allocation181_spill] sm:$0xff] %v7408_v59  ;;  %9304 = vst [vmem:[#allocation182_spill] sm:$0xff] %v7410_v47  ;;  %1955 = vmatprep.mubr.f32.mxu1 %v9062_v42  ;;  %5210 = vmatprep.subr.msk.mxu0 %vm9288_vm14, %v9084_v40  ;;  %v7447_v27 = vand.u32 4294901760, %v2121_v30  ;;  %v2145_v34 = vsub.f32 %v7349_v62, %v7408_v59  ;;  %v7452_v44 = vand.u32 4294901760, %v7410_v47  ;;  %v7458_v0 = vand.u32 4294901760, %v2127_v17 }
 0x121   : > { %9305 = vst [vmem:[#allocation183_spill] sm:$0xff] %v7419_v5  ;;  %9307 = vst [vmem:[#allocation185_spill] sm:$0xff] %v7427_v3  ;;  %2105 = vmatpush1.msra.mxu1 %v7403_v55  ;;  %5211 = vmatpush1.msk.msra.mxu0 %vm9292_vm0, %v9084_v40  ;;  %v2151_v43 = vsub.f32 %v7365_v8, %v7419_v5  ;;  %v7463_v30 = vand.u32 4294901760, %v7421_v20  ;;  %v7469_v55 = vand.u32 4294901760, %v2133_v63  ;;  %v7477_v17 = vand.u32 4294901760, %v2139_v39 }
 0x122   : > { %9308 = vst [vmem:[#allocation186_spill] sm:$0xff] %v7432_v51  ;;  %9309 = vst [vmem:[#allocation187_spill] sm:$0xff] %v7436_v16  ;;  %1957 = vmatmul.mubr.f32.gmra.mxu1 %v6094_v14  ;;  %2111 = vmatprep.subr.mxu1 %v7427_v3  ;;  %v2157_v59 = vsub.f32 %v7381_v22, %v7432_v51  ;;  %v2163_v3 = vsub.f32 %v7397_v61, %v7441_v38  ;;  %v7483_v63 = vand.u32 4294901760, %v2145_v34 }
 0x123   : > { %9310 = vst [vmem:[#allocation188_spill] sm:$0xff] %v7441_v38  ;;  %9311 = vst [vmem:[#allocation189_spill] sm:$0xff] %v7447_v27  ;;  %5212 = vmatprep.subr.msk.mxu0 %vm7280_vm3, %v9084_v40  ;;  %2117 = vmatpush1.msra.mxu1 %v7436_v16  ;;  %v2169_v51 = vsub.f32 %v7410_v47, %v7452_v44  ;;  %v7489_v16 = vand.u32 4294901760, %v2151_v43  ;;  %v2175_v39 = vsub.f32 %v7421_v20, %v7463_v30 }
 0x124   : > { %9312 = vst [vmem:[#allocation190_spill] sm:$0xff] %v7452_v44  ;;  %9313 = vst [vmem:[#allocation191_spill] sm:$0xff] %v7463_v30  ;;  %5213 = vmatpush1.msk.msra.mxu0 %vm7299_vm13, %v9084_v40  ;;  %2123 = vmatprep.subr.mxu1 %v7447_v27  ;;  %v7495_v27 = vand.u32 4294901760, %v2157_v59  ;;  %v7499_v34 = vand.u32 4294901760, %v2163_v3  ;;  %vm9314_vm12 = vnez %v9251_v6  ;;  %vm9315_vm11 = vnez %v9254_v35  ;;  %v9321_v3 = vld [vmem:[#allocation92_spill] sm:$0xff] }
 0x125   : > { %2043 = vmatprep.mubr.f32.mxu0 %v9062_v42  ;;  %2129 = vmatpush1.msra.mxu1 %v7458_v0  ;;  %v7503_v43 = vand.u32 4294901760, %v2169_v51  ;;  %v9318_v51 = vld [vmem:[#allocation32_spill] sm:$0xff] }
 0x126   : > { %2243 = vmatprep.subr.mxu0 %v7186_v54  ;;  %2049 = vmatmul.mubr.f32.vlgmr.msra.gmra.mxu0 %v9235_v45  ;;  %v7507_v45 = vand.u32 4294901760, %v2175_v39  ;;  %v379_v39 = vld [vmem:[%s6050_s1] sm:$0xff] }
 0x127   : > { %2135 = vmatprep.subr.mxu1 %v7469_v55  ;;  %2246 = vmatpush1.msra.mxu0 %v7204_v36  ;;  %v9319_v59 = vld [vmem:[#allocation181_spill] sm:$0xff] }
 0x128   : > { %2141 = vmatpush1.msra.mxu1 %v7477_v17  ;;  %2249 = vmatprep.subr.mxu0 %v7220_v46 }
 0x129   : > { %2147 = vmatprep.subr.mxu1 %v7483_v63  ;;  %2252 = vmatpush1.msra.mxu0 %v7229_v1 }
 0x12a   : > { %2153 = vmatpush1.msra.mxu1 %v7489_v16  ;;  %2255 = vmatprep.subr.mxu0 %v7252_v28 }
 0x12b   : > { %2159 = vmatprep.subr.mxu1 %v7495_v27  ;;  %2258 = vmatpush1.msra.mxu0 %v7266_v23 }
 0x12c   : > { %2165 = vmatpush1.msra.mxu1 %v7499_v34  ;;  %2261 = vmatprep.subr.mxu0 %v7284_v48 }
 0x12d   : > { %2171 = vmatprep.subr.mxu1 %v7503_v43  ;;  %2264 = vmatpush1.msra.mxu0 %v7303_v15 }
 0x12e   : > { %2177 = vmatpush1.msra.mxu1 %v7507_v45  ;;  %2210 = vmatprep.mubr.f32.mxu1 %v9062_v42 }
 0x12f   : > { %2267 = vmatprep.subr.mxu0 %v7317_v29  ;;  %2212 = vmatmul.mubr.f32.vlgmr.msra.gmra.mxu1 %v6085_v10 }
 0x130   : > { %2270 = vmatpush1.msra.mxu0 %v7333_v21  ;;  %5214 = vmatprep.subr.msk.mxu1 %vm9243_vm10, %v9084_v40 }
 0x131   : > { %2273 = vmatprep.subr.mxu0 %v7349_v62  ;;  %5215 = vmatpush1.msk.msra.mxu1 %vm9249_vm15, %v9084_v40 }
 0x132   : > { %2054 = vmatprep.mubr.f32.mxu0 %v9062_v42  ;;  %2276 = vmatpush1.msra.mxu0 %v7365_v8  ;;  %v9370_v8 = vld [vmem:[#allocation45_spill] sm:$0xff] }
 0x133   : > { %5216 = vmatprep.subr.msk.mxu1 %vm9314_vm12, %v9084_v40  ;;  %2060 = vmatmul.mubr.f32.gmra.mxu0 %v6474_v9  ;;  %v9320_v9 = vld [vmem:[#allocation186_spill] sm:$0xff] }
 0x134   : > { %2279 = vmatprep.subr.mxu0 %v7381_v22  ;;  %5217 = vmatpush1.msk.msra.mxu1 %vm9315_vm11, %v9084_v40  ;;  %v9368_v22 = vld [vmem:[#allocation97_spill] sm:$0xff] }
 0x135   : > { %2282 = vmatpush1.msra.mxu0 %v7397_v61  ;;  %5218 = vmatprep.subr.msk.mxu1 %vm9258_vm2, %v9084_v40  ;;  %v9365_v61 = vld [vmem:[#allocation96_spill] sm:$0xff] }
 0x136   : > { %2285 = vmatprep.subr.mxu0 %v7410_v47  ;;  %5219 = vmatpush1.msk.msra.mxu1 %vm9260_vm4, %v9084_v40 }
 0x137   : > { %2288 = vmatpush1.msra.mxu0 %v7421_v20  ;;  %2321 = vmatprep.mubr.f32.mxu0 %v9062_v42  ;;  %v9362_v20 = vld [vmem:[#allocation93_spill] sm:$0xff] }
 0x138   : > { %5220 = vmatprep.subr.msk.mxu1 %vm9263_vm6, %v9084_v40  ;;  %2324 = vmatmul.mubr.f32.vlgmr.msra.gmra.mxu0 %v6105_v18  ;;  %v9316_v18 = vld [vmem:[#allocation105_spill] sm:$0xff] }
 0x139   : > { %5221 = vmatpush1.msk.msra.mxu1 %vm9265_vm7, %v9084_v40  ;;  %2456 = vmatprep.subr.mxu0 %v7214_v49  ;;  %v9360_v49 = vld [vmem:[#allocation52_spill] sm:$0xff] }
 0x13a   : > { %2217 = vmatprep.mubr.f32.mxu1 %v9062_v42  ;;  %5222 = vmatprep.subr.msk.mxu1 %vm9268_vm8, %v9084_v40 }
 0x13b   : > { %2460 = vmatpush1.msra.mxu0 %v7239_v12  ;;  %2219 = vmatmul.mubr.f32.gmra.mxu1 %v6094_v14  ;;  %v9357_v12 = vld [vmem:[#allocation49_spill] sm:$0xff] }
 0x13c   : > { %2464 = vmatprep.subr.mxu0 %v7264_v26  ;;  %5223 = vmatpush1.msk.msra.mxu1 %vm9275_vm5, %v9084_v40  ;;  %v9354_v26 = vld [vmem:[#allocation46_spill] sm:$0xff] }
 0x13d   : > { %2329 = vmatprep.mubr.f32.mxu0 %v9062_v42  ;;  %5224 = vmatprep.subr.msk.mxu1 %vm9280_vm1, %v9084_v40 }
 0x13e   : > { %2468 = vmatpush1.msra.mxu0 %v7276_v32  ;;  %5225 = vmatpush1.msk.msra.mxu1 %vm9284_vm9, %v9084_v40  ;;  %v9350_v32 = vld [vmem:[#allocation80_spill] sm:$0xff] }
 0x13f   : > { %2332 = vmatmul.mubr.f32.gmra.mxu0 %v6124_v25  ;;  %2472 = vmatprep.subr.mxu0 %v7315_v4  ;;  %v9317_v25 = vld [vmem:[#allocation33_spill] sm:$0xff]  ;;  %v9348_v4 = vld [vmem:[#allocation43_spill] sm:$0xff] }
 0x140   : > { %5226 = vmatprep.subr.msk.mxu1 %vm9288_vm14, %v9084_v40  ;;  %2476 = vmatpush1.msra.mxu0 %v7331_v2  ;;  %v9345_v2 = vld [vmem:[#allocation42_spill] sm:$0xff] }
 0x141   : > { %5227 = vmatpush1.msk.msra.mxu1 %vm9292_vm0, %v9084_v40  ;;  %2480 = vmatprep.subr.mxu0 %v7347_v33  ;;  %v9339_v33 = vld [vmem:[#allocation40_spill] sm:$0xff] }
 0x142   : > { %5228 = vmatprep.subr.msk.mxu1 %vm7280_vm3, %v9084_v40  ;;  %2484 = vmatpush1.msra.mxu0 %v7363_v19  ;;  %v9338_v19 = vld [vmem:[#allocation65_spill] sm:$0xff] }
 0x143   : > { %5229 = vmatpush1.msk.msra.mxu1 %vm7299_vm13, %v9084_v40  ;;  %2418 = vmatprep.mubr.f32.mxu1 %v9062_v42 }
 0x144   : > { %2488 = vmatprep.subr.mxu0 %v9316_v18  ;;  %2422 = vmatmul.mubr.f32.vlgmr.msra.gmra.mxu1 %v9317_v25  ;;  %v9335_v18 = vld [vmem:[#allocation63_spill] sm:$0xff] }
 0x145   : > { %2492 = vmatpush1.msra.mxu0 %v9318_v51  ;;  %5230 = vmatprep.subr.msk.mxu1 %vm9243_vm10, %v9084_v40  ;;  %v9334_v51 = vld [vmem:[#allocation62_spill] sm:$0xff] }
 0x146   : > { %2496 = vmatprep.subr.mxu0 %v9319_v59  ;;  %5231 = vmatpush1.msk.msra.mxu1 %vm9249_vm15, %v9084_v40  ;;  %v9333_v59 = vld [vmem:[#allocation61_spill] sm:$0xff] }
 0x147   : > { %2500 = vmatpush1.msra.mxu0 %v7419_v5  ;;  %5232 = vmatprep.subr.msk.mxu1 %vm9314_vm12, %v9084_v40  ;;  %v9331_v5 = vld [vmem:[#allocation38_spill] sm:$0xff]  ;;  %vm9361_vm12 = vnez %v9360_v49 }
 0x148   : > { %2427 = vmatprep.mubr.f32.mxu1 %v9062_v42  ;;  %2504 = vmatprep.subr.mxu0 %v9320_v9  ;;  %v9407_v49 = vld [vmem:[#allocation110_spill] sm:$0xff] }
 0x149   : > { %5233 = vmatpush1.msk.msra.mxu1 %vm9315_vm11, %v9084_v40  ;;  %2508 = vmatpush1.msra.mxu0 %v7441_v38  ;;  %v9329_v38 = vld [vmem:[#allocation37_spill] sm:$0xff]  ;;  %vm9358_vm11 = vnez %v9357_v12  ;;  %v9405_v12 = vld [vmem:[#allocation108_spill] sm:$0xff] }
 0x14a   : > { %2431 = vmatmul.mubr.f32.gmra.mxu1 %v9321_v3  ;;  %5234 = vmatprep.subr.msk.mxu1 %vm9258_vm2, %v9084_v40  ;;  %vm9322_vm2 = vcmask 523264   ;;  %v9323_v3 = vld [vmem:[#allocation34_spill] sm:$0xff] }
 0x14b   : > { %2512 = vmatprep.subr.mxu0 %v7452_v44  ;;  %5235 = vmatpush1.msk.msra.mxu1 %vm9260_vm4, %v9084_v40  ;;  %v2660_v25 = vsel %vm9322_vm2, %v379_v39, 0  ;;  %v9327_v44 = vld [vmem:[#allocation36_spill] sm:$0xff]  ;;  %vm9355_vm4 = vnez %v9354_v26  ;;  %v9403_v26 = vld [vmem:[#allocation106_spill] sm:$0xff] }
 0x14c   : > { %2516 = vmatpush1.msra.mxu0 %v7463_v30  ;;  %2549 = vmatprep.mubr.f32.mxu0 %v9062_v42  ;;  %v7645_v39 = vand.u32 4294901760, %v2660_v25  ;;  %v9325_v30 = vld [vmem:[#allocation35_spill] sm:$0xff] }
 0x14d   : > { %5236 = vmatprep.subr.msk.mxu1 %vm9263_vm6, %v9084_v40  ;;  %2551 = vmatmul.mubr.f32.vlgmr.msra.gmra.mxu0 %v6085_v10  ;;  %vm9324_vm6 = vnez %v9323_v3  ;;  %vm9326_vm2 = vnez %v9325_v30  ;;  %v9393_v3 = vld [vmem:[#allocation69_spill] sm:$0xff]  ;;  %v9394_v30 = vld [vmem:[#allocation70_spill] sm:$0xff] }
 0x14e   : > { %5237 = vmatpush1.msk.msra.mxu1 %vm9265_vm7, %v9084_v40  ;;  %2556 = vmatprep.mubr.f32.mxu0 %v9062_v42  ;;  %v7670_v9 = vsub.f32 %v2660_v25, %v7645_v39  ;;  %v9336_v25 = vld [vmem:[#allocation39_spill] sm:$0xff] }
 0x14f   : > { %5238 = vmatprep.subr.msk.mxu1 %vm9268_vm8, %v9084_v40  ;;  %5246 = vmatprep.subr.msk.mxu0 %vm9324_vm6, %v9084_v40  ;;  %vm9349_vm8 = vnez %v9348_v4  ;;  %v9402_v4 = vld [vmem:[#allocation95_spill] sm:$0xff] }
 0x150   : > { %5239 = vmatpush1.msk.msra.mxu1 %vm9275_vm5, %v9084_v40  ;;  %2644 = vmatprep.mubr.f32.mxu1 %v9062_v42  ;;  %vm9346_vm5 = vnez %v9345_v2  ;;  %v9401_v2 = vld [vmem:[#allocation94_spill] sm:$0xff] }
 0x151   : > { %5240 = vmatprep.subr.msk.mxu1 %vm9280_vm1, %v9084_v40  ;;  %2558 = vmatmul.mubr.f32.gmra.mxu0 %v6094_v14  ;;  %vm9328_vm1 = vnez %v9327_v44  ;;  %v9395_v44 = vld [vmem:[#allocation75_spill] sm:$0xff] }
 0x152   : > { %5241 = vmatpush1.msk.msra.mxu1 %vm9284_vm9, %v9084_v40  ;;  %5247 = vmatpush1.msk.msra.mxu0 %vm9326_vm2, %v9084_v40  ;;  %vm9330_vm9 = vnez %v9329_v38  ;;  %v9396_v38 = vld [vmem:[#allocation77_spill] sm:$0xff] }
 0x153   : > { %5242 = vmatprep.subr.msk.mxu1 %vm9288_vm14, %v9084_v40  ;;  %5248 = vmatprep.subr.msk.mxu0 %vm9328_vm1, %v9084_v40 }
 0x154   : > { %5243 = vmatpush1.msk.msra.mxu1 %vm9292_vm0, %v9084_v40  ;;  %5249 = vmatpush1.msk.msra.mxu0 %vm9330_vm9, %v9084_v40  ;;  %vm9332_vm0 = vnez %v9331_v5  ;;  %v9397_v5 = vld [vmem:[#allocation81_spill] sm:$0xff] }
 0x155   : > { %5244 = vmatprep.subr.msk.mxu1 %vm7280_vm3, %v9084_v40  ;;  %5250 = vmatprep.subr.msk.mxu0 %vm9332_vm0, %v9084_v40  ;;  %vm9337_vm3 = vnez %v9336_v25  ;;  %v9398_v25 = vld [vmem:[#allocation82_spill] sm:$0xff] }
 0x156   : > { %5245 = vmatpush1.msk.msra.mxu1 %vm7299_vm13, %v9084_v40  ;;  %5251 = vmatpush1.msk.msra.mxu0 %vm9337_vm3, %v9084_v40  ;;  %vm9340_vm13 = vnez %v9339_v33  ;;  %v9399_v33 = vld [vmem:[#allocation87_spill] sm:$0xff] }
 0x157   : > { %2646 = vmatmul.mubr.f32.vlgmr.msra.gmra.mxu1 %v6085_v10  ;;  %2775 = vmatprep.subr.mxu1 %v9333_v59  ;;  %v7691_v10 = vand.u32 4294901760, %v7670_v9  ;;  %v9342_v59 = vld [vmem:[#allocation41_spill] sm:$0xff] }
 0x158   : > { %2781 = vmatpush1.msra.mxu1 %v9334_v51  ;;  %2651 = vmatprep.mubr.f32.mxu1 %v9062_v42  ;;  %v9341_v51 = vld [vmem:[#allocation68_spill] sm:$0xff]  ;;  %vm9343_vm14 = vnez %v9342_v59 }
 0x159   : > { %2787 = vmatprep.subr.mxu1 %v9335_v18  ;;  %5252 = vmatprep.subr.msk.mxu0 %vm9340_vm13, %v9084_v40  ;;  %v9344_v18 = vld [vmem:[#allocation73_spill] sm:$0xff]  ;;  %v9400_v59 = vld [vmem:[#allocation88_spill] sm:$0xff] }
 0x15a   : > { %2793 = vmatpush1.msra.mxu1 %v9338_v19  ;;  %5253 = vmatpush1.msk.msra.mxu0 %vm9343_vm14, %v9084_v40  ;;  %v9347_v19 = vld [vmem:[#allocation79_spill] sm:$0xff] }
 0x15b   : > { %2653 = vmatmul.mubr.f32.gmra.mxu1 %v6094_v14  ;;  %2799 = vmatprep.subr.mxu1 %v9341_v51  ;;  %v2746_v14 = vsub.f32 %v7670_v9, %v7691_v10  ;;  %v9351_v51 = vld [vmem:[#allocation44_spill] sm:$0xff] }
 0x15c   : > { %2805 = vmatpush1.msra.mxu1 %v9344_v18  ;;  %5254 = vmatprep.subr.msk.mxu0 %vm9346_vm5, %v9084_v40  ;;  %vm9352_vm7 = vnez %v9351_v51  ;;  %v9353_v18 = vld [vmem:[#allocation85_spill] sm:$0xff] }
 0x15d   : > { %2811 = vmatprep.subr.mxu1 %v9347_v19  ;;  %5255 = vmatpush1.msk.msra.mxu0 %vm9349_vm8, %v9084_v40  ;;  %v9356_v19 = vld [vmem:[#allocation86_spill] sm:$0xff]  ;;  %v7725_v47 = vand.u32 4294901760, %v2746_v14  ;;  %v9372_v14 = vld [vmem:[#allocation47_spill] sm:$0xff]  ;;  %v9409_v51 = vld [vmem:[#allocation145_spill] sm:$0xff] }
 0x15e   : > { %2817 = vmatpush1.msra.mxu1 %v9350_v32  ;;  %5256 = vmatprep.subr.msk.mxu0 %vm9352_vm7, %v9084_v40  ;;  %v9359_v32 = vld [vmem:[#allocation89_spill] sm:$0xff] }
 0x15f   : > { %2823 = vmatprep.subr.mxu1 %v9353_v18  ;;  %5257 = vmatpush1.msk.msra.mxu0 %vm9355_vm4, %v9084_v40  ;;  %v9363_v18 = vld [vmem:[#allocation56_spill] sm:$0xff] }
 0x160   : > { %2829 = vmatpush1.msra.mxu1 %v9356_v19  ;;  %5258 = vmatprep.subr.msk.mxu0 %vm9358_vm11, %v9084_v40  ;;  %vm9364_vm15 = vnez %v9363_v18  ;;  %v9366_v19 = vld [vmem:[#allocation58_spill] sm:$0xff]  ;;  %v9410_v18 = vld [vmem:[#allocation113_spill] sm:$0xff] }
 0x161   : > { %2835 = vmatprep.subr.mxu1 %v9359_v32  ;;  %5259 = vmatpush1.msk.msra.mxu0 %vm9361_vm12, %v9084_v40  ;;  %vm9367_vm10 = vnez %v9366_v19  ;;  %v9369_v32 = vld [vmem:[#allocation98_spill] sm:$0xff]  ;;  %v9412_v19 = vld [vmem:[#allocation152_spill] sm:$0xff] }
 0x162   : > { %2841 = vmatpush1.msra.mxu1 %v9362_v20  ;;  %5260 = vmatprep.subr.msk.mxu0 %vm9364_vm15, %v9084_v40  ;;  %v9371_v20 = vld [vmem:[#allocation99_spill] sm:$0xff] }
 0x163   : > { %2847 = vmatprep.subr.mxu1 %v9365_v61  ;;  %5261 = vmatpush1.msk.msra.mxu0 %vm9367_vm10, %v9084_v40  ;;  %v9373_v61 = vld [vmem:[#allocation48_spill] sm:$0xff] }
 0x164   : > { %2853 = vmatpush1.msra.mxu1 %v9368_v22  ;;  %2742 = vmatprep.mubr.f32.mxu0 %v9062_v42  ;;  %v9374_v22 = vld [vmem:[#allocation51_spill] sm:$0xff] }
 0x165   : > { %2859 = vmatprep.subr.mxu1 %v9369_v32  ;;  %2924 = vmatprep.subr.mxu0 %v9370_v8  ;;  %v9375_v8 = vld [vmem:[#allocation55_spill] sm:$0xff]  ;;  %v9376_v32 = vld [vmem:[#allocation60_spill] sm:$0xff]  ;;  %v7945_v62 = vpop.f32.mrf.mxu0 }
 0x166   : > { %2748 = vmatmul.mubr.f32.vlgmr.msra.gmra.mxu0 %v7725_v47  ;;  %2865 = vmatpush1.msra.mxu1 %v9371_v20  ;;  %v9377_v20 = vld [vmem:[#allocation66_spill] sm:$0xff]  ;;  %9453 = vst [vmem:[#allocation33_spill] sm:$0xff] %v7945_v62 }
 0x167   : > { %2927 = vmatpush1.msra.mxu0 %v9372_v14  ;;  %2898 = vmatprep.mubr.f32.mxu1 %v9062_v42  ;;  %v9378_v14 = vld [vmem:[#allocation67_spill] sm:$0xff]  ;;  %v9464_v62 = vld [vmem:[#allocation154_spill] sm:$0xff] }
 0x168   : > { %2930 = vmatprep.subr.mxu0 %v9373_v61  ;;  %5262 = vmatprep.subr.msk.mxu1 %vm9324_vm6, %v9084_v40  ;;  %v9379_v61 = vld [vmem:[#allocation72_spill] sm:$0xff] }
 0x169   : > { %2900 = vmatmul.mubr.f32.vlgmr.msra.gmra.mxu1 %v7645_v39  ;;  %2933 = vmatpush1.msra.mxu0 %v9374_v22  ;;  %v9380_v22 = vld [vmem:[#allocation74_spill] sm:$0xff] }
 0x16a   : > { %5263 = vmatpush1.msk.msra.mxu1 %vm9326_vm2, %v9084_v40  ;;  %2936 = vmatprep.subr.mxu0 %v9375_v8  ;;  %v9381_v8 = vld [vmem:[#allocation76_spill] sm:$0xff] }
 0x16b   : > { %5264 = vmatprep.subr.msk.mxu1 %vm9328_vm1, %v9084_v40  ;;  %2939 = vmatpush1.msra.mxu0 %v9376_v32  ;;  %v9382_v32 = vld [vmem:[#allocation78_spill] sm:$0xff] }
 0x16c   : > { %5265 = vmatpush1.msk.msra.mxu1 %vm9330_vm9, %v9084_v40  ;;  %2942 = vmatprep.subr.mxu0 %v9377_v20  ;;  %v9383_v20 = vld [vmem:[#allocation83_spill] sm:$0xff] }
 0x16d   : > { %5266 = vmatprep.subr.msk.mxu1 %vm9332_vm0, %v9084_v40  ;;  %2945 = vmatpush1.msra.mxu0 %v9378_v14  ;;  %v9384_v14 = vld [vmem:[#allocation84_spill] sm:$0xff] }
 0x16e   : > { %5267 = vmatpush1.msk.msra.mxu1 %vm9337_vm3, %v9084_v40  ;;  %2948 = vmatprep.subr.mxu0 %v9379_v61  ;;  %v9385_v61 = vld [vmem:[#allocation90_spill] sm:$0xff] }
 0x16f   : > { %5268 = vmatprep.subr.msk.mxu1 %vm9340_vm13, %v9084_v40  ;;  %2951 = vmatpush1.msra.mxu0 %v9380_v22  ;;  %v9386_v22 = vld [vmem:[#allocation91_spill] sm:$0xff] }
 0x170   : > { %5269 = vmatpush1.msk.msra.mxu1 %vm9343_vm14, %v9084_v40  ;;  %2954 = vmatprep.subr.mxu0 %v9381_v8  ;;  %v9387_v8 = vld [vmem:[#allocation50_spill] sm:$0xff] }
 0x171   : > { %5270 = vmatprep.subr.msk.mxu1 %vm9346_vm5, %v9084_v40  ;;  %2957 = vmatpush1.msra.mxu0 %v9382_v32  ;;  %v9388_v32 = vld [vmem:[#allocation53_spill] sm:$0xff] }
 0x172   : > { %5271 = vmatpush1.msk.msra.mxu1 %vm9349_vm8, %v9084_v40  ;;  %2960 = vmatprep.subr.mxu0 %v9383_v20  ;;  %v9389_v20 = vld [vmem:[#allocation54_spill] sm:$0xff] }
 0x173   : > { %5272 = vmatprep.subr.msk.mxu1 %vm9352_vm7, %v9084_v40  ;;  %2963 = vmatpush1.msra.mxu0 %v9384_v14  ;;  %v9390_v14 = vld [vmem:[#allocation57_spill] sm:$0xff] }
 0x174   : > { %5273 = vmatpush1.msk.msra.mxu1 %vm9355_vm4, %v9084_v40  ;;  %2966 = vmatprep.subr.mxu0 %v9385_v61  ;;  %v9391_v61 = vld [vmem:[#allocation59_spill] sm:$0xff] }
 0x175   : > { %5274 = vmatprep.subr.msk.mxu1 %vm9358_vm11, %v9084_v40  ;;  %2969 = vmatpush1.msra.mxu0 %v9386_v22  ;;  %v9392_v22 = vld [vmem:[#allocation64_spill] sm:$0xff] }
 0x176   : > { %5275 = vmatpush1.msk.msra.mxu1 %vm9361_vm12, %v9084_v40  ;;  %3002 = vmatprep.mubr.f32.mxu0 %v9062_v42 }
 0x177   : > { %5276 = vmatprep.subr.msk.mxu1 %vm9364_vm15, %v9084_v40  ;;  %3120 = vmatprep.subr.mxu0 %v9387_v8  ;;  %v9413_v8 = vld [vmem:[#allocation121_spill] sm:$0xff] }
 0x178   : > { %3005 = vmatmul.mubr.f32.vlgmr.msra.gmra.mxu0 %v7670_v9  ;;  %5277 = vmatpush1.msk.msra.mxu1 %vm9367_vm10, %v9084_v40 }
 0x179   : > { %3124 = vmatpush1.msra.mxu0 %v9388_v32  ;;  %3091 = vmatprep.mubr.f32.mxu1 %v9062_v42  ;;  %v9415_v32 = vld [vmem:[#allocation157_spill] sm:$0xff] }
 0x17a   : > { %3128 = vmatprep.subr.mxu0 %v9389_v20  ;;  %5278 = vmatprep.subr.msk.mxu1 %vm9324_vm6, %v9084_v40  ;;  %vm9414_vm6 = vnez %v9413_v8  ;;  %v9416_v20 = vld [vmem:[#allocation122_spill] sm:$0xff] }
 0x17b   : > { %3095 = vmatmul.mubr.f32.vlgmr.msra.gmra.mxu1 %v7691_v10  ;;  %3132 = vmatpush1.msra.mxu0 %v9390_v14  ;;  %v9418_v14 = vld [vmem:[#allocation160_spill] sm:$0xff] }
 0x17c   : > { %5279 = vmatpush1.msk.msra.mxu1 %vm9326_vm2, %v9084_v40  ;;  %3136 = vmatprep.subr.mxu0 %v9391_v61  ;;  %v9419_v61 = vld [vmem:[#allocation125_spill] sm:$0xff] }
 0x17d   : > { %5280 = vmatprep.subr.msk.mxu1 %vm9328_vm1, %v9084_v40  ;;  %3140 = vmatpush1.msra.mxu0 %v9392_v22  ;;  %v9421_v22 = vld [vmem:[#allocation165_spill] sm:$0xff] }
 0x17e   : > { %5281 = vmatpush1.msk.msra.mxu1 %vm9330_vm9, %v9084_v40  ;;  %3144 = vmatprep.subr.mxu0 %v9393_v3  ;;  %v9422_v3 = vld [vmem:[#allocation127_spill] sm:$0xff] }
 0x17f   : > { %5282 = vmatprep.subr.msk.mxu1 %vm9332_vm0, %v9084_v40  ;;  %3148 = vmatpush1.msra.mxu0 %v9394_v30  ;;  %vm9404_vm0 = vnez %v9403_v26  ;;  %vm9423_vm9 = vnez %v9422_v3  ;;  %v9424_v30 = vld [vmem:[#allocation167_spill] sm:$0xff]  ;;  %v9477_v26 = vld [vmem:[#allocation148_spill] sm:$0xff] }
 0x180   : > { %5283 = vmatpush1.msk.msra.mxu1 %vm9337_vm3, %v9084_v40  ;;  %3152 = vmatprep.subr.mxu0 %v9395_v44  ;;  %vm9406_vm3 = vnez %v9405_v12  ;;  %v9425_v44 = vld [vmem:[#allocation129_spill] sm:$0xff]  ;;  %v9485_v3 = vld [vmem:[#allocation168_spill] sm:$0xff] }
 0x181   : > { %5284 = vmatprep.subr.msk.mxu1 %vm9340_vm13, %v9084_v40  ;;  %3156 = vmatpush1.msra.mxu0 %v9396_v38  ;;  %v9427_v38 = vld [vmem:[#allocation169_spill] sm:$0xff] }
 0x182   : > { %5285 = vmatpush1.msk.msra.mxu1 %vm9343_vm14, %v9084_v40  ;;  %3160 = vmatprep.subr.mxu0 %v9397_v5  ;;  %v9428_v5 = vld [vmem:[#allocation130_spill] sm:$0xff]  ;;  %v9479_v12 = vld [vmem:[#allocation153_spill] sm:$0xff] }
 0x183   : > { %5286 = vmatprep.subr.msk.mxu1 %vm9346_vm5, %v9084_v40  ;;  %3164 = vmatpush1.msra.mxu0 %v9398_v25  ;;  %vm9411_vm5 = vnez %v9410_v18  ;;  %v9430_v25 = vld [vmem:[#allocation171_spill] sm:$0xff] }
 0x184   : > { %5287 = vmatpush1.msk.msra.mxu1 %vm9349_vm8, %v9084_v40  ;;  %3168 = vmatprep.subr.mxu0 %v9399_v33  ;;  %vm9420_vm8 = vnez %v9419_v61  ;;  %v9431_v33 = vld [vmem:[#allocation132_spill] sm:$0xff]  ;;  %v9483_v61 = vld [vmem:[#allocation163_spill] sm:$0xff] }
 0x185   : > { %5288 = vmatprep.subr.msk.mxu1 %vm9352_vm7, %v9084_v40  ;;  %3172 = vmatpush1.msra.mxu0 %v9400_v59  ;;  %vm9417_vm7 = vnez %v9416_v20  ;;  %v9433_v59 = vld [vmem:[#allocation173_spill] sm:$0xff] }
 0x186   : > { %5289 = vmatpush1.msk.msra.mxu1 %vm9355_vm4, %v9084_v40  ;;  %3176 = vmatprep.subr.mxu0 %v9401_v2  ;;  %vm9408_vm4 = vnez %v9407_v49  ;;  %v9434_v2 = vld [vmem:[#allocation134_spill] sm:$0xff]  ;;  %v9482_v20 = vld [vmem:[#allocation161_spill] sm:$0xff] }
 0x187   : > { %5290 = vmatprep.subr.msk.mxu1 %vm9358_vm11, %v9084_v40  ;;  %3180 = vmatpush1.msra.mxu0 %v9402_v4  ;;  %vm9429_vm11 = vnez %v9428_v5  ;;  %vm9435_vm13 = vnez %v9434_v2  ;;  %v9436_v4 = vld [vmem:[#allocation174_spill] sm:$0xff] }
 0x188   : > { %5291 = vmatpush1.msk.msra.mxu1 %vm9361_vm12, %v9084_v40  ;;  %3213 = vmatprep.mubr.f32.mxu0 %v9062_v42  ;;  %vm9432_vm12 = vnez %v9431_v33 }
 0x189   : > { %5292 = vmatprep.subr.msk.mxu1 %vm9364_vm15, %v9084_v40  ;;  %5294 = vmatprep.subr.msk.mxu0 %vm9404_vm0, %v9084_v40 }
 0x18a   : > { %3215 = vmatmul.mubr.f32.vlgmr.msra.gmra.mxu0 %v7645_v39  ;;  %5293 = vmatpush1.msk.msra.mxu1 %vm9367_vm10, %v9084_v40  ;;  %vm9426_vm10 = vnez %v9425_v44 }
 0x18b   : > { %5295 = vmatpush1.msk.msra.mxu0 %vm9406_vm3, %v9084_v40  ;;  %3301 = vmatprep.mubr.f32.mxu1 %v9062_v42 }
 0x18c   : > { %5296 = vmatprep.subr.msk.mxu0 %vm9408_vm4, %v9084_v40  ;;  %3422 = vmatprep.subr.mxu1 %v9409_v51  ;;  %v9437_v51 = vld [vmem:[#allocation135_spill] sm:$0xff] }
 0x18d   : > { %3303 = vmatmul.mubr.f32.vlgmr.msra.gmra.mxu1 %v7645_v39  ;;  %5297 = vmatpush1.msk.msra.mxu0 %vm9411_vm5, %v9084_v40  ;;  %vm9438_vm14 = vnez %v9437_v51  ;;  %v9491_v51 = vld [vmem:[#allocation114_spill] sm:$0xff] }
 0x18e   : > { %3428 = vmatpush1.msra.mxu1 %v9412_v19  ;;  %5298 = vmatprep.subr.msk.mxu0 %vm9414_vm6, %v9084_v40  ;;  %v9439_v19 = vld [vmem:[#allocation175_spill] sm:$0xff] }
 0x18f   : > { %3434 = vmatprep.subr.mxu1 %v9415_v32  ;;  %5299 = vmatpush1.msk.msra.mxu0 %vm9417_vm7, %v9084_v40  ;;  %v9440_v32 = vld [vmem:[#allocation138_spill] sm:$0xff] }
 0x190   : > { %3440 = vmatpush1.msra.mxu1 %v9418_v14  ;;  %5300 = vmatprep.subr.msk.mxu0 %vm9420_vm8, %v9084_v40  ;;  %vm9441_vm15 = vnez %v9440_v32  ;;  %v9442_v14 = vld [vmem:[#allocation176_spill] sm:$0xff] }
 0x191   : > { %3446 = vmatprep.subr.mxu1 %v9421_v22  ;;  %5301 = vmatpush1.msk.msra.mxu0 %vm9423_vm9, %v9084_v40  ;;  %v9443_v22 = vld [vmem:[#allocation141_spill] sm:$0xff]  ;;  %v9493_v32 = vld [vmem:[#allocation104_spill] sm:$0xff] }
 0x192   : > { %3452 = vmatpush1.msra.mxu1 %v9424_v30  ;;  %5302 = vmatprep.subr.msk.mxu0 %vm9426_vm10, %v9084_v40  ;;  %vm9444_vm1 = vnez %v9443_v22  ;;  %v9445_v30 = vld [vmem:[#allocation71_spill] sm:$0xff] }
 0x193   : > { %3458 = vmatprep.subr.mxu1 %v9427_v38  ;;  %5303 = vmatpush1.msk.msra.mxu0 %vm9429_vm11, %v9084_v40  ;;  %v9446_v38 = vld [vmem:[#allocation143_spill] sm:$0xff] }
 0x194   : > { %3464 = vmatpush1.msra.mxu1 %v9430_v25  ;;  %5304 = vmatprep.subr.msk.mxu0 %vm9432_vm12, %v9084_v40  ;;  %vm9447_vm2 = vnez %v9446_v38  ;;  %v9448_v25 = vld [vmem:[#allocation177_spill] sm:$0xff]  ;;  %v9495_v38 = vld [vmem:[#allocation120_spill] sm:$0xff] }
 0x195   : > { %3470 = vmatprep.subr.mxu1 %v9433_v59  ;;  %5305 = vmatpush1.msk.msra.mxu0 %vm9435_vm13, %v9084_v40  ;;  %v9449_v59 = vld [vmem:[#allocation178_spill] sm:$0xff] }
 0x196   : > { %3476 = vmatpush1.msra.mxu1 %v9436_v4  ;;  %5306 = vmatprep.subr.msk.mxu0 %vm9438_vm14, %v9084_v40  ;;  %v9450_v4 = vld [vmem:[#allocation116_spill] sm:$0xff] }
 0x197   : > { %3482 = vmatprep.subr.mxu1 %v9439_v19  ;;  %5307 = vmatpush1.msk.msra.mxu0 %vm9441_vm15, %v9084_v40  ;;  %v9451_v19 = vld [vmem:[#allocation179_spill] sm:$0xff] }
 0x198   : > { %3488 = vmatpush1.msra.mxu1 %v9442_v14  ;;  %5308 = vmatprep.subr.msk.mxu0 %vm9444_vm1, %v9084_v40  ;;  %v9452_v14 = vld [vmem:[#allocation123_spill] sm:$0xff] }
 0x199   : > { %3494 = vmatprep.subr.mxu1 %v9445_v30  ;;  %5309 = vmatpush1.msk.msra.mxu0 %vm9447_vm2, %v9084_v40  ;;  %v9454_v30 = vld [vmem:[#allocation128_spill] sm:$0xff] }
 0x19a   : > { %3500 = vmatpush1.msra.mxu1 %v9448_v25  ;;  %3389 = vmatprep.mubr.f32.mxu0 %v9062_v42  ;;  %v9455_v25 = vld [vmem:[#allocation131_spill] sm:$0xff] }
 0x19b   : > { %3506 = vmatprep.subr.mxu1 %v9449_v59  ;;  %3571 = vmatprep.subr.mxu0 %v9450_v4  ;;  %v9456_v59 = vld [vmem:[#allocation136_spill] sm:$0xff]  ;;  %v7961_v4 = vpop.f32.mrf.mxu0 }
 0x19c   : > { %3395 = vmatmul.mubr.f32.vlgmr.msra.gmra.mxu0 %v7725_v47  ;;  %3512 = vmatpush1.msra.mxu1 %v9451_v19  ;;  %9457 = vst [vmem:[#allocation92_spill] sm:$0xff] %v7961_v4  ;;  %v9458_v19 = vld [vmem:[#allocation139_spill] sm:$0xff]  ;;  %v9469_v4 = vld [vmem:[#allocation164_spill] sm:$0xff] }
 0x19d   : > { %3574 = vmatpush1.msra.mxu0 %v9452_v14  ;;  %3545 = vmatprep.mubr.f32.mxu1 %v9062_v42  ;;  %v9459_v14 = vld [vmem:[#allocation142_spill] sm:$0xff] }
 0x19e   : > { %3577 = vmatprep.subr.mxu0 %v9454_v30  ;;  %5310 = vmatprep.subr.msk.mxu1 %vm9404_vm0, %v9084_v40  ;;  %v7971_v30 = vpop.f32.mrf.mxu0 }
 0x19f   : > { %3547 = vmatmul.mubr.f32.vlgmr.msra.gmra.mxu1 %v7645_v39  ;;  %3580 = vmatpush1.msra.mxu0 %v9455_v25  ;;  %v9460_v25 = vld [vmem:[#allocation144_spill] sm:$0xff] }
 0x1a0   : > { %5311 = vmatpush1.msk.msra.mxu1 %vm9406_vm3, %v9084_v40  ;;  %3583 = vmatprep.subr.mxu0 %v9456_v59  ;;  %v9461_v59 = vld [vmem:[#allocation147_spill] sm:$0xff] }
 0x1a1   : > { %5312 = vmatprep.subr.msk.mxu1 %vm9408_vm4, %v9084_v40  ;;  %3586 = vmatpush1.msra.mxu0 %v9458_v19  ;;  %v9462_v19 = vld [vmem:[#allocation149_spill] sm:$0xff] }
 0x1a2   : > { %5313 = vmatpush1.msk.msra.mxu1 %vm9411_vm5, %v9084_v40  ;;  %3589 = vmatprep.subr.mxu0 %v9459_v14  ;;  %v9463_v14 = vld [vmem:[#allocation151_spill] sm:$0xff] }
 0x1a3   : > { %5314 = vmatprep.subr.msk.mxu1 %vm9414_vm6, %v9084_v40  ;;  %3592 = vmatpush1.msra.mxu0 %v9460_v25  ;;  %v7989_v25 = vpop.f32.mrf.mxu0 }
 0x1a4   : > { %5315 = vmatpush1.msk.msra.mxu1 %vm9417_vm7, %v9084_v40  ;;  %3595 = vmatprep.subr.mxu0 %v9461_v59  ;;  %v9465_v59 = vld [vmem:[#allocation156_spill] sm:$0xff] }
 0x1a5   : > { %5316 = vmatprep.subr.msk.mxu1 %vm9420_vm8, %v9084_v40  ;;  %3598 = vmatpush1.msra.mxu0 %v9462_v19  ;;  %v9466_v19 = vld [vmem:[#allocation159_spill] sm:$0xff] }
 0x1a6   : > { %5317 = vmatpush1.msk.msra.mxu1 %vm9423_vm9, %v9084_v40  ;;  %3601 = vmatprep.subr.mxu0 %v9463_v14  ;;  %v9467_v14 = vld [vmem:[#allocation162_spill] sm:$0xff] }
 0x1a7   : > { %5318 = vmatprep.subr.msk.mxu1 %vm9426_vm10, %v9084_v40  ;;  %3604 = vmatpush1.msra.mxu0 %v9464_v62  ;;  %v8007_v62 = vpop.f32.mrf.mxu0 }
 0x1a8   : > { %5319 = vmatpush1.msk.msra.mxu1 %vm9429_vm11, %v9084_v40  ;;  %3607 = vmatprep.subr.mxu0 %v9465_v59  ;;  %9468 = vst [vmem:[#allocation34_spill] sm:$0xff] %v8007_v62  ;;  %v8013_v59 = vpop.f32.mrf.mxu1  ;;  %v9474_v62 = vld [vmem:[#allocation137_spill] sm:$0xff] }
 0x1a9   : > { %5320 = vmatprep.subr.msk.mxu1 %vm9432_vm12, %v9084_v40  ;;  %3610 = vmatpush1.msra.mxu0 %v9466_v19  ;;  %9470 = vst [vmem:[#allocation35_spill] sm:$0xff] %v8013_v59  ;;  %v9471_v19 = vld [vmem:[#allocation126_spill] sm:$0xff] }
 0x1aa   : > { %5321 = vmatpush1.msk.msra.mxu1 %vm9435_vm13, %v9084_v40  ;;  %3613 = vmatprep.subr.mxu0 %v9467_v14  ;;  %v8025_v14 = vpop.f32.mrf.mxu0  ;;  %v8029_v59 = vpop.f32.mrf.mxu1 }
 0x1ab   : > { %5322 = vmatprep.subr.msk.mxu1 %vm9438_vm14, %v9084_v40  ;;  %3616 = vmatpush1.msra.mxu0 %v9469_v4  ;;  %v9472_v4 = vld [vmem:[#allocation133_spill] sm:$0xff]  ;;  %9473 = vst [vmem:[#allocation36_spill] sm:$0xff] %v8025_v14  ;;  %v9476_v14 = vld [vmem:[#allocation146_spill] sm:$0xff] }
 0x1ac   : > { %5323 = vmatpush1.msk.msra.mxu1 %vm9441_vm15, %v9084_v40  ;;  %3649 = vmatprep.mubr.f32.mxu0 %v9062_v42 }
 0x1ad   : > { %5324 = vmatprep.subr.msk.mxu1 %vm9444_vm1, %v9084_v40  ;;  %3767 = vmatprep.subr.mxu0 %v9471_v19  ;;  %v9475_v19 = vld [vmem:[#allocation140_spill] sm:$0xff] }
 0x1ae   : > { %3652 = vmatmul.mubr.f32.vlgmr.msra.gmra.mxu0 %v7670_v9  ;;  %5325 = vmatpush1.msk.msra.mxu1 %vm9447_vm2, %v9084_v40 }
 0x1af   : > { %3771 = vmatpush1.msra.mxu0 %v9472_v4  ;;  %3738 = vmatprep.mubr.f32.mxu1 %v9062_v42  ;;  %v8039_v4 = vpop.f32.mrf.mxu1 }
 0x1b0   : > { %3775 = vmatprep.subr.mxu0 %v9474_v62  ;;  %5326 = vmatprep.subr.msk.mxu1 %vm9404_vm0, %v9084_v40  ;;  %v8045_v62 = vpop.f32.mrf.mxu0  ;;  %vm9488_vm0 = vnez %v9242_v57  ;;  %v9523_v57 = vld [vmem:[#allocation118_spill] sm:$0xff] }
 0x1b1   : > { %3742 = vmatmul.mubr.f32.vlgmr.msra.gmra.mxu1 %v7691_v10  ;;  %3779 = vmatpush1.msra.mxu0 %v9475_v19  ;;  %v9478_v19 = vld [vmem:[#allocation150_spill] sm:$0xff]  ;;  %v8059_v49 = vpop.f32.mrf.mxu1 }
 0x1b2   : > { %5327 = vmatpush1.msk.msra.mxu1 %vm9406_vm3, %v9084_v40  ;;  %3783 = vmatprep.subr.mxu0 %v9476_v14  ;;  %v9480_v14 = vld [vmem:[#allocation155_spill] sm:$0xff]  ;;  %v8065_v18 = vpop.f32.mrf.mxu0  ;;  %vm9489_vm3 = vnez %v9248_v41 }
 0x1b3   : > { %5328 = vmatprep.subr.msk.mxu1 %vm9408_vm4, %v9084_v40  ;;  %3787 = vmatpush1.msra.mxu0 %v9477_v26  ;;  %v9481_v26 = vld [vmem:[#allocation158_spill] sm:$0xff]  ;;  %v8071_v8 = vpop.f32.mrf.mxu1  ;;  %vm9490_vm4 = vnez %v9251_v6  ;;  %v9524_v41 = vld [vmem:[#allocation27_spill] sm:$0xff] }
 0x1b4   : > { %5329 = vmatpush1.msk.msra.mxu1 %vm9411_vm5, %v9084_v40  ;;  %3791 = vmatprep.subr.mxu0 %v9478_v19  ;;  %v8077_v19 = vpop.f32.mrf.mxu0  ;;  %vm9492_vm5 = vnez %v9254_v35  ;;  %v9526_v35 = vld [vmem:[#allocation32_spill] sm:$0xff] }
 0x1b5   : > { %5330 = vmatprep.subr.msk.mxu1 %vm9414_vm6, %v9084_v40  ;;  %3795 = vmatpush1.msra.mxu0 %v9479_v12  ;;  %v9484_v12 = vld [vmem:[#allocation166_spill] sm:$0xff]  ;;  %v8091_v44 = vpop.f32.mrf.mxu1  ;;  %vm9494_vm6 = vnez %v9257_v24  ;;  %v9527_v24 = vld [vmem:[#allocation181_spill] sm:$0xff] }
 0x1b6   : > { %5331 = vmatpush1.msk.msra.mxu1 %vm9417_vm7, %v9084_v40  ;;  %3799 = vmatprep.subr.mxu0 %v9480_v14  ;;  %v9486_v14 = vld [vmem:[#allocation170_spill] sm:$0xff]  ;;  %v8097_v5 = vpop.f32.mrf.mxu0  ;;  %vm9496_vm7 = vnez %v9259_v11 }
 0x1b7   : > { %5332 = vmatprep.subr.msk.mxu1 %vm9420_vm8, %v9084_v40  ;;  %3803 = vmatpush1.msra.mxu0 %v9481_v26  ;;  %v9487_v26 = vld [vmem:[#allocation172_spill] sm:$0xff]  ;;  %v8111_v33 = vpop.f32.mrf.mxu1  ;;  %vm9498_vm8 = vnez %v9262_v31 }
 0x1b8   : > { %5333 = vmatpush1.msk.msra.mxu1 %vm9423_vm9, %v9084_v40  ;;  %3807 = vmatprep.subr.mxu0 %v9482_v20  ;;  %v8117_v2 = vpop.f32.mrf.mxu0  ;;  %vm9500_vm9 = vnez %v9264_v50  ;;  %v9530_v50 = vld [vmem:[#allocation188_spill] sm:$0xff] }
 0x1b9   : > { %5334 = vmatprep.subr.msk.mxu1 %vm9426_vm10, %v9084_v40  ;;  %3811 = vmatpush1.msra.mxu0 %v9483_v61  ;;  %v8131_v22 = vpop.f32.mrf.mxu1  ;;  %v9497_v61 = vld [vmem:[#allocation180_spill] sm:$0xff]  ;;  %vm9502_vm10 = vnez %v9267_v7 }
 0x1ba   : > { %5335 = vmatpush1.msk.msra.mxu1 %vm9429_vm11, %v9084_v40  ;;  %3815 = vmatprep.subr.mxu0 %v9484_v12  ;;  %v8137_v20 = vpop.f32.mrf.mxu0  ;;  %vm9504_vm11 = vnez %v9274_v60 }
 0x1bb   : > { %5336 = vmatprep.subr.msk.mxu1 %vm9432_vm12, %v9084_v40  ;;  %3819 = vmatpush1.msra.mxu0 %v9485_v3  ;;  %v8143_v12 = vpop.f32.mrf.mxu1  ;;  %v9499_v3 = vld [vmem:[#allocation185_spill] sm:$0xff]  ;;  %vm9505_vm12 = vnez %v9279_v58 }
 0x1bc   : > { %5337 = vmatpush1.msk.msra.mxu1 %vm9435_vm13, %v9084_v40  ;;  %3823 = vmatprep.subr.mxu0 %v9486_v14  ;;  %v9501_v14 = vld [vmem:[#allocation187_spill] sm:$0xff]  ;;  %vm9506_vm13 = vnez %v9283_v13  ;;  %v831_v13 = vadd.f32 %v8059_v49, %v7989_v25 }
 0x1bd   : > { %5338 = vmatprep.subr.msk.mxu1 %vm9438_vm14, %v9084_v40  ;;  %3827 = vmatpush1.msra.mxu0 %v9487_v26  ;;  %v8153_v26 = vpop.f32.mrf.mxu0  ;;  %vm9507_vm14 = vnez %v9287_v53 }
 0x1be   : > { %3860 = vmatprep.mubr.f32.mxu0 %v9062_v42  ;;  %5339 = vmatpush1.msk.msra.mxu1 %vm9441_vm15, %v9084_v40  ;;  %vm9508_vm15 = vnez %v9291_v56 }
 0x1bf   : > { %3862 = vmatmul.mubr.f32.vlgmr.msra.gmra.mxu0 %v7645_v39  ;;  %5340 = vmatprep.subr.msk.mxu1 %vm9444_vm1, %v9084_v40  ;;  %vm9509_vm1 = vnez %v9273_v37 }
 0x1c0   : > { %5342 = vmatprep.subr.msk.mxu0 %vm9488_vm0, %v9084_v40  ;;  %5341 = vmatpush1.msk.msra.mxu1 %vm9447_vm2, %v9084_v40  ;;  %vm9510_vm2 = vnez %v9278_v52 }
 0x1c1   : > { %3948 = vmatprep.mubr.f32.mxu1 %v9062_v42  ;;  %5343 = vmatpush1.msk.msra.mxu0 %vm9489_vm3, %v9084_v40 }
 0x1c2   : > { %3950 = vmatmul.mubr.f32.vlgmr.msra.gmra.mxu1 %v7645_v39  ;;  %5344 = vmatprep.subr.msk.mxu0 %vm9490_vm4, %v9084_v40 }
 0x1c3   : > { %4069 = vmatprep.subr.mxu1 %v9491_v51  ;;  %5345 = vmatpush1.msk.msra.mxu0 %vm9492_vm5, %v9084_v40  ;;  %v9503_v51 = vld [vmem:[#allocation189_spill] sm:$0xff] }
 0x1c4   : > { %4075 = vmatpush1.msra.mxu1 %v9493_v32  ;;  %5346 = vmatprep.subr.msk.mxu0 %vm9494_vm6, %v9084_v40  ;;  %v8163_v32 = vpop.f32.mrf.mxu1 }
 0x1c5   : > { %4081 = vmatprep.subr.mxu1 %v9495_v38  ;;  %5347 = vmatpush1.msk.msra.mxu0 %vm9496_vm7, %v9084_v40  ;;  %v8173_v38 = vpop.f32.mrf.mxu0 }
 0x1c6   : > { %4087 = vmatpush1.msra.mxu1 %v9497_v61  ;;  %5348 = vmatprep.subr.msk.mxu0 %vm9498_vm8, %v9084_v40 }
 0x1c7   : > { %4093 = vmatprep.subr.mxu1 %v9499_v3  ;;  %5349 = vmatpush1.msk.msra.mxu0 %vm9500_vm9, %v9084_v40  ;;  %v9518_v3 = vld [vmem:[#allocation109_spill] sm:$0xff] }
 0x1c8   : > { %4099 = vmatpush1.msra.mxu1 %v9501_v14  ;;  %5350 = vmatprep.subr.msk.mxu0 %vm9502_vm10, %v9084_v40 }
 0x1c9   : > { %4105 = vmatprep.subr.mxu1 %v9503_v51  ;;  %5351 = vmatpush1.msk.msra.mxu0 %vm9504_vm11, %v9084_v40  ;;  %v9519_v51 = vld [vmem:[#allocation111_spill] sm:$0xff] }
 0x1ca   : > { %4111 = vmatpush1.msra.mxu1 %v7458_v0  ;;  %5352 = vmatprep.subr.msk.mxu0 %vm9505_vm12, %v9084_v40  ;;  %v8183_v0 = vpop.f32.mrf.mxu0 }
 0x1cb   : > { %4117 = vmatprep.subr.mxu1 %v7469_v55  ;;  %5353 = vmatpush1.msk.msra.mxu0 %vm9506_vm13, %v9084_v40  ;;  %v8185_v55 = vpop.f32.mrf.mxu1 }
 0x1cc   : > { %4123 = vmatpush1.msra.mxu1 %v7477_v17  ;;  %5354 = vmatprep.subr.msk.mxu0 %vm9507_vm14, %v9084_v40 }
 0x1cd   : > { %4129 = vmatprep.subr.mxu1 %v7483_v63  ;;  %5355 = vmatpush1.msk.msra.mxu0 %vm9508_vm15, %v9084_v40  ;;  %v8201_v17 = vpop.f32.mrf.mxu1 }
 0x1ce   : > { %4135 = vmatpush1.msra.mxu1 %v7489_v16  ;;  %5356 = vmatprep.subr.msk.mxu0 %vm9509_vm1, %v9084_v40  ;;  %v8199_v16 = vpop.f32.mrf.mxu0 }
 0x1cf   : > { %4141 = vmatprep.subr.mxu1 %v7495_v27  ;;  %5357 = vmatpush1.msk.msra.mxu0 %vm9510_vm2, %v9084_v40  ;;  %v8207_v27 = vpop.f32.mrf.mxu1 }
 0x1d0   : > { %4147 = vmatpush1.msra.mxu1 %v7499_v34  ;;  %4036 = vmatprep.mubr.f32.mxu0 %v9062_v42  ;;  %v1518_v25 = vadd.f32 %v8207_v27, %v8153_v26 }
 0x1d1   : > { %4153 = vmatprep.subr.mxu1 %v7503_v43  ;;  %4218 = vmatprep.subr.mxu0 %v7186_v54  ;;  %v9516_v43 = vld [vmem:[#allocation184_spill] sm:$0xff] }
 0x1d2   : > { %4042 = vmatmul.mubr.f32.vlgmr.msra.gmra.mxu0 %v7725_v47  ;;  %4159 = vmatpush1.msra.mxu1 %v7507_v45  ;;  %v8217_v47 = vpop.f32.mrf.mxu0  ;;  %v9517_v45 = vld [vmem:[#allocation107_spill] sm:$0xff] }
 0x1d3   : > { %4221 = vmatpush1.msra.mxu0 %v7204_v36  ;;  %4192 = vmatprep.mubr.f32.mxu1 %v9062_v42  ;;  %v8227_v36 = vpop.f32.mrf.mxu1 }
 0x1d4   : > { %4224 = vmatprep.subr.mxu0 %v7220_v46  ;;  %5358 = vmatprep.subr.msk.mxu1 %vm9488_vm0, %v9084_v40  ;;  %v8237_v54 = vpop.f32.mrf.mxu0  ;;  %v9513_v46 = vld [vmem:[#allocation31_spill] sm:$0xff] }
 0x1d5   : > { %4194 = vmatmul.mubr.f32.vlgmr.msra.gmra.mxu1 %v7645_v39  ;;  %4227 = vmatpush1.msra.mxu0 %v7229_v1  ;;  %v9512_v1 = vld [vmem:[#allocation119_spill] sm:$0xff] }
 0x1d6   : > { %5359 = vmatpush1.msk.msra.mxu1 %vm9489_vm3, %v9084_v40  ;;  %4230 = vmatprep.subr.mxu0 %v7252_v28  ;;  %v9511_v28 = vld [vmem:[#allocation30_spill] sm:$0xff] }
 0x1d7   : > { %5360 = vmatprep.subr.msk.mxu1 %vm9490_vm4, %v9084_v40  ;;  %4233 = vmatpush1.msra.mxu0 %v7266_v23  ;;  %v8243_v23 = vpop.f32.mrf.mxu1 }
 0x1d8   : > { %5361 = vmatpush1.msk.msra.mxu1 %vm9492_vm5, %v9084_v40  ;;  %4236 = vmatprep.subr.mxu0 %v7284_v48  ;;  %v1525_v37 = vadd.f32 %v8243_v23, %v8183_v0  ;;  %v9534_v23 = vld [vmem:[#allocation33_spill] sm:$0xff] }
 0x1d9   : > { %5362 = vmatprep.subr.msk.mxu1 %vm9494_vm6, %v9084_v40  ;;  %4239 = vmatpush1.msra.mxu0 %v7303_v15  ;;  %v8257_v15 = vpop.f32.mrf.mxu0  ;;  %v8263_v48 = vpop.f32.mrf.mxu1 }
 0x1da   : > { %5363 = vmatpush1.msk.msra.mxu1 %vm9496_vm7, %v9084_v40  ;;  %4242 = vmatprep.subr.mxu0 %v7317_v29  ;;  %v9514_v29 = vld [vmem:[#allocation124_spill] sm:$0xff]  ;;  %v1638_v49 = vadd.f32 %v8257_v15, %v1525_v37 }
 0x1db   : > { %5364 = vmatprep.subr.msk.mxu1 %vm9498_vm8, %v9084_v40  ;;  %4245 = vmatpush1.msra.mxu0 %v7333_v21  ;;  %v9515_v21 = vld [vmem:[#allocation182_spill] sm:$0xff]  ;;  %v8273_v63 = vpop.f32.mrf.mxu1  ;;  %v8275_v34 = vpop.f32.mrf.mxu0 }
 0x1dc   : > { %5365 = vmatpush1.msk.msra.mxu1 %vm9500_vm9, %v9084_v40  ;;  %4248 = vmatprep.subr.mxu0 %v9511_v28  ;;  %v8424_v37 = vld [vmem:[%s6060_s6] sm:$0xff] }
 0x1dd   : > { %5366 = vmatprep.subr.msk.mxu1 %vm9502_vm10, %v9084_v40  ;;  %4251 = vmatpush1.msra.mxu0 %v9512_v1  ;;  %v8287_v61 = vpop.f32.mrf.mxu0  ;;  %v8293_v14 = vpop.f32.mrf.mxu1  ;;  %v9521_v1 = vld [vmem:[#allocation115_spill] sm:$0xff] }
 0x1de   : > { %5367 = vmatpush1.msk.msra.mxu1 %vm9504_vm11, %v9084_v40  ;;  %4254 = vmatprep.subr.mxu0 %v9513_v46 }
 0x1df   : > { %5368 = vmatprep.subr.msk.mxu1 %vm9505_vm12, %v9084_v40  ;;  %4257 = vmatpush1.msra.mxu0 %v9514_v29  ;;  %v8305_v28 = vpop.f32.mrf.mxu0  ;;  %v1736_v46 = vpop.f32.mrf.mxu1  ;;  %v9522_v29 = vld [vmem:[#allocation117_spill] sm:$0xff] }
 0x1e0   : > { %5369 = vmatpush1.msk.msra.mxu1 %vm9506_vm13, %v9084_v40  ;;  %4260 = vmatprep.subr.mxu0 %v9515_v21  ;;  %v9525_v21 = vld [vmem:[#allocation105_spill] sm:$0xff] }
 0x1e1   : > { %5370 = vmatprep.subr.msk.mxu1 %vm9507_vm14, %v9084_v40  ;;  %4263 = vmatpush1.msra.mxu0 %v9516_v43  ;;  %v1863_v6 = vpop.f32.mrf.mxu0  ;;  %v9528_v43 = vld [vmem:[#allocation183_spill] sm:$0xff] }
 0x1e2   : > { %5371 = vmatpush1.msk.msra.mxu1 %vm9508_vm15, %v9084_v40  ;;  %4296 = vmatprep.mubr.f32.mxu0 %v9062_v42 }
 0x1e3   : > { %5372 = vmatprep.subr.msk.mxu1 %vm9509_vm1, %v9084_v40  ;;  %4414 = vmatprep.subr.mxu0 %v9517_v45  ;;  %v1865_v31 = vpop.f32.mrf.mxu0  ;;  %v9529_v45 = vld [vmem:[#allocation186_spill] sm:$0xff] }
 0x1e4   : > { %4299 = vmatmul.mubr.f32.vlgmr.msra.gmra.mxu0 %v7670_v9  ;;  %5373 = vmatpush1.msk.msra.mxu1 %vm9510_vm2, %v9084_v40  ;;  %v9520_v9 = vld [vmem:[#allocation112_spill] sm:$0xff] }
 0x1e5   : > { %4418 = vmatpush1.msra.mxu0 %v9518_v3  ;;  %4385 = vmatprep.mubr.f32.mxu1 %v9062_v42  ;;  %v9531_v3 = vld [vmem:[#allocation190_spill] sm:$0xff] }
 0x1e6   : > { %4422 = vmatprep.subr.mxu0 %v9519_v51  ;;  %5374 = vmatprep.subr.msk.mxu1 %vm9488_vm0, %v9084_v40  ;;  %v8349_v7 = vpop.f32.mrf.mxu0  ;;  %v9532_v51 = vld [vmem:[#allocation191_spill] sm:$0xff]  ;;  %vm4669_vm0 = vcmask 1040384  }
 0x1e7   : > { %4389 = vmatmul.mubr.f32.vlgmr.msra.gmra.mxu1 %v7691_v10  ;;  %4426 = vmatpush1.msra.mxu0 %v9520_v9  ;;  %v1738_v10 = vpop.f32.mrf.mxu1 }
 0x1e8   : > { %5375 = vmatpush1.msk.msra.mxu1 %vm9489_vm3, %v9084_v40  ;;  %4430 = vmatprep.subr.mxu0 %v9521_v1  ;;  %v8367_v53 = vpop.f32.mrf.mxu0  ;;  %v9533_v1 = vld [vmem:[#allocation92_spill] sm:$0xff]  ;;  %vm4671_vm3 = vcmask 1041408  }
 0x1e9   : > { %5376 = vmatprep.subr.msk.mxu1 %vm9490_vm4, %v9084_v40  ;;  %4434 = vmatpush1.msra.mxu0 %v9522_v29  ;;  %v8335_v11 = vpop.f32.mrf.mxu1  ;;  %v824_v29 = vadd.f32 %v8029_v59, %v9533_v1  ;;  %vm4673_vm4 = vcmask 1042432  }
 0x1ea   : > { %5377 = vmatpush1.msk.msra.mxu1 %vm9492_vm5, %v9084_v40  ;;  %4438 = vmatprep.subr.mxu0 %v9523_v57  ;;  %v9535_v57 = vld [vmem:[#allocation35_spill] sm:$0xff]  ;;  %vm4675_vm5 = vcmask 1043456  }
 0x1eb   : > { %5378 = vmatprep.subr.msk.mxu1 %vm9494_vm6, %v9084_v40  ;;  %4442 = vmatpush1.msra.mxu0 %v9524_v41  ;;  %v8355_v60 = vpop.f32.mrf.mxu1  ;;  %vm4677_vm6 = vcmask 1044480  }
 0x1ec   : > { %5379 = vmatpush1.msk.msra.mxu1 %vm9496_vm7, %v9084_v40  ;;  %4446 = vmatprep.subr.mxu0 %v9525_v21  ;;  %v1630_v21 = vadd.f32 %v8217_v47, %v1518_v25  ;;  %vm4682_vm7 = vcmask 1045504  }
 0x1ed   : > { %5380 = vmatprep.subr.msk.mxu1 %vm9498_vm8, %v9084_v40  ;;  %4450 = vmatpush1.msra.mxu0 %v9526_v35  ;;  %v1958_v58 = vpop.f32.mrf.mxu1  ;;  %v1737_v35 = vadd.f32 %v1736_v46, %v1638_v49 }
 0x1ee   : > { %5381 = vmatpush1.msk.msra.mxu1 %vm9500_vm9, %v9084_v40  ;;  %4454 = vmatprep.subr.mxu0 %v9527_v24  ;;  %v9537_v24 = vld [vmem:[#allocation34_spill] sm:$0xff] }
 0x1ef   : > { %5382 = vmatprep.subr.msk.mxu1 %vm9502_vm10, %v9084_v40  ;;  %4458 = vmatpush1.msra.mxu0 %v9528_v43  ;;  %v1960_v9 = vpop.f32.mrf.mxu1  ;;  %v1520_v43 = vadd.f32 %v8227_v36, %v8173_v38 }
 0x1f0   : > { %5383 = vmatpush1.msk.msra.mxu1 %vm9504_vm11, %v9084_v40  ;;  %4462 = vmatprep.subr.mxu0 %v9529_v45 }
 0x1f1   : > { %5384 = vmatprep.subr.msk.mxu1 %vm9505_vm12, %v9084_v40  ;;  %4466 = vmatpush1.msra.mxu0 %v9530_v50  ;;  %v2213_v0 = vpop.f32.mrf.mxu1 }
 0x1f2   : > { %5385 = vmatpush1.msk.msra.mxu1 %vm9506_vm13, %v9084_v40  ;;  %4470 = vmatprep.subr.mxu0 %v9531_v3 }
 0x1f3   : > { %5386 = vmatprep.subr.msk.mxu1 %vm9507_vm14, %v9084_v40  ;;  %4474 = vmatpush1.msra.mxu0 %v9532_v51  ;;  %v8375_v56 = vpop.f32.mrf.mxu0  ;;  %v2215_v50 = vpop.f32.mrf.mxu1 }
 0x1f4   : > { %4507 = vmatprep.mubr.f32.mxu0 %v9062_v42  ;;  %5387 = vmatpush1.msk.msra.mxu1 %vm9508_vm15, %v9084_v40 }
 0x1f5   : > { %4509 = vmatmul.mubr.f32.vlgmr.msra.gmra.mxu0 %v7645_v39  ;;  %5388 = vmatprep.subr.msk.mxu1 %vm9509_vm1, %v9084_v40  ;;  %v8384_v52 = vpop.f32.mrf.mxu0 }
 0x1f6   : > { %4595 = vmatprep.mubr.f32.mxu1 %v9062_v42  ;;  %5389 = vmatpush1.msk.msra.mxu1 %vm9510_vm2, %v9084_v40  ;;  %v829_v42 = vadd.f32 %v8039_v4, %v7971_v30  ;;  %v944_v40 = vadd.f32 %v8065_v18, %v831_v13  ;;  %v822_v30 = vadd.f32 %v9535_v57, %v9534_v23  ;;  %v9536_v4 = vld [vmem:[#allocation36_spill] sm:$0xff] }
 0x1f7   : > { %4597 = vmatmul.mubr.f32.vlgmr.msra.gmra.mxu1 %v7645_v39  ;;  %v1527_v39 = vadd.f32 %v8263_v48, %v8199_v16  ;;  %v936_v41 = vadd.f32 %v9536_v4, %v824_v29 }
 0x1f8   : > { %v942_v59 = vadd.f32 %v8045_v62, %v829_v42  ;;  %v1043_v18 = vadd.f32 %v8131_v22, %v944_v40  ;;  %v934_v26 = vadd.f32 %v9537_v24, %v822_v30  ;;  %v2325_v48 = vpop.f32.mrf.mxu0  ;;  %v1728_v62 = vadd.f32 %v8273_v63, %v1630_v21 }
 0x1f9   : > { %v1034_v27 = vadd.f32 %v8091_v44, %v936_v41  ;;  %v1640_v45 = vadd.f32 %v8275_v34, %v1527_v39  ;;  %v1864_v22 = vadd.f32 %v1863_v6, %v1737_v35 }
 0x1fa   : > { %v1041_v16 = vadd.f32 %v8111_v33, %v942_v59  ;;  %v1170_v15 = vadd.f32 %v8137_v20, %v1043_v18  ;;  %v1032_v47 = vadd.f32 %v8071_v8, %v934_v26  ;;  %v1632_v20 = vadd.f32 %v8237_v54, %v1520_v43  ;;  %v2327_v8 = vpop.f32.mrf.mxu0 }
 0x1fb   : > { %v1163_v46 = vadd.f32 %v8097_v5, %v1034_v27  ;;  %v1739_v3 = vadd.f32 %v1738_v10, %v1640_v45  ;;  %v1857_v38 = vadd.f32 %v8287_v61, %v1728_v62  ;;  %v1959_v36 = vadd.f32 %v1958_v58, %v1864_v22  ;;  %v2220_v34 = vpop.f32.mrf.mxu1  ;;  %v8418_v10 = vld [vmem:[%s6060_s6 + $0x8] sm:$0xff] }
 0x1fc   : > { %v1168_v44 = vadd.f32 %v8117_v2, %v1041_v16  ;;  %v1265_v33 = vadd.f32 %v8201_v17, %v1170_v15  ;;  %v1161_v63 = vadd.f32 %v8077_v19, %v1032_v47  ;;  %v1730_v51 = vadd.f32 %v8293_v14, %v1632_v20 }
 0x1fd   : > { %v1258_v6 = vadd.f32 %v8163_v32, %v1163_v46  ;;  %v1866_v2 = vadd.f32 %v1865_v31, %v1739_v3  ;;  %v1952_v17 = vadd.f32 %v8335_v11, %v1857_v38  ;;  %v4626_v19 = vsub.f32 %v1959_v36, %v8418_v10  ;;  %v2222_v32 = vpop.f32.mrf.mxu1 }
 0x1fe   : > { %v1263_v5 = vadd.f32 %v8185_v55, %v1168_v44  ;;  %v1256_v54 = vadd.f32 %v8143_v12, %v1161_v63  ;;  %v4615_v61 = vsub.f32 %v1265_v33, %v8418_v10  ;;  %v1859_v58 = vadd.f32 %v8305_v28, %v1730_v51 }
 0x1ff   : > { %v1961_v13 = vadd.f32 %v1960_v9, %v1866_v2  ;;  %v2333_v55 = vpop.f32.mrf.mxu0  ;;  %v4614_v14 = vsub.f32 %v1258_v6, %v8424_v37  ;;  %v4625_v11 = vsub.f32 %v1952_v17, %v8424_v37  ;;  %v4628_v28 = vmul.f32 %v4626_v19, %v4626_v19 }
 0x200   : > { %v4604_v31 = vsub.f32 %v1263_v5, %v8418_v10  ;;  %v1954_v12 = vadd.f32 %v8355_v60, %v1859_v58  ;;  %v4603_v1 = vsub.f32 %v1256_v54, %v8424_v37  ;;  %v4617_v29 = vmul.f32 %v4615_v61, %v4615_v61 }
 0x201   : > { %v4637_v40 = vsub.f32 %v1961_v13, %v8418_v10  ;;  %v2335_v9 = vpop.f32.mrf.mxu0  ;;  %v4616_v25 = vmul.f32 %v4614_v14, %v4614_v14  ;;  %v4627_v49 = vmul.f32 %v4625_v11, %v4625_v11  ;;  %v2214_v60 = vadd.f32 %v2213_v0, %v8349_v7 }
 0x202   : > { %v4606_v39 = vmul.f32 %v4604_v31, %v4604_v31  ;;  %v4636_v23 = vsub.f32 %v1954_v12, %v8424_v37  ;;  %v4605_v4 = vmul.f32 %v4603_v1, %v4603_v1  ;;  %v2216_v27 = vadd.f32 %v2215_v50, %v8367_v53 }
 0x203   : > { %v4618_v41 = vadd.f32 %v4617_v29, %v4616_v25  ;;  %v4629_v59 = vadd.f32 %v4628_v28, %v4627_v49  ;;  %v4639_v18 = vmul.f32 %v4637_v40, %v4637_v40  ;;  %v2326_v16 = vadd.f32 %v2325_v48, %v2214_v60 }
 0x204   : > { %v2423_v42 = vpop.f32.mrf.mxu1  ;;  %v4607_v21 = vadd.f32 %v4606_v39, %v4605_v4  ;;  %v4638_v35 = vmul.f32 %v4636_v23, %v4636_v23  ;;  %v2221_v15 = vadd.f32 %v2220_v34, %v8375_v56  ;;  %v2328_v22 = vadd.f32 %v2327_v8, %v2216_v27 }
 0x205   : > { %v4619_v43 = vrot.slane %v4618_v41, 4  ;;  %v4630_v45 = vrot.slane %v4629_v59, 4  ;;  %v2223_v47 = vadd.f32 %v2222_v32, %v8384_v52  ;;  %v2424_v46 = vadd.f32 %v2423_v42, %v2326_v16 }
 0x206   : > { %v2425_v57 = vpop.f32.mrf.mxu1  ;;  %v4640_v62 = vadd.f32 %v4639_v18, %v4638_v35  ;;  %v4608_v44 = vrot.slane %v4607_v21, 4  ;;  %v2334_v7 = vadd.f32 %v2333_v55, %v2221_v15 }
 0x207   : > { %v2426_v0 = vadd.f32 %v2425_v57, %v2328_v22  ;;  %v4620_v38 = vadd.f32 %v4619_v43, %v4618_v41  ;;  %v4631_v36 = vadd.f32 %v4630_v45, %v4629_v59  ;;  %v2336_v48 = vadd.f32 %v2335_v9, %v2223_v47 }
 0x208   : > { %v4641_v63 = vrot.slane %v4640_v62, 4  ;;  %v4609_v6 = vadd.f32 %v4608_v44, %v4607_v21 }
 0x209   : > { %v4621_v17 = vrot.slane %v4620_v38, 2  ;;  %v4632_v58 = vrot.slane %v4631_v36, 2 }
 0x20a   : > { %v2432_v24 = vpop.f32.mrf.mxu1  ;;  %v4642_v54 = vadd.f32 %v4641_v63, %v4640_v62  ;;  %v4610_v55 = vrot.slane %v4609_v6, 2 }
 0x20b   : > { %v2433_v50 = vadd.f32 %v2432_v24, %v2334_v7  ;;  %v4622_v42 = vadd.f32 %v4621_v17, %v4620_v38  ;;  %v4633_v29 = vadd.f32 %v4632_v58, %v4631_v36 }
 0x20c   : > { %v2434_v33 = vpop.f32.mrf.mxu1  ;;  %v4643_v1 = vrot.slane %v4642_v54, 2  ;;  %v4611_v25 = vadd.f32 %v4610_v55, %v4609_v6 }
 0x20d   : > { %v2552_v30 = vpop.f32.mrf.mxu0  ;;  %v2435_v51 = vadd.f32 %v2434_v33, %v2336_v48  ;;  %v4623_v57 = vrot.slane %v4622_v42, 1  ;;  %v4634_v4 = vrot.slane %v4633_v29, 1 }
 0x20e   : > { %v2553_v3 = vadd.f32 %v2552_v30, %v2424_v46  ;;  %v4644_v30 = vadd.f32 %v4643_v1, %v4642_v54 }
 0x20f   : > { %v2554_v26 = vpop.f32.mrf.mxu0  ;;  %v4624_v21 = vadd.f32 %v4623_v57, %v4622_v42  ;;  %v4635_v24 = vadd.f32 %v4634_v4, %v4633_v29 }
 0x210   : > { %v2555_v56 = vadd.f32 %v2554_v26, %v2426_v0  ;;  %v4645_v35 = vrot.slane %v4644_v30, 1  ;;  %v4680_v0 = vstv %s4679_s19 }
 0x211   : > { %v2559_v20 = vpop.f32.mrf.mxu0 }
 0x212   : > { %v2560_v52 = vadd.f32 %v2559_v20, %v2433_v50  ;;  %v4646_v45 = vadd.f32 %v4645_v35, %v4644_v30 }
 0x213   : > { %v2561_v5 = vpop.f32.mrf.mxu0 }
 0x214   : > { %v2562_v19 = vadd.f32 %v2561_v5, %v2435_v51 }
 0x217   : > { %v2647_v53 = vpop.f32.mrf.mxu1 }
 0x218   : > { %v2648_v34 = vadd.f32 %v2647_v53, %v2553_v3 }
 0x219   : > { %v2649_v8 = vpop.f32.mrf.mxu1 }
 0x21a   : > { %v2650_v2 = vadd.f32 %v2649_v8, %v2555_v56  ;;  %v4647_v13 = vsub.f32 %v2648_v34, %v8424_v37 }
 0x21b   : > { %v2654_v61 = vpop.f32.mrf.mxu1 }
 0x21c   : > { %v2655_v32 = vadd.f32 %v2654_v61, %v2560_v52  ;;  %v4658_v31 = vsub.f32 %v2650_v2, %v8424_v37  ;;  %v4649_v28 = vmul.f32 %v4647_v13, %v4647_v13  ;;  %v4612_v37 = vrot.slane %v4611_v25, 1 }
 0x21d   : > { %v2656_v14 = vpop.f32.mrf.mxu1 }
 0x21e   : > { %v4648_v11 = vsub.f32 %v2655_v32, %v8418_v10  ;;  %v2657_v12 = vadd.f32 %v2656_v14, %v2562_v19  ;;  %v4660_v39 = vmul.f32 %v4658_v31, %v4658_v31 }
 0x220   : > { %v4650_v40 = vmul.f32 %v4648_v11, %v4648_v11  ;;  %v4659_v9 = vsub.f32 %v2657_v12, %v8418_v10  ;;  %v4613_v10 = vadd.f32 %v4612_v37, %v4611_v25 }
 0x222   : > { %v4651_v49 = vadd.f32 %v4650_v40, %v4649_v28  ;;  %v4661_v23 = vmul.f32 %v4659_v9, %v4659_v9  ;;  %v4670_v43 = vsel %vm4669_vm0, %v4613_v10, %v4624_v21 }
 0x223   : > { %v4672_v62 = vsel %vm4671_vm3, %v4670_v43, %v4635_v24 }
 0x224   : > { %v4652_v41 = vrot.slane %v4651_v49, 4  ;;  %v4662_v59 = vadd.f32 %v4661_v23, %v4660_v39  ;;  %v4674_v33 = vsel %vm4673_vm4, %v4672_v62, %v4646_v45 }
 0x226   : > { %v4653_v18 = vadd.f32 %v4652_v41, %v4651_v49  ;;  %v4663_v60 = vrot.slane %v4662_v59, 4  ;;  %v2749_v42 = vpop.f32.mrf.mxu0 }
 0x228   : > { %v4654_v26 = vrot.slane %v4653_v18, 2  ;;  %v4664_v27 = vadd.f32 %v4663_v60, %v4662_v59  ;;  %v2751_v28 = vpop.f32.mrf.mxu0 }
 0x229   : > { %v2901_v40 = vpop.f32.mrf.mxu1 }
 0x22a   : > { %v4655_v16 = vadd.f32 %v4654_v26, %v4653_v18  ;;  %v4665_v15 = vrot.slane %v4664_v27, 2 }
 0x22b   : > { %v2903_v39 = vpop.f32.mrf.mxu1 }
 0x22c   : > { %v4656_v22 = vrot.slane %v4655_v16, 1  ;;  %v4666_v47 = vadd.f32 %v4665_v15, %v4664_v27 }
 0x22e   : > { %v4657_v46 = vadd.f32 %v4656_v22, %v4655_v16  ;;  %v4667_v44 = vrot.slane %v4666_v47, 1 }
 0x230   : > { %v4676_v20 = vsel %vm4675_vm5, %v4674_v33, %v4657_v46  ;;  %v4668_v7 = vadd.f32 %v4667_v44, %v4666_v47 }
 0x232   : > { %v4678_v3 = vsel %vm4677_vm6, %v4676_v20, %v4668_v7 }
 0x233   : > { %v4681_v38 = vmul.f32 %v4680_v0, %v4678_v3  ;;  %v2902_v3 = vadd.f32 %v2901_v40, %v2749_v42  ;;  %v9538_v40 = vld [vmem:[#allocation29_spill] sm:$0xff] }
 0x235   : > { %v4683_v36 = vsel %vm4682_vm7, %v4681_v38, -inf }
 0x236   : > { %v4684_v63 = vrot.slane %v4683_v36, 4 }
 0x238   : > { %v4685_v53 = vmax.f32 %v4683_v36, %v4684_v63  ;;  %v3006_v49 = vpop.f32.mrf.mxu0 }
 0x23a   : > { %v4686_v48 = vrot.slane %v4685_v53, 2  ;;  %v3008_v30 = vpop.f32.mrf.mxu0 }
 0x23b   : > { %v3096_v4 = vpop.f32.mrf.mxu1 }
 0x23c   : > { %v4687_v50 = vmax.f32 %v4685_v53, %v4686_v48 }
 0x23d   : > { %v3098_v37 = vpop.f32.mrf.mxu1 }
 0x23e   : > { %v4688_v56 = vrot.slane %v4687_v50, 1 }
 0x240   : > { %v4689_v34 = vmax.f32 %v4687_v50, %v4688_v56  ;;  %v3007_v56 = vadd.f32 %v3006_v49, %v2902_v3 }
 0x242   : > { %v4690_v6 = vsub.f32 %v4681_v38, %v4689_v34 }
 0x244   : > { %v4691_v5 = vmul.f32 1.442695, %v4690_v6 }
 0x246   : > { %5525 = vpow2.f32 %v4691_v5 }
 0x24a   : > { %v3216_v18 = vpop.f32.mrf.mxu0 }
 0x24c   : > { %v3218_v35 = vpop.f32.mrf.mxu0 }
 0x24d   : > { %v3304_v24 = vpop.f32.mrf.mxu1 }
 0x24f   : > { %v3306_v26 = vpop.f32.mrf.mxu1 }
 0x253   : > { %v5526_v8 = vpop.eup %5525 }
 0x254   : > { %v4693_v51 = vsel %vm4682_vm7, %v5526_v8, 0.0 }
 0x255   : > { %v4694_v52 = vrot.slane %v4693_v51, 4 }
 0x257   : > { %v4695_v2 = vadd.f32 %v4694_v52, %v4693_v51 }
 0x259   : > { %v4696_v17 = vrot.slane %v4695_v2, 2 }
 0x25b   : > { %v4697_v54 = vadd.f32 %v4696_v17, %v4695_v2  ;;  %v3097_v2 = vadd.f32 %v3096_v4, %v3007_v56 }
 0x25c   : > { %v3396_v27 = vpop.f32.mrf.mxu0 }
 0x25d   : > { %v4698_v61 = vrot.slane %v4697_v54, 1 }
 0x25e   : > { %v3398_v10 = vpop.f32.mrf.mxu0 }
 0x25f   : > { %v4699_v58 = vadd.f32 %v4698_v61, %v4697_v54  ;;  %v3548_v16 = vpop.f32.mrf.mxu1 }
 0x260   : > { %v3549_v36 = vadd.f32 %v3548_v16, %v3396_v27 }
 0x261   : > { %5527 = vrcp.f32 %v4699_v58  ;;  %v4703_v19 = vsub.f32 %v4699_v58, %v5526_v8  ;;  %v3550_v15 = vpop.f32.mrf.mxu1 }
 0x262   : > { %5529 = vlog2.f32 %v4699_v58  ;;  %v3551_v51 = vadd.f32 %v3550_v15, %v3398_v10 }
 0x263   : > { %5531 = vlog2.f32 %v4703_v19 }
 0x26e   : > { %v5528_v13 = vpop.eup %5527  ;;  %v3653_v43 = vpop.f32.mrf.mxu0 }
 0x26f   : > { %v5530_v32 = vpop.eup %5529  ;;  %v8443_v55 = vmul.f32 %v5528_v13, %v5526_v8  ;;  %v3654_v5 = vadd.f32 %v3653_v43, %v3549_v36  ;;  %v3217_v13 = vadd.f32 %v3216_v18, %v3097_v2 }
 0x270   : > { %v5532_v14 = vpop.eup %5531  ;;  %v4707_v11 = vmul.f32 0.6931472, %v5530_v32  ;;  %v3655_v47 = vpop.f32.mrf.mxu0 }
 0x271   : > { %v4705_v31 = vmul.f32 0.6931472, %v5532_v14  ;;  %v3743_v46 = vpop.f32.mrf.mxu1  ;;  %v3656_v19 = vadd.f32 %v3655_v47, %v3551_v51 }
 0x272   : > { %v3744_v58 = vadd.f32 %v3743_v46, %v3654_v5 }
 0x273   : > { %v4708_v12 = vsub.f32 %v4705_v31, %v4707_v11  ;;  %v3745_v20 = vpop.f32.mrf.mxu1 }
 0x275   : > { %v8445_v1 = vadd.f32 %v4708_v12, %v4681_v38  ;;  %v2904_v38 = vadd.f32 %v2903_v39, %v2751_v28  ;;  %v3746_v12 = vadd.f32 %v3745_v20, %v3656_v19  ;;  %v8451_v28 = vadd.f32 %v3304_v24, %v3217_v13  ;;  %v9539_v39 = vld [vmem:[#allocation28_spill] sm:$0xff] }
 0x276   : > { %v4718_v49 = vrot.slane %v8443_v55, %v9539_v39 }
 0x277   : > { %v4745_v29 = vsel %vm4682_vm7, %v8445_v1, -inf  ;;  %v3009_v34 = vadd.f32 %v3008_v30, %v2904_v38 }
 0x278   : > { %v4746_v9 = vrot.slane %v4745_v29, 4 }
 0x279   : > { %v3099_v17 = vadd.f32 %v3098_v37, %v3009_v34  ;;  %v9540_v37 = vld [vmem:[#allocation102_spill] sm:$0xff] }
 0x27a   : > { %v4747_v25 = vmax.f32 %v4745_v29, %v4746_v9  ;;  %v4713_v9 = vrot.slane %v8443_v55, %v9538_v40  ;;  %v4724_v18 = vrot.slane %v8443_v55, %v9540_v37 }
 0x27b   : > { %v3219_v32 = vadd.f32 %v3218_v35, %v3099_v17 }
 0x27c   : > { %v4748_v23 = vrot.slane %v4747_v25, 2  ;;  %v4714_v35 = vmul.f32 %v4713_v9, %v8451_v28 }
 0x27e   : > { %v4749_v57 = vmax.f32 %v4747_v25, %v4748_v23  ;;  %v8455_v25 = vadd.f32 %v3306_v26, %v3219_v32  ;;  %v9543_v32 = vld [vmem:[#allocation101_spill] sm:$0xff] }
 0x27f   : > { %v3863_v7 = vpop.f32.mrf.mxu0 }
 0x280   : > { %v4750_v41 = vrot.slane %v4749_v57, 1  ;;  %v3864_v11 = vadd.f32 %v3863_v7, %v3744_v58  ;;  %v4719_v24 = vmul.f32 %v4718_v49, %v8455_v25 }
 0x281   : > { %v3865_v53 = vpop.f32.mrf.mxu0 }
 0x282   : > { %v4751_v59 = vmax.f32 %v4749_v57, %v4750_v41  ;;  %v3951_v48 = vpop.f32.mrf.mxu1  ;;  %v3866_v4 = vadd.f32 %v3865_v53, %v3746_v12  ;;  %v4720_v7 = vadd.f32 %v4719_v24, %v4714_v35 }
 0x283   : > { %v8459_v30 = vadd.f32 %v3951_v48, %v3864_v11 }
 0x284   : > { %v4752_v60 = vsub.f32 %v8445_v1, %v4751_v59  ;;  %v3953_v52 = vpop.f32.mrf.mxu1 }
 0x285   : > { %v4725_v16 = vmul.f32 %v4724_v18, %v8459_v30 }
 0x286   : > { %v4753_v21 = vmul.f32 1.442695, %v4752_v60 }
 0x287   : > { %v4726_v48 = vadd.f32 %v4725_v16, %v4720_v7 }
 0x288   : > { %5533 = vpow2.f32 %v4753_v21 }
 0x292   : > { %v4043_v6 = vpop.f32.mrf.mxu0 }
 0x294   : > { %v4045_v54 = vpop.f32.mrf.mxu0 }
 0x295   : > { %v5534_v45 = vpop.eup %5533  ;;  %v4195_v61 = vpop.f32.mrf.mxu1 }
 0x296   : > { %v4755_v62 = vsel %vm4682_vm7, %v5534_v45, 0.0  ;;  %v4196_v42 = vadd.f32 %v4195_v61, %v4043_v6 }
 0x297   : > { %v4756_v22 = vrot.slane %v4755_v62, 4  ;;  %v4197_v14 = vpop.f32.mrf.mxu1 }
 0x298   : > { %v4198_v29 = vadd.f32 %v4197_v14, %v4045_v54 }
 0x299   : > { %v4757_v44 = vadd.f32 %v4756_v22, %v4755_v62  ;;  %v8466_v62 = vadd.f32 %v3953_v52, %v3866_v4  ;;  %v9542_v52 = vld [vmem:[#allocation103_spill] sm:$0xff] }
 0x29a   : > { %v4736_v61 = vrot.slane %v8443_v55, %v9542_v52 }
 0x29b   : > { %v4758_v33 = vrot.slane %v4757_v44, 2 }
 0x29d   : > { %v4759_v0 = vadd.f32 %v4758_v33, %v4757_v44 }
 0x29f   : > { %v4760_v63 = vrot.slane %v4759_v0, 1 }
 0x2a1   : > { %v4761_v50 = vadd.f32 %v4760_v63, %v4759_v0  ;;  %v9541_v0 = vld [vmem:[#allocation100_spill] sm:$0xff] }
 0x2a2   : > { %v4730_v3 = vrot.slane %v8443_v55, %v9541_v0 }
 0x2a3   : > { %v4765_v8 = vsub.f32 %v4761_v50, %v5534_v45  ;;  %5535 = vlog2.f32 %v4761_v50 }
 0x2a4   : > { %5537 = vrcp.f32 %v4761_v50  ;;  %v4300_v31 = vpop.f32.mrf.mxu0  ;;  %v4731_v50 = vmul.f32 %v4730_v3, %v8466_v62 }
 0x2a5   : > { %5539 = vlog2.f32 %v4765_v8  ;;  %v4301_v41 = vadd.f32 %v4300_v31, %v4196_v42  ;;  %v4742_v42 = vrot.slane %v8443_v55, %v9543_v32 }
 0x2a6   : > { %v4302_v23 = vpop.f32.mrf.mxu0  ;;  %v4732_v31 = vadd.f32 %v4731_v50, %v4726_v48 }
 0x2a7   : > { %v4390_v57 = vpop.f32.mrf.mxu1  ;;  %v4303_v60 = vadd.f32 %v4302_v23, %v4198_v29 }
 0x2a8   : > { %v4391_v22 = vadd.f32 %v4390_v57, %v4301_v41 }
 0x2a9   : > { %v4392_v26 = vpop.f32.mrf.mxu1 }
 0x2aa   : > { %v4393_v33 = vadd.f32 %v4392_v26, %v4303_v60 }
 0x2b0   : > { %v5536_v59 = vpop.eup %5535 }
 0x2b1   : > { %v5538_v21 = vpop.eup %5537  ;;  %v4769_v43 = vmul.f32 0.6931472, %v5536_v59 }
 0x2b2   : > { %v5540_v27 = vpop.eup %5539  ;;  %v4764_v10 = vmul.f32 %v5538_v21, %v5534_v45 }
 0x2b3   : > { %v4767_v15 = vmul.f32 0.6931472, %v5540_v27 }
 0x2b4   : > { %v4775_v47 = vrot.slane %v4764_v10, %v9538_v40  ;;  %v4780_v46 = vrot.slane %v4764_v10, %v9539_v39  ;;  %v4786_v44 = vrot.slane %v4764_v10, %v9540_v37  ;;  %v4792_v63 = vrot.slane %v4764_v10, %v9541_v0 }
 0x2b5   : > { %v4770_v20 = vsub.f32 %v4767_v15, %v4769_v43  ;;  %v4510_v45 = vpop.f32.mrf.mxu0  ;;  %v4798_v2 = vrot.slane %v4764_v10, %v9542_v52  ;;  %v4804_v14 = vrot.slane %v4764_v10, %v9543_v32 }
 0x2b6   : > { %v4776_v38 = vmul.f32 %v4775_v47, %v8451_v28  ;;  %v4781_v36 = vmul.f32 %v4780_v46, %v8455_v25  ;;  %v4511_v56 = vadd.f32 %v4510_v45, %v4391_v22  ;;  %v4787_v5 = vmul.f32 %v4786_v44, %v8459_v30 }
 0x2b7   : > { %v4771_v53 = vadd.f32 %v4770_v20, %v8445_v1  ;;  %v4512_v34 = vpop.f32.mrf.mxu0  ;;  %v4598_v51 = vpop.f32.mrf.mxu1  ;;  %v4793_v19 = vmul.f32 %v4792_v63, %v8466_v62 }
 0x2b8   : > { %v4782_v6 = vadd.f32 %v4781_v36, %v4776_v38  ;;  %v4513_v8 = vadd.f32 %v4512_v34, %v4393_v33  ;;  %v4599_v54 = vadd.f32 %v4598_v51, %v4511_v56 }
 0x2b9   : > { %v4807_v17 = vsel %vm4682_vm7, %v4771_v53, -inf  ;;  %v4600_v13 = vpop.f32.mrf.mxu1 }
 0x2ba   : > { %v4808_v1 = vrot.slane %v4807_v17, 4  ;;  %v4788_v58 = vadd.f32 %v4787_v5, %v4782_v6  ;;  %v4737_v11 = vmul.f32 %v4736_v61, %v4599_v54  ;;  %v4601_v12 = vadd.f32 %v4600_v13, %v4513_v8 }
 0x2bb   : > { %v4799_v49 = vmul.f32 %v4798_v2, %v4599_v54 }
 0x2bc   : > { %v4809_v29 = vmax.f32 %v4807_v17, %v4808_v1  ;;  %v4794_v9 = vadd.f32 %v4793_v19, %v4788_v58  ;;  %v4738_v23 = vadd.f32 %v4737_v11, %v4732_v31  ;;  %v4743_v57 = vmul.f32 %v4742_v42, %v4601_v12 }
 0x2bd   : > { %v4805_v59 = vmul.f32 %v4804_v14, %v4601_v12 }
 0x2be   : > { %v4810_v4 = vrot.slane %v4809_v29, 2  ;;  %v4800_v41 = vadd.f32 %v4799_v49, %v4794_v9  ;;  %v4744_v18 = vadd.f32 %v4743_v57, %v4738_v23 }
 0x2c0   : > { %v4811_v60 = vmax.f32 %v4809_v29, %v4810_v4  ;;  %v4806_v21 = vadd.f32 %v4805_v59, %v4800_v41  ;;  %4862 = vst [vmem:[%s8488_s25] sm:$0xff] %v4744_v18 }
 0x2c2   : > { %v4812_v35 = vrot.slane %v4811_v60, 1  ;;  %4863 = vst [vmem:[%s8488_s25 + $0x8] sm:$0xff] %v4806_v21 }
 0x2c4   : > { %v4813_v24 = vmax.f32 %v4811_v60, %v4812_v35 }
 0x2c6   : > { %v4814_v55 = vsub.f32 %v4771_v53, %v4813_v24 }
 0x2c8   : > { %v4815_v26 = vmul.f32 1.442695, %v4814_v55 }
 0x2ca   : > { %5541 = vpow2.f32 %v4815_v26 }
 0x2d7   : > { %v5542_v27 = vpop.eup %5541 }
 0x2d8   : > { %v4817_v10 = vsel %vm4682_vm7, %v5542_v27, 0.0 }
 0x2d9   : > { %v4818_v16 = vrot.slane %v4817_v10, 4 }
 0x2db   : > { %v4819_v15 = vadd.f32 %v4818_v16, %v4817_v10 }
 0x2dd   : > { %v4820_v43 = vrot.slane %v4819_v15, 2 }
 0x2df   : > { %v4821_v22 = vadd.f32 %v4820_v43, %v4819_v15 }
 0x2e1   : > { %v4822_v47 = vrot.slane %v4821_v22, 1 }
 0x2e3   : > { %v4823_v46 = vadd.f32 %v4822_v47, %v4821_v22 }
 0x2e5   : > { %5543 = vrcp.f32 %v4823_v46 }
 0x2f2   : > { %v5544_v44 = vpop.eup %5543 }
 0x2f3   : > { %v4826_v33 = vmul.f32 %v5544_v44, %v5542_v27 }
 0x2f5   : > { %v4830_v20 = vrot.slane %v4826_v33, %v9538_v40  ;;  %v4835_v7 = vrot.slane %v4826_v33, %v9539_v39  ;;  %v4841_v3 = vrot.slane %v4826_v33, %v9540_v37  ;;  %v4853_v45 = vrot.slane %v4826_v33, %v9542_v52 }
 0x2f6   : > { %v4859_v38 = vrot.slane %v4826_v33, %v9543_v32  ;;  %v4847_v53 = vrot.slane %v4826_v33, %v9541_v0 }
 0x2f7   : > { %v4831_v36 = vmul.f32 %v4830_v20, %v8451_v28  ;;  %v4836_v63 = vmul.f32 %v4835_v7, %v8455_v25  ;;  %v4854_v48 = vmul.f32 %v4853_v45, %v4599_v54  ;;  %v4842_v39 = vmul.f32 %v4841_v3, %v8459_v30 }
 0x2f8   : > { %v4860_v40 = vmul.f32 %v4859_v38, %v4601_v12  ;;  %v4848_v56 = vmul.f32 %v4847_v53, %v8466_v62 }
 0x2f9   : > { %v4837_v50 = vadd.f32 %v4836_v63, %v4831_v36 }
 0x2fb   : > { %v4843_v37 = vadd.f32 %v4842_v39, %v4837_v50 }
 0x2fd   : > { %v4849_v34 = vadd.f32 %v4848_v56, %v4843_v37 }
 0x2ff   : > { %v4855_v28 = vadd.f32 %v4854_v48, %v4849_v34 }
 0x301   : > { %v4861_v25 = vadd.f32 %v4860_v40, %v4855_v28 }
 0x303   : > { %4864 = vst [vmem:[%s8488_s25 + $0x10] sm:$0xff] %v4861_v25 }
 0x304   : > { %5670 = shalt.err (!%p5667_p10)
}
 0x305   : > { %s5671_s12 = scalar_lea.hbm %s8511_s9, 384  ;;  %s5675_s29 = scalar_lea.hbm %s9545_s11, 1536 }
 0x306   : > { %p5672_p11 = scmp.ne.s32.totalorder %s8511_s9, %s5671_s12  ;;  %p5676_p1 = scmp.lt.s32.totalorder %s8511_s9, %s9545_s11 }
 0x307   : > { %p5677_p12 = scmp.lt.s32.totalorder %s5675_s29, %s5671_s12 }
 0x308   : > { %p5673_p6 = pnand %p5672_p11, %p5947_p4 }
 0x309   : > { %p5678_p2 = por %p5677_p12, %p5676_p1 }
 0x30a   : > { %p5674_p0 = pneg %p5673_p6 }
 0x30c   : > { %p5679_p7 = pnand %p5678_p2, %p5674_p0 }
 0x30e   : > { %5682 = shalt.err (!%p5679_p7)
}
 0x30f   : > { %s5801_s7 = smov 128   ;;  %s5802_s13 = smov 256  }
 0x310   : > { %s5803_s19 = smov 8  }
 0x311   : > { %5408 = dma.vmem_to_hbm [thread:$0]  (%p5947_p4), %s8506_s17, 384, %s8511_s9, %s4866_s20, %s5801_s7, %s5802_s13, %s5803_s19  }
 0x312 PF: > { %s9546_s8 = sld [smem:[#allocation20_spill]] }
 0x313   : > { %s9547_s25 = sld [smem:[#allocation17_spill]] }
 0x314   : > { %s9548_s14 = sld [smem:[#allocation26_spill]] }
 0x318   : > { %p5428_p13 = scmp.ge.s32.totalorder %s9546_s8, 2 }
 0x319   : > { %s4895_s15 = sand.u32 1, %s9547_s25  }
 0x31a   : > { %p9549_p8 = scmp.ne.s32.totalorder %s9548_s14, 0  ;;  %s4896_s23 = scalar_lea.sflag [#allocation5], %s4895_s15 }
 0x31c   : > { %p5424_p3 = pnand %p5428_p13, %p9549_p8 }
 0x31e   : > { %p5425_p5 = pneg %p5424_p3 }
 0x320   : > { %5744 = dma.done.wait (%p5425_p5), %s4896_s23, 384  }
 0x321   : > { %5746 = vsyncadd (%p5425_p5), %s4896_s23, 4294966912  ;;  %s28_s29 = sadd.s32 1, %s9546_s8   ;;  %s9550_s26 = sld [smem:[#allocation18_spill]] }
 0x322   : > { %p25_p9 = scmp.ge.s32.totalorder %s28_s29, 6   ;;  %s9551_s22 = sld [smem:[#allocation24_spill]] }
 0x323   : > { %s9552_s16 = sld [smem:[#allocation19_spill]]  ;;  %s9556_s20 = smov %s5753_s21 }
 0x324   : > { %s9553_s25 = sld [smem:[#allocation23_spill]]  ;;  %s9558_s23 = smov %s5765_s24 }
 0x325   : > { %s9554_s2 = sld [smem:[#allocation21_spill]]  ;;  %s9560_s0 = smov %s5781_s27 }
 0x326   : > { %s9555_s17 = sld [smem:[#allocation22_spill]] }
 0x327   : > { %s9557_s21 = smov %s9550_s26  ;;  %s9561_s26 = smov %s5785_s28 }
 0x328   :  { %27 = sbr.rel (!%p25_p9) target bundleno = 19 (0x13), region = 122 }
 0x329   : > { %s9559_s24 = smov %s9552_s16 }
 0x32b   : > { %s9562_s27 = smov %s9554_s2 }
 0x32c   : > { %s9563_s28 = smov %s9555_s17 }
 0x32d   :  { %4901 = vsyncpa [#allocation4], 1 }
 0x32e   :  { %4903 = vsyncpa [#allocation4 + $0x1], 1 }
 0x32f   :  { %4904 = vsyncpa [#allocation7], 1 }
 0x330   :  { %4906 = vsyncpa [#allocation7 + $0x1], 1 }
 0x331   :  { %4907 = vsyncpa [#allocation10], 1 }
 0x332   :  { %4909 = vsyncpa [#allocation10 + $0x1], 1 }
 0x333   :  { %4910 = vsyncpa [#allocation5], 1 }
 0x334   :  { %4912 = vsyncpa [#allocation5 + $0x1], 1 }

</bundles_post_ra>
